<compile_context>
chip_gen: v5e
topology: v5e:2x2
jax: 0.10.0
libtpu: 0.0.40
codegen_flags: <defaults>
</compile_context>

<pallas_src>
import functools

import jax
import jax.numpy as jnp
from jax.experimental import pallas as pl
from jax.experimental.pallas import tpu as pltpu

TN = 128                        # lane tile (output channels padded to >= 128)
TM_MAX = 256                    # max row tile
VMEM_LIMIT = 48 * 1024 * 1024   # explicit scoped-VMEM budget (safe on v5e/v6e/v7x)


def _round_up(x, m):
    return ((x + m - 1) // m) * m


def _k_pad_and_tile(k):
    """Pad K to a lane-aligned size and choose the K tile (single step if small)."""
    if k <= 1024:
        kp = _round_up(k, 128)
        return kp, kp
    kp = _round_up(k, 512)
    return kp, 512


# --------------------------------------------------------------------------- #
# Pallas kernels
# --------------------------------------------------------------------------- #
def _make_matmul_kernel(pre_act, post_act, with_stats):
    """out = post_act(dot(pre_act(A), B) * scale + shift), optional col sum/sumsq."""

    def kernel(a_ref, b_ref, scale_ref, shift_ref, o_ref, *rest):
        if with_stats:
            stats_ref, acc_ref = rest
        else:
            (acc_ref,) = rest
        kk = pl.program_id(2)

        @pl.when(kk == 0)
        def _init():
            acc_ref[...] = jnp.zeros_like(acc_ref)

        a = a_ref[...]
        if pre_act == "leaky_relu":
            a = jnp.where(a > 0, a, a * jnp.asarray(0.2, dtype=a.dtype))
        elif pre_act == "relu":
            a = jnp.maximum(a, jnp.asarray(0, dtype=a.dtype))
        acc_ref[...] += jnp.dot(a, b_ref[...], preferred_element_type=jnp.float32)

        @pl.when(kk == pl.num_programs(2) - 1)
        def _finalize():
            y = acc_ref[...] * scale_ref[...] + shift_ref[...]
            if post_act == "relu":
                y = jnp.maximum(y, 0.0)
            elif post_act == "leaky_relu":
                y = jnp.where(y > 0, y, 0.2 * y)
            elif post_act == "tanh":
                y = jnp.tanh(y)
            o_ref[...] = y.astype(o_ref.dtype)
            if with_stats:
                s = jnp.sum(y, axis=0, keepdims=True)        # (1, tn)
                q = jnp.sum(y * y, axis=0, keepdims=True)    # (1, tn)
                tn = s.shape[1]
                ridx = jax.lax.broadcasted_iota(jnp.int32, (8, tn), 0)
                s8 = jnp.broadcast_to(s, (8, tn))
                q8 = jnp.broadcast_to(q, (8, tn))
                stats_ref[...] = jnp.where(
                    ridx == 0, s8, jnp.where(ridx == 1, q8, jnp.zeros_like(s8)))

    return kernel


def _affine_kernel(x_ref, scale_ref, shift_ref, o_ref):
    o_ref[...] = (x_ref[...] * scale_ref[...] + shift_ref[...]).astype(o_ref.dtype)


# --------------------------------------------------------------------------- #
# Pallas wrappers
# --------------------------------------------------------------------------- #
def fused_matmul(a, b_p, scale_p, shift_p, *, pre_act="none", post_act="none",
                 with_stats=False):
    """a: (M, K); b_p: (Kp, Np) bf16 pre-padded; scale/shift: (Np,) f32.

    Returns (out (Mp, Np) f32, stats) with stats = (col_sum, col_sumsq) or None.
    """
    m, k = a.shape
    kp, tk = _k_pad_and_tile(k)
    assert b_p.shape[0] == kp, (b_p.shape, kp)
    np_ = b_p.shape[1]
    tn = TN
    tm = min(TM_MAX, _round_up(m, 16))
    mp = _round_up(m, tm)
    gm, gn, gk = mp // tm, np_ // tn, kp // tk

    a_p = a
    if mp != m or kp != k:
        a_p = jnp.pad(a, ((0, mp - m), (0, kp - k)))
    a_p = a_p.astype(jnp.bfloat16)

    kernel = _make_matmul_kernel(pre_act, post_act, with_stats)
    if with_stats:
        out_shape = (jax.ShapeDtypeStruct((mp, np_), jnp.float32),
                     jax.ShapeDtypeStruct((gm * 8, np_), jnp.float32))
        out_specs = (pl.BlockSpec((tm, tn), lambda i, j, kk: (i, j)),
                     pl.BlockSpec((8, tn), lambda i, j, kk: (i, j)))
    else:
        out_shape = jax.ShapeDtypeStruct((mp, np_), jnp.float32)
        out_specs = pl.BlockSpec((tm, tn), lambda i, j, kk: (i, j))

    res = pl.pallas_call(
        kernel,
        out_shape=out_shape,
        grid=(gm, gn, gk),
        in_specs=[
            pl.BlockSpec((tm, tk), lambda i, j, kk: (i, kk)),
            pl.BlockSpec((tk, tn), lambda i, j, kk: (kk, j)),
            pl.BlockSpec((1, tn), lambda i, j, kk: (0, j)),
            pl.BlockSpec((1, tn), lambda i, j, kk: (0, j)),
        ],
        out_specs=out_specs,
        scratch_shapes=[pltpu.VMEM((tm, tn), jnp.float32)],
        compiler_params=pltpu.CompilerParams(
            dimension_semantics=("parallel", "parallel", "arbitrary"),
            vmem_limit_bytes=VMEM_LIMIT),
    )(a_p, b_p, scale_p.reshape(1, np_), shift_p.reshape(1, np_))

    if with_stats:
        out, st = res
        return out, (jnp.sum(st[0::8], axis=0), jnp.sum(st[1::8], axis=0))
    return res, None


def _affine_apply(x2d, scale, shift):
    """Per-column affine (BatchNorm apply).  x2d: (M, C), C a multiple of 128."""
    m, c = x2d.shape
    tm = TM_MAX if (m >= TM_MAX and m % TM_MAX == 0) else m
    return pl.pallas_call(
        _affine_kernel,
        out_shape=jax.ShapeDtypeStruct((m, c), jnp.float32),
        grid=(m // tm,),
        in_specs=[pl.BlockSpec((tm, c), lambda i: (i, 0)),
                  pl.BlockSpec((1, c), lambda i: (0, 0)),
                  pl.BlockSpec((1, c), lambda i: (0, 0))],
        out_specs=pl.BlockSpec((tm, c), lambda i: (i, 0)),
        compiler_params=pltpu.CompilerParams(
            dimension_semantics=("parallel",),
            vmem_limit_bytes=VMEM_LIMIT),
    )(x2d, scale.reshape(1, c), shift.reshape(1, c))


# --------------------------------------------------------------------------- #
# Layer helpers (JAX glue around the Pallas kernels)
# --------------------------------------------------------------------------- #
def _im2col_s2(x, kh=4, kw=4, pad=1):
    """NHWC -> (N, OH, OW, kh*kw*C), patch order (kh, kw, C); stride 2."""
    # TODO(synk): im2col patches are still materialized in HBM (bf16); folding the
    # 16-tap loop into the matmul's K grid axis via Element-indexed BlockSpecs is
    # not implemented here.
    x = jnp.pad(x, ((0, 0), (pad, pad), (pad, pad), (0, 0)))
    n, h, w, c = x.shape
    oh = (h - kh) // 2 + 1
    ow = (w - kw) // 2 + 1
    cols = []
    for i in range(kh):
        for j in range(kw):
            cols.append(x[:, i:i + 2 * oh:2, j:j + 2 * ow:2, :])
    return jnp.concatenate(cols, axis=-1)


def _bn_scale_shift(stats, count, gamma_p, beta_p, eps=1e-5):
    s, q = stats
    mean = s / count
    var = jnp.maximum(q / count - mean * mean, 0.0)   # biased variance (train mode)
    scale = gamma_p * jax.lax.rsqrt(var + eps)
    shift = beta_p - mean * scale
    return scale, shift


def down_conv(x, p, pre_act, bn):
    """Conv2d(k=4, s=2, p=1, bias=False) with fused pre-activation and optional BN."""
    patches = _im2col_s2(x.astype(jnp.bfloat16))
    n, oh, ow, k = patches.shape
    cout = p["down_cout"]
    out_p, stats = fused_matmul(patches.reshape(-1, k), p["down_w"],
                                p["down_scale"], p["down_shift"],
                                pre_act=pre_act, post_act="none",
                                with_stats=bn is not None)
    m = n * oh * ow
    if bn is not None:
        scale, shift = _bn_scale_shift(stats, m, *bn)
        out_p = _affine_apply(out_p, scale, shift)
    return out_p[:m, :cout].reshape(n, oh, ow, cout)


def up_conv(x, p, pre_act, post_act, bn):
    """ConvTranspose2d(k=4, s=2, p=1) via sub-pixel decomposition (4 phase matmuls)."""
    n, h, w, c = x.shape
    cout = p["up_cout"]
    with_stats = bn is not None
    xpad = jnp.pad(x, ((0, 0), (1, 1), (1, 1), (0, 0))).astype(jnp.bfloat16)
    phase_out, sums, sqs = [], 0.0, 0.0
    for idx, (py, px) in enumerate(((0, 0), (0, 1), (1, 0), (1, 1))):
        cols = [xpad[:, py + ty:py + ty + h, px + tx:px + tx + w, :]
                for ty in range(2) for tx in range(2)]
        patches = jnp.concatenate(cols, axis=-1).reshape(n * h * w, 4 * c)
        o_p, st = fused_matmul(patches, p["up_w"][idx],
                               p["up_scale"], p["up_shift"],
                               pre_act=pre_act, post_act=post_act,
                               with_stats=with_stats)
        phase_out.append(o_p)
        if with_stats:
            sums = sums + st[0]
            sqs = sqs + st[1]
    m = n * h * w
    if with_stats:
        scale, shift = _bn_scale_shift((sums, sqs), 4 * m, *bn)
        phase_out = [_affine_apply(o, scale, shift) for o in phase_out]
    p00, p01, p10, p11 = [o[:m, :cout].reshape(n, h, w, cout) for o in phase_out]
    top = jnp.stack([p00, p01], axis=3)          # (n, h, w, 2, c)  px phases
    bot = jnp.stack([p10, p11], axis=3)
    out = jnp.stack([top, bot], axis=2)          # (n, h, 2, w, 2, c)  py phases
    return out.reshape(n, 2 * h, 2 * w, cout)


# --------------------------------------------------------------------------- #
# Parameter construction (deterministic, hoisted weight preprocessing)
# --------------------------------------------------------------------------- #
def _prep_conv_weight(w):
    kh, kw, cin, cout = w.shape
    k = kh * kw * cin
    kp, _ = _k_pad_and_tile(k)
    np_ = _round_up(cout, TN)
    mat = jnp.zeros((kp, np_), jnp.float32).at[:k, :cout].set(w.reshape(k, cout))
    return mat.astype(jnp.bfloat16)


def _prep_convT_weight(w):
    """PyTorch-layout (Cin, Cout, 4, 4) -> 4 sub-pixel phase matrices (Kp, Np) bf16."""
    cin, cout = w.shape[0], w.shape[1]
    w_eff = jnp.flip(w, axis=(2, 3)).transpose(2, 3, 0, 1)      # (4, 4, Cin, Cout)
    k = 4 * cin
    kp, _ = _k_pad_and_tile(k)
    np_ = _round_up(cout, TN)
    mats = []
    for py, px in ((0, 0), (0, 1), (1, 0), (1, 1)):
        wp = w_eff[py::2, px::2, :, :].reshape(k, cout)         # K order (ty, tx, Cin)
        mat = jnp.zeros((kp, np_), jnp.float32).at[:k, :cout].set(wp)
        mats.append(mat.astype(jnp.bfloat16))
    return mats


def _gamma_pad(c):
    return jnp.zeros((_round_up(c, TN),), jnp.float32).at[:c].set(1.0)


def _zeros_pad(c):
    return jnp.zeros((_round_up(c, TN),), jnp.float32)


def _ones_pad(c):
    return jnp.ones((_round_up(c, TN),), jnp.float32)


def make_block(key, outer_nc, inner_nc, input_nc=None, submodule=None,
               outermost=False, innermost=False):
    if input_nc is None:
        input_nc = outer_nc
    k0, k1 = jax.random.split(key)
    down_w = 0.02 * jax.random.normal(k0, (4, 4, input_nc, inner_nc), jnp.float32)
    p = {
        "outermost": outermost,
        "innermost": innermost,
        "submodule": submodule,
        "down_w": _prep_conv_weight(down_w),          # bias=False (BatchNorm2d norm)
        "down_cout": inner_nc,
        "down_scale": _ones_pad(inner_nc),
        "down_shift": _zeros_pad(inner_nc),
        "up_cout": outer_nc,
        "up_scale": _ones_pad(outer_nc),
    }
    if outermost:
        up_w = 0.02 * jax.random.normal(k1, (inner_nc * 2, outer_nc, 4, 4), jnp.float32)
        p["up_w"] = _prep_convT_weight(up_w)
        p["up_shift"] = _zeros_pad(outer_nc)          # the only conv with bias (init 0)
    elif innermost:
        up_w = 0.02 * jax.random.normal(k1, (inner_nc, outer_nc, 4, 4), jnp.float32)
        p["up_w"] = _prep_convT_weight(up_w)
        p["up_shift"] = _zeros_pad(outer_nc)
        p["up_gamma"] = _gamma_pad(outer_nc)
        p["up_beta"] = _zeros_pad(outer_nc)
    else:
        up_w = 0.02 * jax.random.normal(k1, (inner_nc * 2, outer_nc, 4, 4), jnp.float32)
        p["up_w"] = _prep_convT_weight(up_w)
        p["up_shift"] = _zeros_pad(outer_nc)
        p["down_gamma"] = _gamma_pad(inner_nc)
        p["down_beta"] = _zeros_pad(inner_nc)
        p["up_gamma"] = _gamma_pad(outer_nc)
        p["up_beta"] = _zeros_pad(outer_nc)
    return p


def build_unet_256(key, input_nc, output_nc, num_downs, ngf):
    keys = list(jax.random.split(key, num_downs + 1))
    ki = iter(keys)
    blk = make_block(next(ki), ngf * 8, ngf * 8, innermost=True)
    for _ in range(num_downs - 5):
        blk = make_block(next(ki), ngf * 8, ngf * 8, submodule=blk)
    blk = make_block(next(ki), ngf * 4, ngf * 8, submodule=blk)
    blk = make_block(next(ki), ngf * 2, ngf * 4, submodule=blk)
    blk = make_block(next(ki), ngf, ngf * 2, submodule=blk)
    blk = make_block(next(ki), output_nc, ngf, input_nc=input_nc,
                     submodule=blk, outermost=True)
    return blk


# --------------------------------------------------------------------------- #
# Forward, mirroring Unet_256 / UnetSkipConnectionBlock
# --------------------------------------------------------------------------- #
def block_forward(p, x):
    if p["outermost"]:
        d = down_conv(x, p, pre_act="none", bn=None)
        s = block_forward(p["submodule"], d)
        return up_conv(s, p, pre_act="relu", post_act="tanh", bn=None)
    elif p["innermost"]:
        d = down_conv(x, p, pre_act="leaky_relu", bn=None)
        u = up_conv(d, p, pre_act="relu", post_act="none",
                    bn=(p["up_gamma"], p["up_beta"]))
        return jnp.concatenate([x, u], axis=-1)
    else:
        d = down_conv(x, p, pre_act="leaky_relu",
                      bn=(p["down_gamma"], p["down_beta"]))
        s = block_forward(p["submodule"], d)
        u = up_conv(s, p, pre_act="relu", post_act="none",
                    bn=(p["up_gamma"], p["up_beta"]))
        # TODO(synk): nn.Dropout(0.5) branch omitted (use_dropout defaults to False).
        return jnp.concatenate([x, u], axis=-1)


def unet_256_forward(params, x_nchw):
    """Input / output are NCHW float32 (PyTorch convention)."""
    x = jnp.transpose(x_nchw, (0, 2, 3, 1))   # -> NHWC
    y = block_forward(params, x)
    return jnp.transpose(y, (0, 3, 1, 2))     # -> NCHW


# --------------------------------------------------------------------------- #
# Main
# --------------------------------------------------------------------------- #
if __name__ == "__main__":
    # Small config consistent with the module: num_downs=5 requires spatial >= 32.
    input_nc, output_nc, num_downs, ngf = 3, 3, 5, 8
    batch, spatial = 2, 32

    key = jax.random.PRNGKey(0)
    k_params, k_x = jax.random.split(key)

    params = build_unet_256(k_params, input_nc, output_nc, num_downs, ngf)
    x = jax.random.normal(k_x, (batch, input_nc, spatial, spatial), jnp.float32)

    forward = jax.jit(functools.partial(unet_256_forward, params))
    y = jax.block_until_ready(forward(x))

    assert y.shape == (batch, output_nc, spatial, spatial), y.shape
    assert bool(jnp.all(jnp.isfinite(y)))
    print("KERNEL_OK")
</pallas_src>

<mosaic_0001>
module attributes {stable_mosaic.version = 11 : i64} {
  func.func @kernel(%arg0: i32, %arg1: i32, %arg2: i32, %arg3: memref<256x128xbf16, #tpu.memory_space<vmem>>, %arg4: memref<128x128xbf16, #tpu.memory_space<vmem>>, %arg5: memref<1x128xf32, #tpu.memory_space<vmem>>, %arg6: memref<1x128xf32, #tpu.memory_space<vmem>>, %arg7: memref<256x128xf32, #tpu.memory_space<vmem>>, %arg8: memref<256x128xf32, #tpu.memory_space<vmem>>) attributes {dimension_semantics = [#tpu.dimension_semantics<parallel>, #tpu.dimension_semantics<parallel>, #tpu.dimension_semantics<arbitrary>], iteration_bounds = array<i64: 2, 1, 1>, scalar_prefetch = 0 : i64, scratch_operands = 1 : i64, tpu.core_type = #tpu.core_type<tc>, window_params = [{transform_indices = @transform_0, window_bounds = array<i64: 256, 128>}, {transform_indices = @transform_1, window_bounds = array<i64: 128, 128>}, {transform_indices = @transform_2, window_bounds = array<i64: 1, 128>}, {transform_indices = @transform_3, window_bounds = array<i64: 1, 128>}, {transform_indices = @transform_4, window_bounds = array<i64: 256, 128>}]} {
    %c0_i32 = arith.constant 0 : i32
    %0 = arith.cmpi eq, %arg2, %c0_i32 : i32
    %1 = arith.extui %0 : i1 to i32
    %c0_i32_0 = arith.constant 0 : i32
    %2 = arith.cmpi ne, %1, %c0_i32_0 : i32
    scf.if %2 {
      %cst_10 = arith.constant 0.000000e+00 : f32
      %12 = vector.broadcast %cst_10 : f32 to vector<256x128xf32>
      %c0_11 = arith.constant 0 : index
      %c0_12 = arith.constant 0 : index
      %13 = vector.load %arg8[%c0_11, %c0_12] : memref<256x128xf32, #tpu.memory_space<vmem>>, vector<256x128xf32>
      tpu.vector_store %arg8[%c0_11, %c0_12], %12 {strides = array<i32>} : memref<256x128xf32, #tpu.memory_space<vmem>>, vector<256x128xf32>,
    } else {
    }
    %c0 = arith.constant 0 : index
    %c0_1 = arith.constant 0 : index
    %3 = vector.load %arg3[%c0, %c0_1] : memref<256x128xbf16, #tpu.memory_space<vmem>>, vector<256x128xbf16>
    %c0_2 = arith.constant 0 : index
    %c0_3 = arith.constant 0 : index
    %4 = vector.load %arg8[%c0_2, %c0_3] : memref<256x128xf32, #tpu.memory_space<vmem>>, vector<256x128xf32>
    %c0_4 = arith.constant 0 : index
    %c0_5 = arith.constant 0 : index
    %5 = vector.load %arg4[%c0_4, %c0_5] : memref<128x128xbf16, #tpu.memory_space<vmem>>, vector<128x128xbf16>
    %cst = arith.constant dense<0.000000e+00> : vector<256x128xf32>
    %6 = tpu.matmul %3, %5, %cst {dimension_numbers = #tpu.dot_dimension_numbers<[1], [0], [0], [1], [0, 0, 1, 1], [], []>} : vector<256x128xbf16>, vector<128x128xbf16>, vector<256x128xf32> -> vector<256x128xf32>
    %7 = arith.addf %4, %6 : vector<256x128xf32>
    %c0_6 = arith.constant 0 : index
    %c0_7 = arith.constant 0 : index
    %8 = vector.load %arg8[%c0_6, %c0_7] : memref<256x128xf32, #tpu.memory_space<vmem>>, vector<256x128xf32>
    tpu.vector_store %arg8[%c0_6, %c0_7], %7 {strides = array<i32>} : memref<256x128xf32, #tpu.memory_space<vmem>>, vector<256x128xf32>,
    %c0_i32_8 = arith.constant 0 : i32
    %9 = arith.cmpi eq, %arg2, %c0_i32_8 : i32
    %10 = arith.extui %9 : i1 to i32
    %c0_i32_9 = arith.constant 0 : i32
    %11 = arith.cmpi ne, %10, %c0_i32_9 : i32
    scf.if %11 {
      %c0_10 = arith.constant 0 : index
      %c0_11 = arith.constant 0 : index
      %12 = vector.load %arg8[%c0_10, %c0_11] : memref<256x128xf32, #tpu.memory_space<vmem>>, vector<256x128xf32>
      %c0_12 = arith.constant 0 : index
      %c0_13 = arith.constant 0 : index
      %13 = vector.load %arg5[%c0_12, %c0_13] : memref<1x128xf32, #tpu.memory_space<vmem>>, vector<1x128xf32>
      %14 = vector.broadcast %13 : vector<1x128xf32> to vector<256x128xf32>
      %15 = arith.mulf %12, %14 : vector<256x128xf32>
      %c0_14 = arith.constant 0 : index
      %c0_15 = arith.constant 0 : index
      %16 = vector.load %arg6[%c0_14, %c0_15] : memref<1x128xf32, #tpu.memory_space<vmem>>, vector<1x128xf32>
      %17 = vector.broadcast %16 : vector<1x128xf32> to vector<256x128xf32>
      %18 = arith.addf %15, %17 : vector<256x128xf32>
      %c0_16 = arith.constant 0 : index
      %c0_17 = arith.constant 0 : index
      %19 = vector.load %arg7[%c0_16, %c0_17] : memref<256x128xf32, #tpu.memory_space<vmem>>, vector<256x128xf32>
      tpu.vector_store %arg7[%c0_16, %c0_17], %18 {strides = array<i32>} : memref<256x128xf32, #tpu.memory_space<vmem>>, vector<256x128xf32>,
    } else {
    }
    return
  }
  func.func @transform_0(%arg0: i32, %arg1: i32, %arg2: i32) -> (i32, i32) {
    %c0_i32 = arith.constant 0 : i32
    return %arg0, %arg2 : i32, i32
  }
  func.func @transform_1(%arg0: i32, %arg1: i32, %arg2: i32) -> (i32, i32) {
    %c0_i32 = arith.constant 0 : i32
    return %arg2, %arg1 : i32, i32
  }
  func.func @transform_2(%arg0: i32, %arg1: i32, %arg2: i32) -> (i32, i32) {
    %c0_i32 = arith.constant 0 : i32
    %c0_i32_0 = arith.constant 0 : i32
    return %c0_i32, %arg1 : i32, i32
  }
  func.func @transform_3(%arg0: i32, %arg1: i32, %arg2: i32) -> (i32, i32) {
    %c0_i32 = arith.constant 0 : i32
    %c0_i32_0 = arith.constant 0 : i32
    return %c0_i32, %arg1 : i32, i32
  }
  func.func @transform_4(%arg0: i32, %arg1: i32, %arg2: i32) -> (i32, i32) {
    %c0_i32 = arith.constant 0 : i32
    return %arg0, %arg1 : i32, i32
  }
}

module attributes {stable_mosaic.version = 11 : i64} {
  func.func @kernel(%arg0: i32, %arg1: i32, %arg2: i32, %arg3: memref<128x128xbf16, #tpu.memory_space<vmem>>, %arg4: memref<128x128xbf16, #tpu.memory_space<vmem>>, %arg5: memref<1x128xf32, #tpu.memory_space<vmem>>, %arg6: memref<1x128xf32, #tpu.memory_space<vmem>>, %arg7: memref<128x128xf32, #tpu.memory_space<vmem>>, %arg8: memref<8x128xf32, #tpu.memory_space<vmem>>, %arg9: memref<128x128xf32, #tpu.memory_space<vmem>>) attributes {dimension_semantics = [#tpu.dimension_semantics<parallel>, #tpu.dimension_semantics<parallel>, #tpu.dimension_semantics<arbitrary>], iteration_bounds = array<i64: 1, 1, 1>, scalar_prefetch = 0 : i64, scratch_operands = 1 : i64, tpu.core_type = #tpu.core_type<tc>, window_params = [{transform_indices = @transform_0, window_bounds = array<i64: 128, 128>}, {transform_indices = @transform_1, window_bounds = array<i64: 128, 128>}, {transform_indices = @transform_2, window_bounds = array<i64: 1, 128>}, {transform_indices = @transform_3, window_bounds = array<i64: 1, 128>}, {transform_indices = @transform_4, window_bounds = array<i64: 128, 128>}, {transform_indices = @transform_5, window_bounds = array<i64: 8, 128>}]} {
    %c0_i32 = arith.constant 0 : i32
    %0 = arith.cmpi eq, %arg2, %c0_i32 : i32
    %1 = arith.extui %0 : i1 to i32
    %c0_i32_0 = arith.constant 0 : i32
    %2 = arith.cmpi ne, %1, %c0_i32_0 : i32
    scf.if %2 {
      %cst_12 = arith.constant 0.000000e+00 : f32
      %17 = vector.broadcast %cst_12 : f32 to vector<128x128xf32>
      %c0_13 = arith.constant 0 : index
      %c0_14 = arith.constant 0 : index
      %18 = vector.load %arg9[%c0_13, %c0_14] : memref<128x128xf32, #tpu.memory_space<vmem>>, vector<128x128xf32>
      tpu.vector_store %arg9[%c0_13, %c0_14], %17 {strides = array<i32>} : memref<128x128xf32, #tpu.memory_space<vmem>>, vector<128x128xf32>,
    } else {
    }
    %c0 = arith.constant 0 : index
    %c0_1 = arith.constant 0 : index
    %3 = vector.load %arg3[%c0, %c0_1] : memref<128x128xbf16, #tpu.memory_space<vmem>>, vector<128x128xbf16>
    %cst = arith.constant 0.000000e+00 : bf16
    %4 = vector.broadcast %cst : bf16 to vector<128x128xbf16>
    %5 = arith.cmpf ogt, %3, %4 : vector<128x128xbf16>
    %cst_2 = arith.constant 2.001950e-01 : bf16
    %6 = vector.broadcast %cst_2 : bf16 to vector<128x128xbf16>
    %7 = arith.mulf %3, %6 : vector<128x128xbf16>
    %8 = arith.select %5, %3, %7 : vector<128x128xi1>, vector<128x128xbf16>
    %c0_3 = arith.constant 0 : index
    %c0_4 = arith.constant 0 : index
    %9 = vector.load %arg9[%c0_3, %c0_4] : memref<128x128xf32, #tpu.memory_space<vmem>>, vector<128x128xf32>
    %c0_5 = arith.constant 0 : index
    %c0_6 = arith.constant 0 : index
    %10 = vector.load %arg4[%c0_5, %c0_6] : memref<128x128xbf16, #tpu.memory_space<vmem>>, vector<128x128xbf16>
    %cst_7 = arith.constant dense<0.000000e+00> : vector<128x128xf32>
    %11 = tpu.matmul %8, %10, %cst_7 {dimension_numbers = #tpu.dot_dimension_numbers<[1], [0], [0], [1], [0, 0, 1, 1], [], []>} : vector<128x128xbf16>, vector<128x128xbf16>, vector<128x128xf32> -> vector<128x128xf32>
    %12 = arith.addf %9, %11 : vector<128x128xf32>
    %c0_8 = arith.constant 0 : index
    %c0_9 = arith.constant 0 : index
    %13 = vector.load %arg9[%c0_8, %c0_9] : memref<128x128xf32, #tpu.memory_space<vmem>>, vector<128x128xf32>
    tpu.vector_store %arg9[%c0_8, %c0_9], %12 {strides = array<i32>} : memref<128x128xf32, #tpu.memory_space<vmem>>, vector<128x128xf32>,
    %c0_i32_10 = arith.constant 0 : i32
    %14 = arith.cmpi eq, %arg2, %c0_i32_10 : i32
    %15 = arith.extui %14 : i1 to i32
    %c0_i32_11 = arith.constant 0 : i32
    %16 = arith.cmpi ne, %15, %c0_i32_11 : i32
    scf.if %16 {
      %c0_12 = arith.constant 0 : index
      %c0_13 = arith.constant 0 : index
      %17 = vector.load %arg9[%c0_12, %c0_13] : memref<128x128xf32, #tpu.memory_space<vmem>>, vector<128x128xf32>
      %c0_14 = arith.constant 0 : index
      %c0_15 = arith.constant 0 : index
      %18 = vector.load %arg5[%c0_14, %c0_15] : memref<1x128xf32, #tpu.memory_space<vmem>>, vector<1x128xf32>
      %19 = vector.broadcast %18 : vector<1x128xf32> to vector<128x128xf32>
      %20 = arith.mulf %17, %19 : vector<128x128xf32>
      %c0_16 = arith.constant 0 : index
      %c0_17 = arith.constant 0 : index
      %21 = vector.load %arg6[%c0_16, %c0_17] : memref<1x128xf32, #tpu.memory_space<vmem>>, vector<1x128xf32>
      %22 = vector.broadcast %21 : vector<1x128xf32> to vector<128x128xf32>
      %23 = arith.addf %20, %22 : vector<128x128xf32>
      %c0_18 = arith.constant 0 : index
      %c0_19 = arith.constant 0 : index
      %24 = vector.load %arg7[%c0_18, %c0_19] : memref<128x128xf32, #tpu.memory_space<vmem>>, vector<128x128xf32>
      tpu.vector_store %arg7[%c0_18, %c0_19], %23 {strides = array<i32>} : memref<128x128xf32, #tpu.memory_space<vmem>>, vector<128x128xf32>,
      %cst_20 = arith.constant dense<0.000000e+00> : vector<128xf32>
      %25 = vector.multi_reduction <add>, %23, %cst_20 [0] : vector<128x128xf32> to vector<128xf32>
      %26 = vector.shape_cast %25 : vector<128xf32> to vector<1x128xf32>
      %27 = arith.mulf %23, %23 : vector<128x128xf32>
      %cst_21 = arith.constant dense<0.000000e+00> : vector<128xf32>
      %28 = vector.multi_reduction <add>, %27, %cst_21 [0] : vector<128x128xf32> to vector<128xf32>
      %29 = vector.shape_cast %28 : vector<128xf32> to vector<1x128xf32>
      %30 = tpu.iota {dimensions = array<i32: 0>} : vector<8x128xi32>
      %31 = vector.shape_cast %26 : vector<1x128xf32> to vector<1x128xf32>
      %32 = vector.broadcast %31 : vector<1x128xf32> to vector<8x128xf32>
      %33 = vector.shape_cast %29 : vector<1x128xf32> to vector<1x128xf32>
      %34 = vector.broadcast %33 : vector<1x128xf32> to vector<8x128xf32>
      %c0_i32_22 = arith.constant 0 : i32
      %35 = vector.broadcast %c0_i32_22 : i32 to vector<8x128xi32>
      %36 = arith.cmpi eq, %30, %35 : vector<8x128xi32>
      %c1_i32 = arith.constant 1 : i32
      %37 = vector.broadcast %c1_i32 : i32 to vector<8x128xi32>
      %38 = arith.cmpi eq, %30, %37 : vector<8x128xi32>
      %cst_23 = arith.constant 0.000000e+00 : f32
      %39 = vector.broadcast %cst_23 : f32 to vector<8x128xf32>
      %40 = arith.select %38, %34, %39 : vector<8x128xi1>, vector<8x128xf32>
      %41 = arith.select %36, %32, %40 : vector<8x128xi1>, vector<8x128xf32>
      %c0_24 = arith.constant 0 : index
      %c0_25 = arith.constant 0 : index
      %42 = vector.load %arg8[%c0_24, %c0_25] : memref<8x128xf32, #tpu.memory_space<vmem>>, vector<8x128xf32>
      tpu.vector_store %arg8[%c0_24, %c0_25], %41 {strides = array<i32>} : memref<8x128xf32, #tpu.memory_space<vmem>>, vector<8x128xf32>,
    } else {
    }
    return
  }
  func.func @transform_0(%arg0: i32, %arg1: i32, %arg2: i32) -> (i32, i32) {
    %c0_i32 = arith.constant 0 : i32
    return %arg0, %arg2 : i32, i32
  }
  func.func @transform_1(%arg0: i32, %arg1: i32, %arg2: i32) -> (i32, i32) {
    %c0_i32 = arith.constant 0 : i32
    return %arg2, %arg1 : i32, i32
  }
  func.func @transform_2(%arg0: i32, %arg1: i32, %arg2: i32) -> (i32, i32) {
    %c0_i32 = arith.constant 0 : i32
    %c0_i32_0 = arith.constant 0 : i32
    return %c0_i32, %arg1 : i32, i32
  }
  func.func @transform_3(%arg0: i32, %arg1: i32, %arg2: i32) -> (i32, i32) {
    %c0_i32 = arith.constant 0 : i32
    %c0_i32_0 = arith.constant 0 : i32
    return %c0_i32, %arg1 : i32, i32
  }
  func.func @transform_4(%arg0: i32, %arg1: i32, %arg2: i32) -> (i32, i32) {
    %c0_i32 = arith.constant 0 : i32
    return %arg0, %arg1 : i32, i32
  }
  func.func @transform_5(%arg0: i32, %arg1: i32, %arg2: i32) -> (i32, i32) {
    %c0_i32 = arith.constant 0 : i32
    return %arg0, %arg1 : i32, i32
  }
}

module attributes {stable_mosaic.version = 11 : i64} {
  func.func @_affine_kernel(%arg0: i32, %arg1: memref<128x128xf32, #tpu.memory_space<vmem>>, %arg2: memref<1x128xf32, #tpu.memory_space<vmem>>, %arg3: memref<1x128xf32, #tpu.memory_space<vmem>>, %arg4: memref<128x128xf32, #tpu.memory_space<vmem>>) attributes {dimension_semantics = [#tpu.dimension_semantics<parallel>], iteration_bounds = array<i64: 1>, scalar_prefetch = 0 : i64, scratch_operands = 0 : i64, tpu.core_type = #tpu.core_type<tc>, window_params = [{transform_indices = @transform_0, window_bounds = array<i64: 128, 128>}, {pipeline_mode = #tpu.pipeline_mode<synchronous>, transform_indices = @transform_1, window_bounds = array<i64: 1, 128>}, {pipeline_mode = #tpu.pipeline_mode<synchronous>, transform_indices = @transform_2, window_bounds = array<i64: 1, 128>}, {transform_indices = @transform_3, window_bounds = array<i64: 128, 128>}]} {
    %c0 = arith.constant 0 : index
    %c0_0 = arith.constant 0 : index
    %0 = vector.load %arg1[%c0, %c0_0] : memref<128x128xf32, #tpu.memory_space<vmem>>, vector<128x128xf32>
    %c0_1 = arith.constant 0 : index
    %c0_2 = arith.constant 0 : index
    %1 = vector.load %arg2[%c0_1, %c0_2] : memref<1x128xf32, #tpu.memory_space<vmem>>, vector<1x128xf32>
    %2 = vector.broadcast %1 : vector<1x128xf32> to vector<128x128xf32>
    %3 = arith.mulf %0, %2 : vector<128x128xf32>
    %c0_3 = arith.constant 0 : index
    %c0_4 = arith.constant 0 : index
    %4 = vector.load %arg3[%c0_3, %c0_4] : memref<1x128xf32, #tpu.memory_space<vmem>>, vector<1x128xf32>
    %5 = vector.broadcast %4 : vector<1x128xf32> to vector<128x128xf32>
    %6 = arith.addf %3, %5 : vector<128x128xf32>
    %c0_5 = arith.constant 0 : index
    %c0_6 = arith.constant 0 : index
    %7 = vector.load %arg4[%c0_5, %c0_6] : memref<128x128xf32, #tpu.memory_space<vmem>>, vector<128x128xf32>
    tpu.vector_store %arg4[%c0_5, %c0_6], %6 {strides = array<i32>} : memref<128x128xf32, #tpu.memory_space<vmem>>, vector<128x128xf32>,
    return
  }
  func.func @transform_0(%arg0: i32) -> (i32, i32) {
    %c0_i32 = arith.constant 0 : i32
    %c0_i32_0 = arith.constant 0 : i32
    return %arg0, %c0_i32 : i32, i32
  }
  func.func @transform_1(%arg0: i32) -> (i32, i32) {
    %c0_i32 = arith.constant 0 : i32
    %c0_i32_0 = arith.constant 0 : i32
    %c0_i32_1 = arith.constant 0 : i32
    return %c0_i32, %c0_i32_0 : i32, i32
  }
  func.func @transform_2(%arg0: i32) -> (i32, i32) {
    %c0_i32 = arith.constant 0 : i32
    %c0_i32_0 = arith.constant 0 : i32
    %c0_i32_1 = arith.constant 0 : i32
    return %c0_i32, %c0_i32_0 : i32, i32
  }
  func.func @transform_3(%arg0: i32) -> (i32, i32) {
    %c0_i32 = arith.constant 0 : i32
    %c0_i32_0 = arith.constant 0 : i32
    return %arg0, %c0_i32 : i32, i32
  }
}

module attributes {stable_mosaic.version = 11 : i64} {
  func.func @_affine_kernel(%arg0: i32, %arg1: memref<32x128xf32, #tpu.memory_space<vmem>>, %arg2: memref<1x128xf32, #tpu.memory_space<vmem>>, %arg3: memref<1x128xf32, #tpu.memory_space<vmem>>, %arg4: memref<32x128xf32, #tpu.memory_space<vmem>>) attributes {dimension_semantics = [#tpu.dimension_semantics<parallel>], iteration_bounds = array<i64: 1>, scalar_prefetch = 0 : i64, scratch_operands = 0 : i64, tpu.core_type = #tpu.core_type<tc>, window_params = [{transform_indices = @transform_0, window_bounds = array<i64: 32, 128>}, {pipeline_mode = #tpu.pipeline_mode<synchronous>, transform_indices = @transform_1, window_bounds = array<i64: 1, 128>}, {pipeline_mode = #tpu.pipeline_mode<synchronous>, transform_indices = @transform_2, window_bounds = array<i64: 1, 128>}, {transform_indices = @transform_3, window_bounds = array<i64: 32, 128>}]} {
    %c0 = arith.constant 0 : index
    %c0_0 = arith.constant 0 : index
    %0 = vector.load %arg1[%c0, %c0_0] : memref<32x128xf32, #tpu.memory_space<vmem>>, vector<32x128xf32>
    %c0_1 = arith.constant 0 : index
    %c0_2 = arith.constant 0 : index
    %1 = vector.load %arg2[%c0_1, %c0_2] : memref<1x128xf32, #tpu.memory_space<vmem>>, vector<1x128xf32>
    %2 = vector.broadcast %1 : vector<1x128xf32> to vector<32x128xf32>
    %3 = arith.mulf %0, %2 : vector<32x128xf32>
    %c0_3 = arith.constant 0 : index
    %c0_4 = arith.constant 0 : index
    %4 = vector.load %arg3[%c0_3, %c0_4] : memref<1x128xf32, #tpu.memory_space<vmem>>, vector<1x128xf32>
    %5 = vector.broadcast %4 : vector<1x128xf32> to vector<32x128xf32>
    %6 = arith.addf %3, %5 : vector<32x128xf32>
    %c0_5 = arith.constant 0 : index
    %c0_6 = arith.constant 0 : index
    %7 = vector.load %arg4[%c0_5, %c0_6] : memref<32x128xf32, #tpu.memory_space<vmem>>, vector<32x128xf32>
    tpu.vector_store %arg4[%c0_5, %c0_6], %6 {strides = array<i32>} : memref<32x128xf32, #tpu.memory_space<vmem>>, vector<32x128xf32>,
    return
  }
  func.func @transform_0(%arg0: i32) -> (i32, i32) {
    %c0_i32 = arith.constant 0 : i32
    %c0_i32_0 = arith.constant 0 : i32
    return %arg0, %c0_i32 : i32, i32
  }
  func.func @transform_1(%arg0: i32) -> (i32, i32) {
    %c0_i32 = arith.constant 0 : i32
    %c0_i32_0 = arith.constant 0 : i32
    %c0_i32_1 = arith.constant 0 : i32
    return %c0_i32, %c0_i32_0 : i32, i32
  }
  func.func @transform_2(%arg0: i32) -> (i32, i32) {
    %c0_i32 = arith.constant 0 : i32
    %c0_i32_0 = arith.constant 0 : i32
    %c0_i32_1 = arith.constant 0 : i32
    return %c0_i32, %c0_i32_0 : i32, i32
  }
  func.func @transform_3(%arg0: i32) -> (i32, i32) {
    %c0_i32 = arith.constant 0 : i32
    %c0_i32_0 = arith.constant 0 : i32
    return %arg0, %c0_i32 : i32, i32
  }
}

module attributes {stable_mosaic.version = 11 : i64} {
  func.func @kernel(%arg0: i32, %arg1: i32, %arg2: i32, %arg3: memref<32x256xbf16, #tpu.memory_space<vmem>>, %arg4: memref<256x128xbf16, #tpu.memory_space<vmem>>, %arg5: memref<1x128xf32, #tpu.memory_space<vmem>>, %arg6: memref<1x128xf32, #tpu.memory_space<vmem>>, %arg7: memref<32x128xf32, #tpu.memory_space<vmem>>, %arg8: memref<8x128xf32, #tpu.memory_space<vmem>>, %arg9: memref<32x128xf32, #tpu.memory_space<vmem>>) attributes {dimension_semantics = [#tpu.dimension_semantics<parallel>, #tpu.dimension_semantics<parallel>, #tpu.dimension_semantics<arbitrary>], iteration_bounds = array<i64: 1, 1, 1>, scalar_prefetch = 0 : i64, scratch_operands = 1 : i64, tpu.core_type = #tpu.core_type<tc>, window_params = [{transform_indices = @transform_0, window_bounds = array<i64: 32, 256>}, {transform_indices = @transform_1, window_bounds = array<i64: 256, 128>}, {transform_indices = @transform_2, window_bounds = array<i64: 1, 128>}, {transform_indices = @transform_3, window_bounds = array<i64: 1, 128>}, {transform_indices = @transform_4, window_bounds = array<i64: 32, 128>}, {transform_indices = @transform_5, window_bounds = array<i64: 8, 128>}]} {
    %c0_i32 = arith.constant 0 : i32
    %0 = arith.cmpi eq, %arg2, %c0_i32 : i32
    %1 = arith.extui %0 : i1 to i32
    %c0_i32_0 = arith.constant 0 : i32
    %2 = arith.cmpi ne, %1, %c0_i32_0 : i32
    scf.if %2 {
      %cst_12 = arith.constant 0.000000e+00 : f32
      %17 = vector.broadcast %cst_12 : f32 to vector<32x128xf32>
      %c0_13 = arith.constant 0 : index
      %c0_14 = arith.constant 0 : index
      %18 = vector.load %arg9[%c0_13, %c0_14] : memref<32x128xf32, #tpu.memory_space<vmem>>, vector<32x128xf32>
      tpu.vector_store %arg9[%c0_13, %c0_14], %17 {strides = array<i32>} : memref<32x128xf32, #tpu.memory_space<vmem>>, vector<32x128xf32>,
    } else {
    }
    %c0 = arith.constant 0 : index
    %c0_1 = arith.constant 0 : index
    %3 = vector.load %arg3[%c0, %c0_1] : memref<32x256xbf16, #tpu.memory_space<vmem>>, vector<32x256xbf16>
    %cst = arith.constant 0.000000e+00 : bf16
    %4 = vector.broadcast %cst : bf16 to vector<32x256xbf16>
    %5 = arith.cmpf ogt, %3, %4 : vector<32x256xbf16>
    %cst_2 = arith.constant 2.001950e-01 : bf16
    %6 = vector.broadcast %cst_2 : bf16 to vector<32x256xbf16>
    %7 = arith.mulf %3, %6 : vector<32x256xbf16>
    %8 = arith.select %5, %3, %7 : vector<32x256xi1>, vector<32x256xbf16>
    %c0_3 = arith.constant 0 : index
    %c0_4 = arith.constant 0 : index
    %9 = vector.load %arg9[%c0_3, %c0_4] : memref<32x128xf32, #tpu.memory_space<vmem>>, vector<32x128xf32>
    %c0_5 = arith.constant 0 : index
    %c0_6 = arith.constant 0 : index
    %10 = vector.load %arg4[%c0_5, %c0_6] : memref<256x128xbf16, #tpu.memory_space<vmem>>, vector<256x128xbf16>
    %cst_7 = arith.constant dense<0.000000e+00> : vector<32x128xf32>
    %11 = tpu.matmul %8, %10, %cst_7 {dimension_numbers = #tpu.dot_dimension_numbers<[1], [0], [0], [1], [0, 0, 1, 1], [], []>} : vector<32x256xbf16>, vector<256x128xbf16>, vector<32x128xf32> -> vector<32x128xf32>
    %12 = arith.addf %9, %11 : vector<32x128xf32>
    %c0_8 = arith.constant 0 : index
    %c0_9 = arith.constant 0 : index
    %13 = vector.load %arg9[%c0_8, %c0_9] : memref<32x128xf32, #tpu.memory_space<vmem>>, vector<32x128xf32>
    tpu.vector_store %arg9[%c0_8, %c0_9], %12 {strides = array<i32>} : memref<32x128xf32, #tpu.memory_space<vmem>>, vector<32x128xf32>,
    %c0_i32_10 = arith.constant 0 : i32
    %14 = arith.cmpi eq, %arg2, %c0_i32_10 : i32
    %15 = arith.extui %14 : i1 to i32
    %c0_i32_11 = arith.constant 0 : i32
    %16 = arith.cmpi ne, %15, %c0_i32_11 : i32
    scf.if %16 {
      %c0_12 = arith.constant 0 : index
      %c0_13 = arith.constant 0 : index
      %17 = vector.load %arg9[%c0_12, %c0_13] : memref<32x128xf32, #tpu.memory_space<vmem>>, vector<32x128xf32>
      %c0_14 = arith.constant 0 : index
      %c0_15 = arith.constant 0 : index
      %18 = vector.load %arg5[%c0_14, %c0_15] : memref<1x128xf32, #tpu.memory_space<vmem>>, vector<1x128xf32>
      %19 = vector.broadcast %18 : vector<1x128xf32> to vector<32x128xf32>
      %20 = arith.mulf %17, %19 : vector<32x128xf32>
      %c0_16 = arith.constant 0 : index
      %c0_17 = arith.constant 0 : index
      %21 = vector.load %arg6[%c0_16, %c0_17] : memref<1x128xf32, #tpu.memory_space<vmem>>, vector<1x128xf32>
      %22 = vector.broadcast %21 : vector<1x128xf32> to vector<32x128xf32>
      %23 = arith.addf %20, %22 : vector<32x128xf32>
      %c0_18 = arith.constant 0 : index
      %c0_19 = arith.constant 0 : index
      %24 = vector.load %arg7[%c0_18, %c0_19] : memref<32x128xf32, #tpu.memory_space<vmem>>, vector<32x128xf32>
      tpu.vector_store %arg7[%c0_18, %c0_19], %23 {strides = array<i32>} : memref<32x128xf32, #tpu.memory_space<vmem>>, vector<32x128xf32>,
      %cst_20 = arith.constant dense<0.000000e+00> : vector<128xf32>
      %25 = vector.multi_reduction <add>, %23, %cst_20 [0] : vector<32x128xf32> to vector<128xf32>
      %26 = vector.shape_cast %25 : vector<128xf32> to vector<1x128xf32>
      %27 = arith.mulf %23, %23 : vector<32x128xf32>
      %cst_21 = arith.constant dense<0.000000e+00> : vector<128xf32>
      %28 = vector.multi_reduction <add>, %27, %cst_21 [0] : vector<32x128xf32> to vector<128xf32>
      %29 = vector.shape_cast %28 : vector<128xf32> to vector<1x128xf32>
      %30 = tpu.iota {dimensions = array<i32: 0>} : vector<8x128xi32>
      %31 = vector.shape_cast %26 : vector<1x128xf32> to vector<1x128xf32>
      %32 = vector.broadcast %31 : vector<1x128xf32> to vector<8x128xf32>
      %33 = vector.shape_cast %29 : vector<1x128xf32> to vector<1x128xf32>
      %34 = vector.broadcast %33 : vector<1x128xf32> to vector<8x128xf32>
      %c0_i32_22 = arith.constant 0 : i32
      %35 = vector.broadcast %c0_i32_22 : i32 to vector<8x128xi32>
      %36 = arith.cmpi eq, %30, %35 : vector<8x128xi32>
      %c1_i32 = arith.constant 1 : i32
      %37 = vector.broadcast %c1_i32 : i32 to vector<8x128xi32>
      %38 = arith.cmpi eq, %30, %37 : vector<8x128xi32>
      %cst_23 = arith.constant 0.000000e+00 : f32
      %39 = vector.broadcast %cst_23 : f32 to vector<8x128xf32>
      %40 = arith.select %38, %34, %39 : vector<8x128xi1>, vector<8x128xf32>
      %41 = arith.select %36, %32, %40 : vector<8x128xi1>, vector<8x128xf32>
      %c0_24 = arith.constant 0 : index
      %c0_25 = arith.constant 0 : index
      %42 = vector.load %arg8[%c0_24, %c0_25] : memref<8x128xf32, #tpu.memory_space<vmem>>, vector<8x128xf32>
      tpu.vector_store %arg8[%c0_24, %c0_25], %41 {strides = array<i32>} : memref<8x128xf32, #tpu.memory_space<vmem>>, vector<8x128xf32>,
    } else {
    }
    return
  }
  func.func @transform_0(%arg0: i32, %arg1: i32, %arg2: i32) -> (i32, i32) {
    %c0_i32 = arith.constant 0 : i32
    return %arg0, %arg2 : i32, i32
  }
  func.func @transform_1(%arg0: i32, %arg1: i32, %arg2: i32) -> (i32, i32) {
    %c0_i32 = arith.constant 0 : i32
    return %arg2, %arg1 : i32, i32
  }
  func.func @transform_2(%arg0: i32, %arg1: i32, %arg2: i32) -> (i32, i32) {
    %c0_i32 = arith.constant 0 : i32
    %c0_i32_0 = arith.constant 0 : i32
    return %c0_i32, %arg1 : i32, i32
  }
  func.func @transform_3(%arg0: i32, %arg1: i32, %arg2: i32) -> (i32, i32) {
    %c0_i32 = arith.constant 0 : i32
    %c0_i32_0 = arith.constant 0 : i32
    return %c0_i32, %arg1 : i32, i32
  }
  func.func @transform_4(%arg0: i32, %arg1: i32, %arg2: i32) -> (i32, i32) {
    %c0_i32 = arith.constant 0 : i32
    return %arg0, %arg1 : i32, i32
  }
  func.func @transform_5(%arg0: i32, %arg1: i32, %arg2: i32) -> (i32, i32) {
    %c0_i32 = arith.constant 0 : i32
    return %arg0, %arg1 : i32, i32
  }
}

module attributes {stable_mosaic.version = 11 : i64} {
  func.func @_affine_kernel(%arg0: i32, %arg1: memref<16x128xf32, #tpu.memory_space<vmem>>, %arg2: memref<1x128xf32, #tpu.memory_space<vmem>>, %arg3: memref<1x128xf32, #tpu.memory_space<vmem>>, %arg4: memref<16x128xf32, #tpu.memory_space<vmem>>) attributes {dimension_semantics = [#tpu.dimension_semantics<parallel>], iteration_bounds = array<i64: 1>, scalar_prefetch = 0 : i64, scratch_operands = 0 : i64, tpu.core_type = #tpu.core_type<tc>, window_params = [{transform_indices = @transform_0, window_bounds = array<i64: 16, 128>}, {pipeline_mode = #tpu.pipeline_mode<synchronous>, transform_indices = @transform_1, window_bounds = array<i64: 1, 128>}, {pipeline_mode = #tpu.pipeline_mode<synchronous>, transform_indices = @transform_2, window_bounds = array<i64: 1, 128>}, {transform_indices = @transform_3, window_bounds = array<i64: 16, 128>}]} {
    %c0 = arith.constant 0 : index
    %c0_0 = arith.constant 0 : index
    %0 = vector.load %arg1[%c0, %c0_0] : memref<16x128xf32, #tpu.memory_space<vmem>>, vector<16x128xf32>
    %c0_1 = arith.constant 0 : index
    %c0_2 = arith.constant 0 : index
    %1 = vector.load %arg2[%c0_1, %c0_2] : memref<1x128xf32, #tpu.memory_space<vmem>>, vector<1x128xf32>
    %2 = vector.broadcast %1 : vector<1x128xf32> to vector<16x128xf32>
    %3 = arith.mulf %0, %2 : vector<16x128xf32>
    %c0_3 = arith.constant 0 : index
    %c0_4 = arith.constant 0 : index
    %4 = vector.load %arg3[%c0_3, %c0_4] : memref<1x128xf32, #tpu.memory_space<vmem>>, vector<1x128xf32>
    %5 = vector.broadcast %4 : vector<1x128xf32> to vector<16x128xf32>
    %6 = arith.addf %3, %5 : vector<16x128xf32>
    %c0_5 = arith.constant 0 : index
    %c0_6 = arith.constant 0 : index
    %7 = vector.load %arg4[%c0_5, %c0_6] : memref<16x128xf32, #tpu.memory_space<vmem>>, vector<16x128xf32>
    tpu.vector_store %arg4[%c0_5, %c0_6], %6 {strides = array<i32>} : memref<16x128xf32, #tpu.memory_space<vmem>>, vector<16x128xf32>,
    return
  }
  func.func @transform_0(%arg0: i32) -> (i32, i32) {
    %c0_i32 = arith.constant 0 : i32
    %c0_i32_0 = arith.constant 0 : i32
    return %arg0, %c0_i32 : i32, i32
  }
  func.func @transform_1(%arg0: i32) -> (i32, i32) {
    %c0_i32 = arith.constant 0 : i32
    %c0_i32_0 = arith.constant 0 : i32
    %c0_i32_1 = arith.constant 0 : i32
    return %c0_i32, %c0_i32_0 : i32, i32
  }
  func.func @transform_2(%arg0: i32) -> (i32, i32) {
    %c0_i32 = arith.constant 0 : i32
    %c0_i32_0 = arith.constant 0 : i32
    %c0_i32_1 = arith.constant 0 : i32
    return %c0_i32, %c0_i32_0 : i32, i32
  }
  func.func @transform_3(%arg0: i32) -> (i32, i32) {
    %c0_i32 = arith.constant 0 : i32
    %c0_i32_0 = arith.constant 0 : i32
    return %arg0, %c0_i32 : i32, i32
  }
}

module attributes {stable_mosaic.version = 11 : i64} {
  func.func @kernel(%arg0: i32, %arg1: i32, %arg2: i32, %arg3: memref<16x1024xbf16, #tpu.memory_space<vmem>>, %arg4: memref<1024x128xbf16, #tpu.memory_space<vmem>>, %arg5: memref<1x128xf32, #tpu.memory_space<vmem>>, %arg6: memref<1x128xf32, #tpu.memory_space<vmem>>, %arg7: memref<16x128xf32, #tpu.memory_space<vmem>>, %arg8: memref<16x128xf32, #tpu.memory_space<vmem>>) attributes {dimension_semantics = [#tpu.dimension_semantics<parallel>, #tpu.dimension_semantics<parallel>, #tpu.dimension_semantics<arbitrary>], iteration_bounds = array<i64: 1, 1, 1>, scalar_prefetch = 0 : i64, scratch_operands = 1 : i64, tpu.core_type = #tpu.core_type<tc>, window_params = [{transform_indices = @transform_0, window_bounds = array<i64: 16, 1024>}, {transform_indices = @transform_1, window_bounds = array<i64: 1024, 128>}, {transform_indices = @transform_2, window_bounds = array<i64: 1, 128>}, {transform_indices = @transform_3, window_bounds = array<i64: 1, 128>}, {transform_indices = @transform_4, window_bounds = array<i64: 16, 128>}]} {
    %c0_i32 = arith.constant 0 : i32
    %0 = arith.cmpi eq, %arg2, %c0_i32 : i32
    %1 = arith.extui %0 : i1 to i32
    %c0_i32_0 = arith.constant 0 : i32
    %2 = arith.cmpi ne, %1, %c0_i32_0 : i32
    scf.if %2 {
      %cst_12 = arith.constant 0.000000e+00 : f32
      %17 = vector.broadcast %cst_12 : f32 to vector<16x128xf32>
      %c0_13 = arith.constant 0 : index
      %c0_14 = arith.constant 0 : index
      %18 = vector.load %arg8[%c0_13, %c0_14] : memref<16x128xf32, #tpu.memory_space<vmem>>, vector<16x128xf32>
      tpu.vector_store %arg8[%c0_13, %c0_14], %17 {strides = array<i32>} : memref<16x128xf32, #tpu.memory_space<vmem>>, vector<16x128xf32>,
    } else {
    }
    %c0 = arith.constant 0 : index
    %c0_1 = arith.constant 0 : index
    %3 = vector.load %arg3[%c0, %c0_1] : memref<16x1024xbf16, #tpu.memory_space<vmem>>, vector<16x1024xbf16>
    %cst = arith.constant 0.000000e+00 : bf16
    %4 = vector.broadcast %cst : bf16 to vector<16x1024xbf16>
    %5 = arith.cmpf ogt, %3, %4 : vector<16x1024xbf16>
    %cst_2 = arith.constant 2.001950e-01 : bf16
    %6 = vector.broadcast %cst_2 : bf16 to vector<16x1024xbf16>
    %7 = arith.mulf %3, %6 : vector<16x1024xbf16>
    %8 = arith.select %5, %3, %7 : vector<16x1024xi1>, vector<16x1024xbf16>
    %c0_3 = arith.constant 0 : index
    %c0_4 = arith.constant 0 : index
    %9 = vector.load %arg8[%c0_3, %c0_4] : memref<16x128xf32, #tpu.memory_space<vmem>>, vector<16x128xf32>
    %c0_5 = arith.constant 0 : index
    %c0_6 = arith.constant 0 : index
    %10 = vector.load %arg4[%c0_5, %c0_6] : memref<1024x128xbf16, #tpu.memory_space<vmem>>, vector<1024x128xbf16>
    %cst_7 = arith.constant dense<0.000000e+00> : vector<16x128xf32>
    %11 = tpu.matmul %8, %10, %cst_7 {dimension_numbers = #tpu.dot_dimension_numbers<[1], [0], [0], [1], [0, 0, 1, 1], [], []>} : vector<16x1024xbf16>, vector<1024x128xbf16>, vector<16x128xf32> -> vector<16x128xf32>
    %12 = arith.addf %9, %11 : vector<16x128xf32>
    %c0_8 = arith.constant 0 : index
    %c0_9 = arith.constant 0 : index
    %13 = vector.load %arg8[%c0_8, %c0_9] : memref<16x128xf32, #tpu.memory_space<vmem>>, vector<16x128xf32>
    tpu.vector_store %arg8[%c0_8, %c0_9], %12 {strides = array<i32>} : memref<16x128xf32, #tpu.memory_space<vmem>>, vector<16x128xf32>,
    %c0_i32_10 = arith.constant 0 : i32
    %14 = arith.cmpi eq, %arg2, %c0_i32_10 : i32
    %15 = arith.extui %14 : i1 to i32
    %c0_i32_11 = arith.constant 0 : i32
    %16 = arith.cmpi ne, %15, %c0_i32_11 : i32
    scf.if %16 {
      %c0_12 = arith.constant 0 : index
      %c0_13 = arith.constant 0 : index
      %17 = vector.load %arg8[%c0_12, %c0_13] : memref<16x128xf32, #tpu.memory_space<vmem>>, vector<16x128xf32>
      %c0_14 = arith.constant 0 : index
      %c0_15 = arith.constant 0 : index
      %18 = vector.load %arg5[%c0_14, %c0_15] : memref<1x128xf32, #tpu.memory_space<vmem>>, vector<1x128xf32>
      %19 = vector.broadcast %18 : vector<1x128xf32> to vector<16x128xf32>
      %20 = arith.mulf %17, %19 : vector<16x128xf32>
      %c0_16 = arith.constant 0 : index
      %c0_17 = arith.constant 0 : index
      %21 = vector.load %arg6[%c0_16, %c0_17] : memref<1x128xf32, #tpu.memory_space<vmem>>, vector<1x128xf32>
      %22 = vector.broadcast %21 : vector<1x128xf32> to vector<16x128xf32>
      %23 = arith.addf %20, %22 : vector<16x128xf32>
      %c0_18 = arith.constant 0 : index
      %c0_19 = arith.constant 0 : index
      %24 = vector.load %arg7[%c0_18, %c0_19] : memref<16x128xf32, #tpu.memory_space<vmem>>, vector<16x128xf32>
      tpu.vector_store %arg7[%c0_18, %c0_19], %23 {strides = array<i32>} : memref<16x128xf32, #tpu.memory_space<vmem>>, vector<16x128xf32>,
    } else {
    }
    return
  }
  func.func @transform_0(%arg0: i32, %arg1: i32, %arg2: i32) -> (i32, i32) {
    %c0_i32 = arith.constant 0 : i32
    return %arg0, %arg2 : i32, i32
  }
  func.func @transform_1(%arg0: i32, %arg1: i32, %arg2: i32) -> (i32, i32) {
    %c0_i32 = arith.constant 0 : i32
    return %arg2, %arg1 : i32, i32
  }
  func.func @transform_2(%arg0: i32, %arg1: i32, %arg2: i32) -> (i32, i32) {
    %c0_i32 = arith.constant 0 : i32
    %c0_i32_0 = arith.constant 0 : i32
    return %c0_i32, %arg1 : i32, i32
  }
  func.func @transform_3(%arg0: i32, %arg1: i32, %arg2: i32) -> (i32, i32) {
    %c0_i32 = arith.constant 0 : i32
    %c0_i32_0 = arith.constant 0 : i32
    return %c0_i32, %arg1 : i32, i32
  }
  func.func @transform_4(%arg0: i32, %arg1: i32, %arg2: i32) -> (i32, i32) {
    %c0_i32 = arith.constant 0 : i32
    return %arg0, %arg1 : i32, i32
  }
}

module attributes {stable_mosaic.version = 11 : i64} {
  func.func @kernel(%arg0: i32, %arg1: i32, %arg2: i32, %arg3: memref<16x512xbf16, #tpu.memory_space<vmem>>, %arg4: memref<512x128xbf16, #tpu.memory_space<vmem>>, %arg5: memref<1x128xf32, #tpu.memory_space<vmem>>, %arg6: memref<1x128xf32, #tpu.memory_space<vmem>>, %arg7: memref<16x128xf32, #tpu.memory_space<vmem>>, %arg8: memref<8x128xf32, #tpu.memory_space<vmem>>, %arg9: memref<16x128xf32, #tpu.memory_space<vmem>>) attributes {dimension_semantics = [#tpu.dimension_semantics<parallel>, #tpu.dimension_semantics<parallel>, #tpu.dimension_semantics<arbitrary>], iteration_bounds = array<i64: 1, 1, 1>, scalar_prefetch = 0 : i64, scratch_operands = 1 : i64, tpu.core_type = #tpu.core_type<tc>, window_params = [{transform_indices = @transform_0, window_bounds = array<i64: 16, 512>}, {transform_indices = @transform_1, window_bounds = array<i64: 512, 128>}, {transform_indices = @transform_2, window_bounds = array<i64: 1, 128>}, {transform_indices = @transform_3, window_bounds = array<i64: 1, 128>}, {transform_indices = @transform_4, window_bounds = array<i64: 16, 128>}, {transform_indices = @transform_5, window_bounds = array<i64: 8, 128>}]} {
    %c0_i32 = arith.constant 0 : i32
    %0 = arith.cmpi eq, %arg2, %c0_i32 : i32
    %1 = arith.extui %0 : i1 to i32
    %c0_i32_0 = arith.constant 0 : i32
    %2 = arith.cmpi ne, %1, %c0_i32_0 : i32
    scf.if %2 {
      %cst_12 = arith.constant 0.000000e+00 : f32
      %17 = vector.broadcast %cst_12 : f32 to vector<16x128xf32>
      %c0_13 = arith.constant 0 : index
      %c0_14 = arith.constant 0 : index
      %18 = vector.load %arg9[%c0_13, %c0_14] : memref<16x128xf32, #tpu.memory_space<vmem>>, vector<16x128xf32>
      tpu.vector_store %arg9[%c0_13, %c0_14], %17 {strides = array<i32>} : memref<16x128xf32, #tpu.memory_space<vmem>>, vector<16x128xf32>,
    } else {
    }
    %c0 = arith.constant 0 : index
    %c0_1 = arith.constant 0 : index
    %3 = vector.load %arg3[%c0, %c0_1] : memref<16x512xbf16, #tpu.memory_space<vmem>>, vector<16x512xbf16>
    %cst = arith.constant 0.000000e+00 : bf16
    %4 = vector.broadcast %cst : bf16 to vector<16x512xbf16>
    %5 = arith.cmpf ogt, %3, %4 : vector<16x512xbf16>
    %cst_2 = arith.constant 2.001950e-01 : bf16
    %6 = vector.broadcast %cst_2 : bf16 to vector<16x512xbf16>
    %7 = arith.mulf %3, %6 : vector<16x512xbf16>
    %8 = arith.select %5, %3, %7 : vector<16x512xi1>, vector<16x512xbf16>
    %c0_3 = arith.constant 0 : index
    %c0_4 = arith.constant 0 : index
    %9 = vector.load %arg9[%c0_3, %c0_4] : memref<16x128xf32, #tpu.memory_space<vmem>>, vector<16x128xf32>
    %c0_5 = arith.constant 0 : index
    %c0_6 = arith.constant 0 : index
    %10 = vector.load %arg4[%c0_5, %c0_6] : memref<512x128xbf16, #tpu.memory_space<vmem>>, vector<512x128xbf16>
    %cst_7 = arith.constant dense<0.000000e+00> : vector<16x128xf32>
    %11 = tpu.matmul %8, %10, %cst_7 {dimension_numbers = #tpu.dot_dimension_numbers<[1], [0], [0], [1], [0, 0, 1, 1], [], []>} : vector<16x512xbf16>, vector<512x128xbf16>, vector<16x128xf32> -> vector<16x128xf32>
    %12 = arith.addf %9, %11 : vector<16x128xf32>
    %c0_8 = arith.constant 0 : index
    %c0_9 = arith.constant 0 : index
    %13 = vector.load %arg9[%c0_8, %c0_9] : memref<16x128xf32, #tpu.memory_space<vmem>>, vector<16x128xf32>
    tpu.vector_store %arg9[%c0_8, %c0_9], %12 {strides = array<i32>} : memref<16x128xf32, #tpu.memory_space<vmem>>, vector<16x128xf32>,
    %c0_i32_10 = arith.constant 0 : i32
    %14 = arith.cmpi eq, %arg2, %c0_i32_10 : i32
    %15 = arith.extui %14 : i1 to i32
    %c0_i32_11 = arith.constant 0 : i32
    %16 = arith.cmpi ne, %15, %c0_i32_11 : i32
    scf.if %16 {
      %c0_12 = arith.constant 0 : index
      %c0_13 = arith.constant 0 : index
      %17 = vector.load %arg9[%c0_12, %c0_13] : memref<16x128xf32, #tpu.memory_space<vmem>>, vector<16x128xf32>
      %c0_14 = arith.constant 0 : index
      %c0_15 = arith.constant 0 : index
      %18 = vector.load %arg5[%c0_14, %c0_15] : memref<1x128xf32, #tpu.memory_space<vmem>>, vector<1x128xf32>
      %19 = vector.broadcast %18 : vector<1x128xf32> to vector<16x128xf32>
      %20 = arith.mulf %17, %19 : vector<16x128xf32>
      %c0_16 = arith.constant 0 : index
      %c0_17 = arith.constant 0 : index
      %21 = vector.load %arg6[%c0_16, %c0_17] : memref<1x128xf32, #tpu.memory_space<vmem>>, vector<1x128xf32>
      %22 = vector.broadcast %21 : vector<1x128xf32> to vector<16x128xf32>
      %23 = arith.addf %20, %22 : vector<16x128xf32>
      %c0_18 = arith.constant 0 : index
      %c0_19 = arith.constant 0 : index
      %24 = vector.load %arg7[%c0_18, %c0_19] : memref<16x128xf32, #tpu.memory_space<vmem>>, vector<16x128xf32>
      tpu.vector_store %arg7[%c0_18, %c0_19], %23 {strides = array<i32>} : memref<16x128xf32, #tpu.memory_space<vmem>>, vector<16x128xf32>,
      %cst_20 = arith.constant dense<0.000000e+00> : vector<128xf32>
      %25 = vector.multi_reduction <add>, %23, %cst_20 [0] : vector<16x128xf32> to vector<128xf32>
      %26 = vector.shape_cast %25 : vector<128xf32> to vector<1x128xf32>
      %27 = arith.mulf %23, %23 : vector<16x128xf32>
      %cst_21 = arith.constant dense<0.000000e+00> : vector<128xf32>
      %28 = vector.multi_reduction <add>, %27, %cst_21 [0] : vector<16x128xf32> to vector<128xf32>
      %29 = vector.shape_cast %28 : vector<128xf32> to vector<1x128xf32>
      %30 = tpu.iota {dimensions = array<i32: 0>} : vector<8x128xi32>
      %31 = vector.shape_cast %26 : vector<1x128xf32> to vector<1x128xf32>
      %32 = vector.broadcast %31 : vector<1x128xf32> to vector<8x128xf32>
      %33 = vector.shape_cast %29 : vector<1x128xf32> to vector<1x128xf32>
      %34 = vector.broadcast %33 : vector<1x128xf32> to vector<8x128xf32>
      %c0_i32_22 = arith.constant 0 : i32
      %35 = vector.broadcast %c0_i32_22 : i32 to vector<8x128xi32>
      %36 = arith.cmpi eq, %30, %35 : vector<8x128xi32>
      %c1_i32 = arith.constant 1 : i32
      %37 = vector.broadcast %c1_i32 : i32 to vector<8x128xi32>
      %38 = arith.cmpi eq, %30, %37 : vector<8x128xi32>
      %cst_23 = arith.constant 0.000000e+00 : f32
      %39 = vector.broadcast %cst_23 : f32 to vector<8x128xf32>
      %40 = arith.select %38, %34, %39 : vector<8x128xi1>, vector<8x128xf32>
      %41 = arith.select %36, %32, %40 : vector<8x128xi1>, vector<8x128xf32>
      %c0_24 = arith.constant 0 : index
      %c0_25 = arith.constant 0 : index
      %42 = vector.load %arg8[%c0_24, %c0_25] : memref<8x128xf32, #tpu.memory_space<vmem>>, vector<8x128xf32>
      tpu.vector_store %arg8[%c0_24, %c0_25], %41 {strides = array<i32>} : memref<8x128xf32, #tpu.memory_space<vmem>>, vector<8x128xf32>,
    } else {
    }
    return
  }
  func.func @transform_0(%arg0: i32, %arg1: i32, %arg2: i32) -> (i32, i32) {
    %c0_i32 = arith.constant 0 : i32
    return %arg0, %arg2 : i32, i32
  }
  func.func @transform_1(%arg0: i32, %arg1: i32, %arg2: i32) -> (i32, i32) {
    %c0_i32 = arith.constant 0 : i32
    return %arg2, %arg1 : i32, i32
  }
  func.func @transform_2(%arg0: i32, %arg1: i32, %arg2: i32) -> (i32, i32) {
    %c0_i32 = arith.constant 0 : i32
    %c0_i32_0 = arith.constant 0 : i32
    return %c0_i32, %arg1 : i32, i32
  }
  func.func @transform_3(%arg0: i32, %arg1: i32, %arg2: i32) -> (i32, i32) {
    %c0_i32 = arith.constant 0 : i32
    %c0_i32_0 = arith.constant 0 : i32
    return %c0_i32, %arg1 : i32, i32
  }
  func.func @transform_4(%arg0: i32, %arg1: i32, %arg2: i32) -> (i32, i32) {
    %c0_i32 = arith.constant 0 : i32
    return %arg0, %arg1 : i32, i32
  }
  func.func @transform_5(%arg0: i32, %arg1: i32, %arg2: i32) -> (i32, i32) {
    %c0_i32 = arith.constant 0 : i32
    return %arg0, %arg1 : i32, i32
  }
}

module attributes {stable_mosaic.version = 11 : i64} {
  func.func @kernel(%arg0: i32, %arg1: i32, %arg2: i32, %arg3: memref<16x256xbf16, #tpu.memory_space<vmem>>, %arg4: memref<256x128xbf16, #tpu.memory_space<vmem>>, %arg5: memref<1x128xf32, #tpu.memory_space<vmem>>, %arg6: memref<1x128xf32, #tpu.memory_space<vmem>>, %arg7: memref<16x128xf32, #tpu.memory_space<vmem>>, %arg8: memref<8x128xf32, #tpu.memory_space<vmem>>, %arg9: memref<16x128xf32, #tpu.memory_space<vmem>>) attributes {dimension_semantics = [#tpu.dimension_semantics<parallel>, #tpu.dimension_semantics<parallel>, #tpu.dimension_semantics<arbitrary>], iteration_bounds = array<i64: 1, 1, 1>, scalar_prefetch = 0 : i64, scratch_operands = 1 : i64, tpu.core_type = #tpu.core_type<tc>, window_params = [{transform_indices = @transform_0, window_bounds = array<i64: 16, 256>}, {transform_indices = @transform_1, window_bounds = array<i64: 256, 128>}, {transform_indices = @transform_2, window_bounds = array<i64: 1, 128>}, {transform_indices = @transform_3, window_bounds = array<i64: 1, 128>}, {transform_indices = @transform_4, window_bounds = array<i64: 16, 128>}, {transform_indices = @transform_5, window_bounds = array<i64: 8, 128>}]} {
    %c0_i32 = arith.constant 0 : i32
    %0 = arith.cmpi eq, %arg2, %c0_i32 : i32
    %1 = arith.extui %0 : i1 to i32
    %c0_i32_0 = arith.constant 0 : i32
    %2 = arith.cmpi ne, %1, %c0_i32_0 : i32
    scf.if %2 {
      %cst_11 = arith.constant 0.000000e+00 : f32
      %14 = vector.broadcast %cst_11 : f32 to vector<16x128xf32>
      %c0_12 = arith.constant 0 : index
      %c0_13 = arith.constant 0 : index
      %15 = vector.load %arg9[%c0_12, %c0_13] : memref<16x128xf32, #tpu.memory_space<vmem>>, vector<16x128xf32>
      tpu.vector_store %arg9[%c0_12, %c0_13], %14 {strides = array<i32>} : memref<16x128xf32, #tpu.memory_space<vmem>>, vector<16x128xf32>,
    } else {
    }
    %c0 = arith.constant 0 : index
    %c0_1 = arith.constant 0 : index
    %3 = vector.load %arg3[%c0, %c0_1] : memref<16x256xbf16, #tpu.memory_space<vmem>>, vector<16x256xbf16>
    %cst = arith.constant 0.000000e+00 : bf16
    %4 = vector.broadcast %cst : bf16 to vector<16x256xbf16>
    %5 = arith.maximumf %3, %4 : vector<16x256xbf16>
    %c0_2 = arith.constant 0 : index
    %c0_3 = arith.constant 0 : index
    %6 = vector.load %arg9[%c0_2, %c0_3] : memref<16x128xf32, #tpu.memory_space<vmem>>, vector<16x128xf32>
    %c0_4 = arith.constant 0 : index
    %c0_5 = arith.constant 0 : index
    %7 = vector.load %arg4[%c0_4, %c0_5] : memref<256x128xbf16, #tpu.memory_space<vmem>>, vector<256x128xbf16>
    %cst_6 = arith.constant dense<0.000000e+00> : vector<16x128xf32>
    %8 = tpu.matmul %5, %7, %cst_6 {dimension_numbers = #tpu.dot_dimension_numbers<[1], [0], [0], [1], [0, 0, 1, 1], [], []>} : vector<16x256xbf16>, vector<256x128xbf16>, vector<16x128xf32> -> vector<16x128xf32>
    %9 = arith.addf %6, %8 : vector<16x128xf32>
    %c0_7 = arith.constant 0 : index
    %c0_8 = arith.constant 0 : index
    %10 = vector.load %arg9[%c0_7, %c0_8] : memref<16x128xf32, #tpu.memory_space<vmem>>, vector<16x128xf32>
    tpu.vector_store %arg9[%c0_7, %c0_8], %9 {strides = array<i32>} : memref<16x128xf32, #tpu.memory_space<vmem>>, vector<16x128xf32>,
    %c0_i32_9 = arith.constant 0 : i32
    %11 = arith.cmpi eq, %arg2, %c0_i32_9 : i32
    %12 = arith.extui %11 : i1 to i32
    %c0_i32_10 = arith.constant 0 : i32
    %13 = arith.cmpi ne, %12, %c0_i32_10 : i32
    scf.if %13 {
      %c0_11 = arith.constant 0 : index
      %c0_12 = arith.constant 0 : index
      %14 = vector.load %arg9[%c0_11, %c0_12] : memref<16x128xf32, #tpu.memory_space<vmem>>, vector<16x128xf32>
      %c0_13 = arith.constant 0 : index
      %c0_14 = arith.constant 0 : index
      %15 = vector.load %arg5[%c0_13, %c0_14] : memref<1x128xf32, #tpu.memory_space<vmem>>, vector<1x128xf32>
      %16 = vector.broadcast %15 : vector<1x128xf32> to vector<16x128xf32>
      %17 = arith.mulf %14, %16 : vector<16x128xf32>
      %c0_15 = arith.constant 0 : index
      %c0_16 = arith.constant 0 : index
      %18 = vector.load %arg6[%c0_15, %c0_16] : memref<1x128xf32, #tpu.memory_space<vmem>>, vector<1x128xf32>
      %19 = vector.broadcast %18 : vector<1x128xf32> to vector<16x128xf32>
      %20 = arith.addf %17, %19 : vector<16x128xf32>
      %c0_17 = arith.constant 0 : index
      %c0_18 = arith.constant 0 : index
      %21 = vector.load %arg7[%c0_17, %c0_18] : memref<16x128xf32, #tpu.memory_space<vmem>>, vector<16x128xf32>
      tpu.vector_store %arg7[%c0_17, %c0_18], %20 {strides = array<i32>} : memref<16x128xf32, #tpu.memory_space<vmem>>, vector<16x128xf32>,
      %cst_19 = arith.constant dense<0.000000e+00> : vector<128xf32>
      %22 = vector.multi_reduction <add>, %20, %cst_19 [0] : vector<16x128xf32> to vector<128xf32>
      %23 = vector.shape_cast %22 : vector<128xf32> to vector<1x128xf32>
      %24 = arith.mulf %20, %20 : vector<16x128xf32>
      %cst_20 = arith.constant dense<0.000000e+00> : vector<128xf32>
      %25 = vector.multi_reduction <add>, %24, %cst_20 [0] : vector<16x128xf32> to vector<128xf32>
      %26 = vector.shape_cast %25 : vector<128xf32> to vector<1x128xf32>
      %27 = tpu.iota {dimensions = array<i32: 0>} : vector<8x128xi32>
      %28 = vector.shape_cast %23 : vector<1x128xf32> to vector<1x128xf32>
      %29 = vector.broadcast %28 : vector<1x128xf32> to vector<8x128xf32>
      %30 = vector.shape_cast %26 : vector<1x128xf32> to vector<1x128xf32>
      %31 = vector.broadcast %30 : vector<1x128xf32> to vector<8x128xf32>
      %c0_i32_21 = arith.constant 0 : i32
      %32 = vector.broadcast %c0_i32_21 : i32 to vector<8x128xi32>
      %33 = arith.cmpi eq, %27, %32 : vector<8x128xi32>
      %c1_i32 = arith.constant 1 : i32
      %34 = vector.broadcast %c1_i32 : i32 to vector<8x128xi32>
      %35 = arith.cmpi eq, %27, %34 : vector<8x128xi32>
      %cst_22 = arith.constant 0.000000e+00 : f32
      %36 = vector.broadcast %cst_22 : f32 to vector<8x128xf32>
      %37 = arith.select %35, %31, %36 : vector<8x128xi1>, vector<8x128xf32>
      %38 = arith.select %33, %29, %37 : vector<8x128xi1>, vector<8x128xf32>
      %c0_23 = arith.constant 0 : index
      %c0_24 = arith.constant 0 : index
      %39 = vector.load %arg8[%c0_23, %c0_24] : memref<8x128xf32, #tpu.memory_space<vmem>>, vector<8x128xf32>
      tpu.vector_store %arg8[%c0_23, %c0_24], %38 {strides = array<i32>} : memref<8x128xf32, #tpu.memory_space<vmem>>, vector<8x128xf32>,
    } else {
    }
    return
  }
  func.func @transform_0(%arg0: i32, %arg1: i32, %arg2: i32) -> (i32, i32) {
    %c0_i32 = arith.constant 0 : i32
    return %arg0, %arg2 : i32, i32
  }
  func.func @transform_1(%arg0: i32, %arg1: i32, %arg2: i32) -> (i32, i32) {
    %c0_i32 = arith.constant 0 : i32
    return %arg2, %arg1 : i32, i32
  }
  func.func @transform_2(%arg0: i32, %arg1: i32, %arg2: i32) -> (i32, i32) {
    %c0_i32 = arith.constant 0 : i32
    %c0_i32_0 = arith.constant 0 : i32
    return %c0_i32, %arg1 : i32, i32
  }
  func.func @transform_3(%arg0: i32, %arg1: i32, %arg2: i32) -> (i32, i32) {
    %c0_i32 = arith.constant 0 : i32
    %c0_i32_0 = arith.constant 0 : i32
    return %c0_i32, %arg1 : i32, i32
  }
  func.func @transform_4(%arg0: i32, %arg1: i32, %arg2: i32) -> (i32, i32) {
    %c0_i32 = arith.constant 0 : i32
    return %arg0, %arg1 : i32, i32
  }
  func.func @transform_5(%arg0: i32, %arg1: i32, %arg2: i32) -> (i32, i32) {
    %c0_i32 = arith.constant 0 : i32
    return %arg0, %arg1 : i32, i32
  }
}

module attributes {stable_mosaic.version = 11 : i64} {
  func.func @kernel(%arg0: i32, %arg1: i32, %arg2: i32, %arg3: memref<16x512xbf16, #tpu.memory_space<vmem>>, %arg4: memref<512x128xbf16, #tpu.memory_space<vmem>>, %arg5: memref<1x128xf32, #tpu.memory_space<vmem>>, %arg6: memref<1x128xf32, #tpu.memory_space<vmem>>, %arg7: memref<16x128xf32, #tpu.memory_space<vmem>>, %arg8: memref<8x128xf32, #tpu.memory_space<vmem>>, %arg9: memref<16x128xf32, #tpu.memory_space<vmem>>) attributes {dimension_semantics = [#tpu.dimension_semantics<parallel>, #tpu.dimension_semantics<parallel>, #tpu.dimension_semantics<arbitrary>], iteration_bounds = array<i64: 1, 1, 1>, scalar_prefetch = 0 : i64, scratch_operands = 1 : i64, tpu.core_type = #tpu.core_type<tc>, window_params = [{transform_indices = @transform_0, window_bounds = array<i64: 16, 512>}, {transform_indices = @transform_1, window_bounds = array<i64: 512, 128>}, {transform_indices = @transform_2, window_bounds = array<i64: 1, 128>}, {transform_indices = @transform_3, window_bounds = array<i64: 1, 128>}, {transform_indices = @transform_4, window_bounds = array<i64: 16, 128>}, {transform_indices = @transform_5, window_bounds = array<i64: 8, 128>}]} {
    %c0_i32 = arith.constant 0 : i32
    %0 = arith.cmpi eq, %arg2, %c0_i32 : i32
    %1 = arith.extui %0 : i1 to i32
    %c0_i32_0 = arith.constant 0 : i32
    %2 = arith.cmpi ne, %1, %c0_i32_0 : i32
    scf.if %2 {
      %cst_11 = arith.constant 0.000000e+00 : f32
      %14 = vector.broadcast %cst_11 : f32 to vector<16x128xf32>
      %c0_12 = arith.constant 0 : index
      %c0_13 = arith.constant 0 : index
      %15 = vector.load %arg9[%c0_12, %c0_13] : memref<16x128xf32, #tpu.memory_space<vmem>>, vector<16x128xf32>
      tpu.vector_store %arg9[%c0_12, %c0_13], %14 {strides = array<i32>} : memref<16x128xf32, #tpu.memory_space<vmem>>, vector<16x128xf32>,
    } else {
    }
    %c0 = arith.constant 0 : index
    %c0_1 = arith.constant 0 : index
    %3 = vector.load %arg3[%c0, %c0_1] : memref<16x512xbf16, #tpu.memory_space<vmem>>, vector<16x512xbf16>
    %cst = arith.constant 0.000000e+00 : bf16
    %4 = vector.broadcast %cst : bf16 to vector<16x512xbf16>
    %5 = arith.maximumf %3, %4 : vector<16x512xbf16>
    %c0_2 = arith.constant 0 : index
    %c0_3 = arith.constant 0 : index
    %6 = vector.load %arg9[%c0_2, %c0_3] : memref<16x128xf32, #tpu.memory_space<vmem>>, vector<16x128xf32>
    %c0_4 = arith.constant 0 : index
    %c0_5 = arith.constant 0 : index
    %7 = vector.load %arg4[%c0_4, %c0_5] : memref<512x128xbf16, #tpu.memory_space<vmem>>, vector<512x128xbf16>
    %cst_6 = arith.constant dense<0.000000e+00> : vector<16x128xf32>
    %8 = tpu.matmul %5, %7, %cst_6 {dimension_numbers = #tpu.dot_dimension_numbers<[1], [0], [0], [1], [0, 0, 1, 1], [], []>} : vector<16x512xbf16>, vector<512x128xbf16>, vector<16x128xf32> -> vector<16x128xf32>
    %9 = arith.addf %6, %8 : vector<16x128xf32>
    %c0_7 = arith.constant 0 : index
    %c0_8 = arith.constant 0 : index
    %10 = vector.load %arg9[%c0_7, %c0_8] : memref<16x128xf32, #tpu.memory_space<vmem>>, vector<16x128xf32>
    tpu.vector_store %arg9[%c0_7, %c0_8], %9 {strides = array<i32>} : memref<16x128xf32, #tpu.memory_space<vmem>>, vector<16x128xf32>,
    %c0_i32_9 = arith.constant 0 : i32
    %11 = arith.cmpi eq, %arg2, %c0_i32_9 : i32
    %12 = arith.extui %11 : i1 to i32
    %c0_i32_10 = arith.constant 0 : i32
    %13 = arith.cmpi ne, %12, %c0_i32_10 : i32
    scf.if %13 {
      %c0_11 = arith.constant 0 : index
      %c0_12 = arith.constant 0 : index
      %14 = vector.load %arg9[%c0_11, %c0_12] : memref<16x128xf32, #tpu.memory_space<vmem>>, vector<16x128xf32>
      %c0_13 = arith.constant 0 : index
      %c0_14 = arith.constant 0 : index
      %15 = vector.load %arg5[%c0_13, %c0_14] : memref<1x128xf32, #tpu.memory_space<vmem>>, vector<1x128xf32>
      %16 = vector.broadcast %15 : vector<1x128xf32> to vector<16x128xf32>
      %17 = arith.mulf %14, %16 : vector<16x128xf32>
      %c0_15 = arith.constant 0 : index
      %c0_16 = arith.constant 0 : index
      %18 = vector.load %arg6[%c0_15, %c0_16] : memref<1x128xf32, #tpu.memory_space<vmem>>, vector<1x128xf32>
      %19 = vector.broadcast %18 : vector<1x128xf32> to vector<16x128xf32>
      %20 = arith.addf %17, %19 : vector<16x128xf32>
      %c0_17 = arith.constant 0 : index
      %c0_18 = arith.constant 0 : index
      %21 = vector.load %arg7[%c0_17, %c0_18] : memref<16x128xf32, #tpu.memory_space<vmem>>, vector<16x128xf32>
      tpu.vector_store %arg7[%c0_17, %c0_18], %20 {strides = array<i32>} : memref<16x128xf32, #tpu.memory_space<vmem>>, vector<16x128xf32>,
      %cst_19 = arith.constant dense<0.000000e+00> : vector<128xf32>
      %22 = vector.multi_reduction <add>, %20, %cst_19 [0] : vector<16x128xf32> to vector<128xf32>
      %23 = vector.shape_cast %22 : vector<128xf32> to vector<1x128xf32>
      %24 = arith.mulf %20, %20 : vector<16x128xf32>
      %cst_20 = arith.constant dense<0.000000e+00> : vector<128xf32>
      %25 = vector.multi_reduction <add>, %24, %cst_20 [0] : vector<16x128xf32> to vector<128xf32>
      %26 = vector.shape_cast %25 : vector<128xf32> to vector<1x128xf32>
      %27 = tpu.iota {dimensions = array<i32: 0>} : vector<8x128xi32>
      %28 = vector.shape_cast %23 : vector<1x128xf32> to vector<1x128xf32>
      %29 = vector.broadcast %28 : vector<1x128xf32> to vector<8x128xf32>
      %30 = vector.shape_cast %26 : vector<1x128xf32> to vector<1x128xf32>
      %31 = vector.broadcast %30 : vector<1x128xf32> to vector<8x128xf32>
      %c0_i32_21 = arith.constant 0 : i32
      %32 = vector.broadcast %c0_i32_21 : i32 to vector<8x128xi32>
      %33 = arith.cmpi eq, %27, %32 : vector<8x128xi32>
      %c1_i32 = arith.constant 1 : i32
      %34 = vector.broadcast %c1_i32 : i32 to vector<8x128xi32>
      %35 = arith.cmpi eq, %27, %34 : vector<8x128xi32>
      %cst_22 = arith.constant 0.000000e+00 : f32
      %36 = vector.broadcast %cst_22 : f32 to vector<8x128xf32>
      %37 = arith.select %35, %31, %36 : vector<8x128xi1>, vector<8x128xf32>
      %38 = arith.select %33, %29, %37 : vector<8x128xi1>, vector<8x128xf32>
      %c0_23 = arith.constant 0 : index
      %c0_24 = arith.constant 0 : index
      %39 = vector.load %arg8[%c0_23, %c0_24] : memref<8x128xf32, #tpu.memory_space<vmem>>, vector<8x128xf32>
      tpu.vector_store %arg8[%c0_23, %c0_24], %38 {strides = array<i32>} : memref<8x128xf32, #tpu.memory_space<vmem>>, vector<8x128xf32>,
    } else {
    }
    return
  }
  func.func @transform_0(%arg0: i32, %arg1: i32, %arg2: i32) -> (i32, i32) {
    %c0_i32 = arith.constant 0 : i32
    return %arg0, %arg2 : i32, i32
  }
  func.func @transform_1(%arg0: i32, %arg1: i32, %arg2: i32) -> (i32, i32) {
    %c0_i32 = arith.constant 0 : i32
    return %arg2, %arg1 : i32, i32
  }
  func.func @transform_2(%arg0: i32, %arg1: i32, %arg2: i32) -> (i32, i32) {
    %c0_i32 = arith.constant 0 : i32
    %c0_i32_0 = arith.constant 0 : i32
    return %c0_i32, %arg1 : i32, i32
  }
  func.func @transform_3(%arg0: i32, %arg1: i32, %arg2: i32) -> (i32, i32) {
    %c0_i32 = arith.constant 0 : i32
    %c0_i32_0 = arith.constant 0 : i32
    return %c0_i32, %arg1 : i32, i32
  }
  func.func @transform_4(%arg0: i32, %arg1: i32, %arg2: i32) -> (i32, i32) {
    %c0_i32 = arith.constant 0 : i32
    return %arg0, %arg1 : i32, i32
  }
  func.func @transform_5(%arg0: i32, %arg1: i32, %arg2: i32) -> (i32, i32) {
    %c0_i32 = arith.constant 0 : i32
    return %arg0, %arg1 : i32, i32
  }
}

module attributes {stable_mosaic.version = 11 : i64} {
  func.func @kernel(%arg0: i32, %arg1: i32, %arg2: i32, %arg3: memref<32x256xbf16, #tpu.memory_space<vmem>>, %arg4: memref<256x128xbf16, #tpu.memory_space<vmem>>, %arg5: memref<1x128xf32, #tpu.memory_space<vmem>>, %arg6: memref<1x128xf32, #tpu.memory_space<vmem>>, %arg7: memref<32x128xf32, #tpu.memory_space<vmem>>, %arg8: memref<8x128xf32, #tpu.memory_space<vmem>>, %arg9: memref<32x128xf32, #tpu.memory_space<vmem>>) attributes {dimension_semantics = [#tpu.dimension_semantics<parallel>, #tpu.dimension_semantics<parallel>, #tpu.dimension_semantics<arbitrary>], iteration_bounds = array<i64: 1, 1, 1>, scalar_prefetch = 0 : i64, scratch_operands = 1 : i64, tpu.core_type = #tpu.core_type<tc>, window_params = [{transform_indices = @transform_0, window_bounds = array<i64: 32, 256>}, {transform_indices = @transform_1, window_bounds = array<i64: 256, 128>}, {transform_indices = @transform_2, window_bounds = array<i64: 1, 128>}, {transform_indices = @transform_3, window_bounds = array<i64: 1, 128>}, {transform_indices = @transform_4, window_bounds = array<i64: 32, 128>}, {transform_indices = @transform_5, window_bounds = array<i64: 8, 128>}]} {
    %c0_i32 = arith.constant 0 : i32
    %0 = arith.cmpi eq, %arg2, %c0_i32 : i32
    %1 = arith.extui %0 : i1 to i32
    %c0_i32_0 = arith.constant 0 : i32
    %2 = arith.cmpi ne, %1, %c0_i32_0 : i32
    scf.if %2 {
      %cst_11 = arith.constant 0.000000e+00 : f32
      %14 = vector.broadcast %cst_11 : f32 to vector<32x128xf32>
      %c0_12 = arith.constant 0 : index
      %c0_13 = arith.constant 0 : index
      %15 = vector.load %arg9[%c0_12, %c0_13] : memref<32x128xf32, #tpu.memory_space<vmem>>, vector<32x128xf32>
      tpu.vector_store %arg9[%c0_12, %c0_13], %14 {strides = array<i32>} : memref<32x128xf32, #tpu.memory_space<vmem>>, vector<32x128xf32>,
    } else {
    }
    %c0 = arith.constant 0 : index
    %c0_1 = arith.constant 0 : index
    %3 = vector.load %arg3[%c0, %c0_1] : memref<32x256xbf16, #tpu.memory_space<vmem>>, vector<32x256xbf16>
    %cst = arith.constant 0.000000e+00 : bf16
    %4 = vector.broadcast %cst : bf16 to vector<32x256xbf16>
    %5 = arith.maximumf %3, %4 : vector<32x256xbf16>
    %c0_2 = arith.constant 0 : index
    %c0_3 = arith.constant 0 : index
    %6 = vector.load %arg9[%c0_2, %c0_3] : memref<32x128xf32, #tpu.memory_space<vmem>>, vector<32x128xf32>
    %c0_4 = arith.constant 0 : index
    %c0_5 = arith.constant 0 : index
    %7 = vector.load %arg4[%c0_4, %c0_5] : memref<256x128xbf16, #tpu.memory_space<vmem>>, vector<256x128xbf16>
    %cst_6 = arith.constant dense<0.000000e+00> : vector<32x128xf32>
    %8 = tpu.matmul %5, %7, %cst_6 {dimension_numbers = #tpu.dot_dimension_numbers<[1], [0], [0], [1], [0, 0, 1, 1], [], []>} : vector<32x256xbf16>, vector<256x128xbf16>, vector<32x128xf32> -> vector<32x128xf32>
    %9 = arith.addf %6, %8 : vector<32x128xf32>
    %c0_7 = arith.constant 0 : index
    %c0_8 = arith.constant 0 : index
    %10 = vector.load %arg9[%c0_7, %c0_8] : memref<32x128xf32, #tpu.memory_space<vmem>>, vector<32x128xf32>
    tpu.vector_store %arg9[%c0_7, %c0_8], %9 {strides = array<i32>} : memref<32x128xf32, #tpu.memory_space<vmem>>, vector<32x128xf32>,
    %c0_i32_9 = arith.constant 0 : i32
    %11 = arith.cmpi eq, %arg2, %c0_i32_9 : i32
    %12 = arith.extui %11 : i1 to i32
    %c0_i32_10 = arith.constant 0 : i32
    %13 = arith.cmpi ne, %12, %c0_i32_10 : i32
    scf.if %13 {
      %c0_11 = arith.constant 0 : index
      %c0_12 = arith.constant 0 : index
      %14 = vector.load %arg9[%c0_11, %c0_12] : memref<32x128xf32, #tpu.memory_space<vmem>>, vector<32x128xf32>
      %c0_13 = arith.constant 0 : index
      %c0_14 = arith.constant 0 : index
      %15 = vector.load %arg5[%c0_13, %c0_14] : memref<1x128xf32, #tpu.memory_space<vmem>>, vector<1x128xf32>
      %16 = vector.broadcast %15 : vector<1x128xf32> to vector<32x128xf32>
      %17 = arith.mulf %14, %16 : vector<32x128xf32>
      %c0_15 = arith.constant 0 : index
      %c0_16 = arith.constant 0 : index
      %18 = vector.load %arg6[%c0_15, %c0_16] : memref<1x128xf32, #tpu.memory_space<vmem>>, vector<1x128xf32>
      %19 = vector.broadcast %18 : vector<1x128xf32> to vector<32x128xf32>
      %20 = arith.addf %17, %19 : vector<32x128xf32>
      %c0_17 = arith.constant 0 : index
      %c0_18 = arith.constant 0 : index
      %21 = vector.load %arg7[%c0_17, %c0_18] : memref<32x128xf32, #tpu.memory_space<vmem>>, vector<32x128xf32>
      tpu.vector_store %arg7[%c0_17, %c0_18], %20 {strides = array<i32>} : memref<32x128xf32, #tpu.memory_space<vmem>>, vector<32x128xf32>,
      %cst_19 = arith.constant dense<0.000000e+00> : vector<128xf32>
      %22 = vector.multi_reduction <add>, %20, %cst_19 [0] : vector<32x128xf32> to vector<128xf32>
      %23 = vector.shape_cast %22 : vector<128xf32> to vector<1x128xf32>
      %24 = arith.mulf %20, %20 : vector<32x128xf32>
      %cst_20 = arith.constant dense<0.000000e+00> : vector<128xf32>
      %25 = vector.multi_reduction <add>, %24, %cst_20 [0] : vector<32x128xf32> to vector<128xf32>
      %26 = vector.shape_cast %25 : vector<128xf32> to vector<1x128xf32>
      %27 = tpu.iota {dimensions = array<i32: 0>} : vector<8x128xi32>
      %28 = vector.shape_cast %23 : vector<1x128xf32> to vector<1x128xf32>
      %29 = vector.broadcast %28 : vector<1x128xf32> to vector<8x128xf32>
      %30 = vector.shape_cast %26 : vector<1x128xf32> to vector<1x128xf32>
      %31 = vector.broadcast %30 : vector<1x128xf32> to vector<8x128xf32>
      %c0_i32_21 = arith.constant 0 : i32
      %32 = vector.broadcast %c0_i32_21 : i32 to vector<8x128xi32>
      %33 = arith.cmpi eq, %27, %32 : vector<8x128xi32>
      %c1_i32 = arith.constant 1 : i32
      %34 = vector.broadcast %c1_i32 : i32 to vector<8x128xi32>
      %35 = arith.cmpi eq, %27, %34 : vector<8x128xi32>
      %cst_22 = arith.constant 0.000000e+00 : f32
      %36 = vector.broadcast %cst_22 : f32 to vector<8x128xf32>
      %37 = arith.select %35, %31, %36 : vector<8x128xi1>, vector<8x128xf32>
      %38 = arith.select %33, %29, %37 : vector<8x128xi1>, vector<8x128xf32>
      %c0_23 = arith.constant 0 : index
      %c0_24 = arith.constant 0 : index
      %39 = vector.load %arg8[%c0_23, %c0_24] : memref<8x128xf32, #tpu.memory_space<vmem>>, vector<8x128xf32>
      tpu.vector_store %arg8[%c0_23, %c0_24], %38 {strides = array<i32>} : memref<8x128xf32, #tpu.memory_space<vmem>>, vector<8x128xf32>,
    } else {
    }
    return
  }
  func.func @transform_0(%arg0: i32, %arg1: i32, %arg2: i32) -> (i32, i32) {
    %c0_i32 = arith.constant 0 : i32
    return %arg0, %arg2 : i32, i32
  }
  func.func @transform_1(%arg0: i32, %arg1: i32, %arg2: i32) -> (i32, i32) {
    %c0_i32 = arith.constant 0 : i32
    return %arg2, %arg1 : i32, i32
  }
  func.func @transform_2(%arg0: i32, %arg1: i32, %arg2: i32) -> (i32, i32) {
    %c0_i32 = arith.constant 0 : i32
    %c0_i32_0 = arith.constant 0 : i32
    return %c0_i32, %arg1 : i32, i32
  }
  func.func @transform_3(%arg0: i32, %arg1: i32, %arg2: i32) -> (i32, i32) {
    %c0_i32 = arith.constant 0 : i32
    %c0_i32_0 = arith.constant 0 : i32
    return %c0_i32, %arg1 : i32, i32
  }
  func.func @transform_4(%arg0: i32, %arg1: i32, %arg2: i32) -> (i32, i32) {
    %c0_i32 = arith.constant 0 : i32
    return %arg0, %arg1 : i32, i32
  }
  func.func @transform_5(%arg0: i32, %arg1: i32, %arg2: i32) -> (i32, i32) {
    %c0_i32 = arith.constant 0 : i32
    return %arg0, %arg1 : i32, i32
  }
}

module attributes {stable_mosaic.version = 11 : i64} {
  func.func @kernel(%arg0: i32, %arg1: i32, %arg2: i32, %arg3: memref<128x128xbf16, #tpu.memory_space<vmem>>, %arg4: memref<128x128xbf16, #tpu.memory_space<vmem>>, %arg5: memref<1x128xf32, #tpu.memory_space<vmem>>, %arg6: memref<1x128xf32, #tpu.memory_space<vmem>>, %arg7: memref<128x128xf32, #tpu.memory_space<vmem>>, %arg8: memref<8x128xf32, #tpu.memory_space<vmem>>, %arg9: memref<128x128xf32, #tpu.memory_space<vmem>>) attributes {dimension_semantics = [#tpu.dimension_semantics<parallel>, #tpu.dimension_semantics<parallel>, #tpu.dimension_semantics<arbitrary>], iteration_bounds = array<i64: 1, 1, 1>, scalar_prefetch = 0 : i64, scratch_operands = 1 : i64, tpu.core_type = #tpu.core_type<tc>, window_params = [{transform_indices = @transform_0, window_bounds = array<i64: 128, 128>}, {transform_indices = @transform_1, window_bounds = array<i64: 128, 128>}, {transform_indices = @transform_2, window_bounds = array<i64: 1, 128>}, {transform_indices = @transform_3, window_bounds = array<i64: 1, 128>}, {transform_indices = @transform_4, window_bounds = array<i64: 128, 128>}, {transform_indices = @transform_5, window_bounds = array<i64: 8, 128>}]} {
    %c0_i32 = arith.constant 0 : i32
    %0 = arith.cmpi eq, %arg2, %c0_i32 : i32
    %1 = arith.extui %0 : i1 to i32
    %c0_i32_0 = arith.constant 0 : i32
    %2 = arith.cmpi ne, %1, %c0_i32_0 : i32
    scf.if %2 {
      %cst_11 = arith.constant 0.000000e+00 : f32
      %14 = vector.broadcast %cst_11 : f32 to vector<128x128xf32>
      %c0_12 = arith.constant 0 : index
      %c0_13 = arith.constant 0 : index
      %15 = vector.load %arg9[%c0_12, %c0_13] : memref<128x128xf32, #tpu.memory_space<vmem>>, vector<128x128xf32>
      tpu.vector_store %arg9[%c0_12, %c0_13], %14 {strides = array<i32>} : memref<128x128xf32, #tpu.memory_space<vmem>>, vector<128x128xf32>,
    } else {
    }
    %c0 = arith.constant 0 : index
    %c0_1 = arith.constant 0 : index
    %3 = vector.load %arg3[%c0, %c0_1] : memref<128x128xbf16, #tpu.memory_space<vmem>>, vector<128x128xbf16>
    %cst = arith.constant 0.000000e+00 : bf16
    %4 = vector.broadcast %cst : bf16 to vector<128x128xbf16>
    %5 = arith.maximumf %3, %4 : vector<128x128xbf16>
    %c0_2 = arith.constant 0 : index
    %c0_3 = arith.constant 0 : index
    %6 = vector.load %arg9[%c0_2, %c0_3] : memref<128x128xf32, #tpu.memory_space<vmem>>, vector<128x128xf32>
    %c0_4 = arith.constant 0 : index
    %c0_5 = arith.constant 0 : index
    %7 = vector.load %arg4[%c0_4, %c0_5] : memref<128x128xbf16, #tpu.memory_space<vmem>>, vector<128x128xbf16>
    %cst_6 = arith.constant dense<0.000000e+00> : vector<128x128xf32>
    %8 = tpu.matmul %5, %7, %cst_6 {dimension_numbers = #tpu.dot_dimension_numbers<[1], [0], [0], [1], [0, 0, 1, 1], [], []>} : vector<128x128xbf16>, vector<128x128xbf16>, vector<128x128xf32> -> vector<128x128xf32>
    %9 = arith.addf %6, %8 : vector<128x128xf32>
    %c0_7 = arith.constant 0 : index
    %c0_8 = arith.constant 0 : index
    %10 = vector.load %arg9[%c0_7, %c0_8] : memref<128x128xf32, #tpu.memory_space<vmem>>, vector<128x128xf32>
    tpu.vector_store %arg9[%c0_7, %c0_8], %9 {strides = array<i32>} : memref<128x128xf32, #tpu.memory_space<vmem>>, vector<128x128xf32>,
    %c0_i32_9 = arith.constant 0 : i32
    %11 = arith.cmpi eq, %arg2, %c0_i32_9 : i32
    %12 = arith.extui %11 : i1 to i32
    %c0_i32_10 = arith.constant 0 : i32
    %13 = arith.cmpi ne, %12, %c0_i32_10 : i32
    scf.if %13 {
      %c0_11 = arith.constant 0 : index
      %c0_12 = arith.constant 0 : index
      %14 = vector.load %arg9[%c0_11, %c0_12] : memref<128x128xf32, #tpu.memory_space<vmem>>, vector<128x128xf32>
      %c0_13 = arith.constant 0 : index
      %c0_14 = arith.constant 0 : index
      %15 = vector.load %arg5[%c0_13, %c0_14] : memref<1x128xf32, #tpu.memory_space<vmem>>, vector<1x128xf32>
      %16 = vector.broadcast %15 : vector<1x128xf32> to vector<128x128xf32>
      %17 = arith.mulf %14, %16 : vector<128x128xf32>
      %c0_15 = arith.constant 0 : index
      %c0_16 = arith.constant 0 : index
      %18 = vector.load %arg6[%c0_15, %c0_16] : memref<1x128xf32, #tpu.memory_space<vmem>>, vector<1x128xf32>
      %19 = vector.broadcast %18 : vector<1x128xf32> to vector<128x128xf32>
      %20 = arith.addf %17, %19 : vector<128x128xf32>
      %c0_17 = arith.constant 0 : index
      %c0_18 = arith.constant 0 : index
      %21 = vector.load %arg7[%c0_17, %c0_18] : memref<128x128xf32, #tpu.memory_space<vmem>>, vector<128x128xf32>
      tpu.vector_store %arg7[%c0_17, %c0_18], %20 {strides = array<i32>} : memref<128x128xf32, #tpu.memory_space<vmem>>, vector<128x128xf32>,
      %cst_19 = arith.constant dense<0.000000e+00> : vector<128xf32>
      %22 = vector.multi_reduction <add>, %20, %cst_19 [0] : vector<128x128xf32> to vector<128xf32>
      %23 = vector.shape_cast %22 : vector<128xf32> to vector<1x128xf32>
      %24 = arith.mulf %20, %20 : vector<128x128xf32>
      %cst_20 = arith.constant dense<0.000000e+00> : vector<128xf32>
      %25 = vector.multi_reduction <add>, %24, %cst_20 [0] : vector<128x128xf32> to vector<128xf32>
      %26 = vector.shape_cast %25 : vector<128xf32> to vector<1x128xf32>
      %27 = tpu.iota {dimensions = array<i32: 0>} : vector<8x128xi32>
      %28 = vector.shape_cast %23 : vector<1x128xf32> to vector<1x128xf32>
      %29 = vector.broadcast %28 : vector<1x128xf32> to vector<8x128xf32>
      %30 = vector.shape_cast %26 : vector<1x128xf32> to vector<1x128xf32>
      %31 = vector.broadcast %30 : vector<1x128xf32> to vector<8x128xf32>
      %c0_i32_21 = arith.constant 0 : i32
      %32 = vector.broadcast %c0_i32_21 : i32 to vector<8x128xi32>
      %33 = arith.cmpi eq, %27, %32 : vector<8x128xi32>
      %c1_i32 = arith.constant 1 : i32
      %34 = vector.broadcast %c1_i32 : i32 to vector<8x128xi32>
      %35 = arith.cmpi eq, %27, %34 : vector<8x128xi32>
      %cst_22 = arith.constant 0.000000e+00 : f32
      %36 = vector.broadcast %cst_22 : f32 to vector<8x128xf32>
      %37 = arith.select %35, %31, %36 : vector<8x128xi1>, vector<8x128xf32>
      %38 = arith.select %33, %29, %37 : vector<8x128xi1>, vector<8x128xf32>
      %c0_23 = arith.constant 0 : index
      %c0_24 = arith.constant 0 : index
      %39 = vector.load %arg8[%c0_23, %c0_24] : memref<8x128xf32, #tpu.memory_space<vmem>>, vector<8x128xf32>
      tpu.vector_store %arg8[%c0_23, %c0_24], %38 {strides = array<i32>} : memref<8x128xf32, #tpu.memory_space<vmem>>, vector<8x128xf32>,
    } else {
    }
    return
  }
  func.func @transform_0(%arg0: i32, %arg1: i32, %arg2: i32) -> (i32, i32) {
    %c0_i32 = arith.constant 0 : i32
    return %arg0, %arg2 : i32, i32
  }
  func.func @transform_1(%arg0: i32, %arg1: i32, %arg2: i32) -> (i32, i32) {
    %c0_i32 = arith.constant 0 : i32
    return %arg2, %arg1 : i32, i32
  }
  func.func @transform_2(%arg0: i32, %arg1: i32, %arg2: i32) -> (i32, i32) {
    %c0_i32 = arith.constant 0 : i32
    %c0_i32_0 = arith.constant 0 : i32
    return %c0_i32, %arg1 : i32, i32
  }
  func.func @transform_3(%arg0: i32, %arg1: i32, %arg2: i32) -> (i32, i32) {
    %c0_i32 = arith.constant 0 : i32
    %c0_i32_0 = arith.constant 0 : i32
    return %c0_i32, %arg1 : i32, i32
  }
  func.func @transform_4(%arg0: i32, %arg1: i32, %arg2: i32) -> (i32, i32) {
    %c0_i32 = arith.constant 0 : i32
    return %arg0, %arg1 : i32, i32
  }
  func.func @transform_5(%arg0: i32, %arg1: i32, %arg2: i32) -> (i32, i32) {
    %c0_i32 = arith.constant 0 : i32
    return %arg0, %arg1 : i32, i32
  }
}

module attributes {stable_mosaic.version = 11 : i64} {
  func.func @kernel(%arg0: i32, %arg1: i32, %arg2: i32, %arg3: memref<256x128xbf16, #tpu.memory_space<vmem>>, %arg4: memref<128x128xbf16, #tpu.memory_space<vmem>>, %arg5: memref<1x128xf32, #tpu.memory_space<vmem>>, %arg6: memref<1x128xf32, #tpu.memory_space<vmem>>, %arg7: memref<256x128xf32, #tpu.memory_space<vmem>>, %arg8: memref<256x128xf32, #tpu.memory_space<vmem>>) attributes {dimension_semantics = [#tpu.dimension_semantics<parallel>, #tpu.dimension_semantics<parallel>, #tpu.dimension_semantics<arbitrary>], iteration_bounds = array<i64: 2, 1, 1>, scalar_prefetch = 0 : i64, scratch_operands = 1 : i64, tpu.core_type = #tpu.core_type<tc>, window_params = [{transform_indices = @transform_0, window_bounds = array<i64: 256, 128>}, {transform_indices = @transform_1, window_bounds = array<i64: 128, 128>}, {transform_indices = @transform_2, window_bounds = array<i64: 1, 128>}, {transform_indices = @transform_3, window_bounds = array<i64: 1, 128>}, {transform_indices = @transform_4, window_bounds = array<i64: 256, 128>}]} {
    %c0_i32 = arith.constant 0 : i32
    %0 = arith.cmpi eq, %arg2, %c0_i32 : i32
    %1 = arith.extui %0 : i1 to i32
    %c0_i32_0 = arith.constant 0 : i32
    %2 = arith.cmpi ne, %1, %c0_i32_0 : i32
    scf.if %2 {
      %cst_11 = arith.constant 0.000000e+00 : f32
      %14 = vector.broadcast %cst_11 : f32 to vector<256x128xf32>
      %c0_12 = arith.constant 0 : index
      %c0_13 = arith.constant 0 : index
      %15 = vector.load %arg8[%c0_12, %c0_13] : memref<256x128xf32, #tpu.memory_space<vmem>>, vector<256x128xf32>
      tpu.vector_store %arg8[%c0_12, %c0_13], %14 {strides = array<i32>} : memref<256x128xf32, #tpu.memory_space<vmem>>, vector<256x128xf32>,
    } else {
    }
    %c0 = arith.constant 0 : index
    %c0_1 = arith.constant 0 : index
    %3 = vector.load %arg3[%c0, %c0_1] : memref<256x128xbf16, #tpu.memory_space<vmem>>, vector<256x128xbf16>
    %cst = arith.constant 0.000000e+00 : bf16
    %4 = vector.broadcast %cst : bf16 to vector<256x128xbf16>
    %5 = arith.maximumf %3, %4 : vector<256x128xbf16>
    %c0_2 = arith.constant 0 : index
    %c0_3 = arith.constant 0 : index
    %6 = vector.load %arg8[%c0_2, %c0_3] : memref<256x128xf32, #tpu.memory_space<vmem>>, vector<256x128xf32>
    %c0_4 = arith.constant 0 : index
    %c0_5 = arith.constant 0 : index
    %7 = vector.load %arg4[%c0_4, %c0_5] : memref<128x128xbf16, #tpu.memory_space<vmem>>, vector<128x128xbf16>
    %cst_6 = arith.constant dense<0.000000e+00> : vector<256x128xf32>
    %8 = tpu.matmul %5, %7, %cst_6 {dimension_numbers = #tpu.dot_dimension_numbers<[1], [0], [0], [1], [0, 0, 1, 1], [], []>} : vector<256x128xbf16>, vector<128x128xbf16>, vector<256x128xf32> -> vector<256x128xf32>
    %9 = arith.addf %6, %8 : vector<256x128xf32>
    %c0_7 = arith.constant 0 : index
    %c0_8 = arith.constant 0 : index
    %10 = vector.load %arg8[%c0_7, %c0_8] : memref<256x128xf32, #tpu.memory_space<vmem>>, vector<256x128xf32>
    tpu.vector_store %arg8[%c0_7, %c0_8], %9 {strides = array<i32>} : memref<256x128xf32, #tpu.memory_space<vmem>>, vector<256x128xf32>,
    %c0_i32_9 = arith.constant 0 : i32
    %11 = arith.cmpi eq, %arg2, %c0_i32_9 : i32
    %12 = arith.extui %11 : i1 to i32
    %c0_i32_10 = arith.constant 0 : i32
    %13 = arith.cmpi ne, %12, %c0_i32_10 : i32
    scf.if %13 {
      %c0_11 = arith.constant 0 : index
      %c0_12 = arith.constant 0 : index
      %14 = vector.load %arg8[%c0_11, %c0_12] : memref<256x128xf32, #tpu.memory_space<vmem>>, vector<256x128xf32>
      %c0_13 = arith.constant 0 : index
      %c0_14 = arith.constant 0 : index
      %15 = vector.load %arg5[%c0_13, %c0_14] : memref<1x128xf32, #tpu.memory_space<vmem>>, vector<1x128xf32>
      %16 = vector.broadcast %15 : vector<1x128xf32> to vector<256x128xf32>
      %17 = arith.mulf %14, %16 : vector<256x128xf32>
      %c0_15 = arith.constant 0 : index
      %c0_16 = arith.constant 0 : index
      %18 = vector.load %arg6[%c0_15, %c0_16] : memref<1x128xf32, #tpu.memory_space<vmem>>, vector<1x128xf32>
      %19 = vector.broadcast %18 : vector<1x128xf32> to vector<256x128xf32>
      %20 = arith.addf %17, %19 : vector<256x128xf32>
      %21 = math.tanh %20 : vector<256x128xf32>
      %c0_17 = arith.constant 0 : index
      %c0_18 = arith.constant 0 : index
      %22 = vector.load %arg7[%c0_17, %c0_18] : memref<256x128xf32, #tpu.memory_space<vmem>>, vector<256x128xf32>
      tpu.vector_store %arg7[%c0_17, %c0_18], %21 {strides = array<i32>} : memref<256x128xf32, #tpu.memory_space<vmem>>, vector<256x128xf32>,
    } else {
    }
    return
  }
  func.func @transform_0(%arg0: i32, %arg1: i32, %arg2: i32) -> (i32, i32) {
    %c0_i32 = arith.constant 0 : i32
    return %arg0, %arg2 : i32, i32
  }
  func.func @transform_1(%arg0: i32, %arg1: i32, %arg2: i32) -> (i32, i32) {
    %c0_i32 = arith.constant 0 : i32
    return %arg2, %arg1 : i32, i32
  }
  func.func @transform_2(%arg0: i32, %arg1: i32, %arg2: i32) -> (i32, i32) {
    %c0_i32 = arith.constant 0 : i32
    %c0_i32_0 = arith.constant 0 : i32
    return %c0_i32, %arg1 : i32, i32
  }
  func.func @transform_3(%arg0: i32, %arg1: i32, %arg2: i32) -> (i32, i32) {
    %c0_i32 = arith.constant 0 : i32
    %c0_i32_0 = arith.constant 0 : i32
    return %c0_i32, %arg1 : i32, i32
  }
  func.func @transform_4(%arg0: i32, %arg1: i32, %arg2: i32) -> (i32, i32) {
    %c0_i32 = arith.constant 0 : i32
    return %arg0, %arg1 : i32, i32
  }
}

</mosaic_0001>

<bundles_post_ra>
// kernel: unet_256_forward.44
= control target key start
LH: loop header
LB: loop body
LE: loop exit
PB: predicated region body
PF: predicated region fallthrough
CT: control target
= control target key end

     0   :  { %s1208_s15 = smov 0   ;;  %s1210_s16 = smov 0   ;;  %s1398_s0 = inlined_call_operand.vmem [shape: bf16[512,128], index: 0, kind: input, shape index: {}]   ;;  %s1399_s1 = inlined_call_operand.vmem [shape: bf16[128,128], index: 1, kind: input, shape index: {}]   ;;  %s1400_s2 = inlined_call_operand.vmem [shape: f32[1,128], index: 2, kind: input, shape index: {}]   ;;  %s1401_s3 = inlined_call_operand.vmem [shape: f32[1,128], index: 3, kind: input, shape index: {}]   ;;  %s1402_s4 = inlined_call_operand.vmem [shape: f32[512,128], index: 4, kind: output, shape index: {}]  }
   0x1   :  { %s1212_s17 = smov 0  }
   0x2 LB: > { %s33_s18 = sadd.s32 1, %s1177_s16  ;;  %p982_p0 = scmp.ge.s32.totalorder %s1181_s17, 1  ;;  %s1181_s17 = sphi %s1212_s17, %s14_s17   ;;  %s1177_s16 = sphi %s1210_s16, %s1404_s16   ;;  %s1173_s15 = sphi %s1208_s15, %s1403_s15  }
   0x3   : > { %p35_p1 = scmp.ge.s32.totalorder %s33_s18, 2  ;;  %p221_p2 = scmp.lt.s32.totalorder %s1181_s17, 3 }
   0x5   : > { %s1406_s18 = smov (%p35_p1, %s33_s18), 0  ;;  %p222_p3 = pnand %p982_p0, %p221_p2 }
   0x6   : > { %s983_s27 = sshll.u32 (!%p222_p3), %s1173_s15, 5 }
   0x7   : > { %225 = sbr.rel (%p222_p3) target bundleno = 239 (0xef), region = 36  ;;  %p268_p4 = scmp.lt.s32.totalorder (!%p222_p3), %s983_s27, 63 }
   0xc   : > { %v1108_v0 = vld [vmem:[%s1399_s1 + $0x38] sm:$0xff]  ;;  %v1107_v1 = vld [vmem:[%s1399_s1 + $0x30] sm:$0xff]  ;;  %v1106_v2 = vld [vmem:[%s1399_s1 + $0x28] sm:$0xff]  ;;  %s1408_s27 = smov (!%p268_p4, %s983_s27), 63 }
   0xd   : > { %560 = vmatpush.bf16.msra.mxu0 %v1108_v0  ;;  %1109 = vmatpush.bf16.msra.mxu1 %v1108_v0  ;;  %v1105_v3 = vld [vmem:[%s1399_s1 + $0x20] sm:$0xff]  ;;  %v1104_v4 = vld [vmem:[%s1399_s1 + $0x18] sm:$0xff]  ;;  %v1103_v5 = vld [vmem:[%s1399_s1 + $0x10] sm:$0xff]  ;;  %s984_s8 = sshll.u32 %s1408_s27, 2  ;;  %s986_s19 = sshll.u32 %s1408_s27, 3 }
   0xe   : > { %1110 = vmatpush.bf16.msra.mxu2 %v1108_v0  ;;  %1111 = vmatpush.bf16.msra.mxu3 %v1108_v0  ;;  %v1102_v6 = vld [vmem:[%s1399_s1 + $0x8] sm:$0xff]  ;;  %v1101_v7 = vld [vmem:[%s1399_s1] sm:$0xff]  ;;  %s1259_s13 = scalar_lea.vmem %s1398_s0, %s984_s8  ;;  %s1293_s24 = scalar_lea.vmem %s1402_s4, %s986_s19 }
   0xf   : > { %v1085_v8 = vld [vmem:[%s1259_s13] sm:$0xff]  ;;  %v1086_v12 = vld [vmem:[%s1259_s13 + $0x8] sm:$0xff]  ;;  %v1087_v16 = vld [vmem:[%s1259_s13 + $0x10] sm:$0xff] }
  0x10   : > { %v1089_v9 = vld [vmem:[%s1259_s13 + $0x20] sm:$0xff]  ;;  %v1090_v13 = vld [vmem:[%s1259_s13 + $0x28] sm:$0xff]  ;;  %v1091_v17 = vld [vmem:[%s1259_s13 + $0x30] sm:$0xff] }
  0x11   : > { %561 = vmatpush.bf16.msra.mxu0 %v1107_v1  ;;  %1112 = vmatpush.bf16.msra.mxu1 %v1107_v1  ;;  %v1093_v10 = vld [vmem:[%s1259_s13 + $0x40] sm:$0xff]  ;;  %v1094_v14 = vld [vmem:[%s1259_s13 + $0x48] sm:$0xff]  ;;  %v1095_v18 = vld [vmem:[%s1259_s13 + $0x50] sm:$0xff] }
  0x12   : > { %1113 = vmatpush.bf16.msra.mxu2 %v1107_v1  ;;  %1114 = vmatpush.bf16.msra.mxu3 %v1107_v1  ;;  %v1097_v11 = vld [vmem:[%s1259_s13 + $0x60] sm:$0xff]  ;;  %v1098_v15 = vld [vmem:[%s1259_s13 + $0x68] sm:$0xff]  ;;  %v1099_v19 = vld [vmem:[%s1259_s13 + $0x70] sm:$0xff] }
  0x13   : > { %v1088_v20 = vld [vmem:[%s1259_s13 + $0x18] sm:$0xff]  ;;  %v1280_v24 = vld [vmem:[%s1400_s2] ss:$0 sm:$0xff] }
  0x14   : > { %v1092_v21 = vld [vmem:[%s1259_s13 + $0x38] sm:$0xff]  ;;  %v1286_v25 = vld [vmem:[%s1401_s3] ss:$0 sm:$0xff] }
  0x15   : > { %562 = vmatpush.bf16.msra.mxu0 %v1106_v2  ;;  %1115 = vmatpush.bf16.msra.mxu1 %v1106_v2  ;;  %v1096_v22 = vld [vmem:[%s1259_s13 + $0x58] sm:$0xff] }
  0x16   : > { %1116 = vmatpush.bf16.msra.mxu2 %v1106_v2  ;;  %1117 = vmatpush.bf16.msra.mxu3 %v1106_v2  ;;  %v1100_v23 = vld [vmem:[%s1259_s13 + $0x78] sm:$0xff] }
  0x19   : > { %563 = vmatpush.bf16.msra.mxu0 %v1105_v3  ;;  %1118 = vmatpush.bf16.msra.mxu1 %v1105_v3 }
  0x1a   : > { %1119 = vmatpush.bf16.msra.mxu2 %v1105_v3  ;;  %1120 = vmatpush.bf16.msra.mxu3 %v1105_v3 }
  0x1d   : > { %564 = vmatpush.bf16.msra.mxu0 %v1104_v4  ;;  %1121 = vmatpush.bf16.msra.mxu1 %v1104_v4 }
  0x1e   : > { %1122 = vmatpush.bf16.msra.mxu2 %v1104_v4  ;;  %1123 = vmatpush.bf16.msra.mxu3 %v1104_v4 }
  0x21   : > { %565 = vmatpush.bf16.msra.mxu0 %v1103_v5  ;;  %1124 = vmatpush.bf16.msra.mxu1 %v1103_v5 }
  0x22   : > { %1125 = vmatpush.bf16.msra.mxu2 %v1103_v5  ;;  %1126 = vmatpush.bf16.msra.mxu3 %v1103_v5 }
  0x25   : > { %566 = vmatpush.bf16.msra.mxu0 %v1102_v6  ;;  %1127 = vmatpush.bf16.msra.mxu1 %v1102_v6 }
  0x26   : > { %1128 = vmatpush.bf16.msra.mxu2 %v1102_v6  ;;  %1129 = vmatpush.bf16.msra.mxu3 %v1102_v6 }
  0x29   : > { %567 = vmatpush.bf16.msra.mxu0 %v1101_v7  ;;  %1130 = vmatpush.bf16.msra.mxu1 %v1101_v7 }
  0x2a   : > { %1131 = vmatpush.bf16.msra.mxu2 %v1101_v7  ;;  %1132 = vmatpush.bf16.msra.mxu3 %v1101_v7 }
  0x2c   : > { %568 = vmatmul.bf16.vlgmr.msra.gmra.mxu0 %v1085_v8  ;;  %588 = vmatmul.bf16.vlgmr.msra.gmra.mxu1 %v1089_v9 }
  0x2d   : > { %608 = vmatmul.bf16.vlgmr.msra.gmra.mxu2 %v1093_v10  ;;  %628 = vmatmul.bf16.vlgmr.msra.gmra.mxu3 %v1097_v11 }
  0x3c   : > { %573 = vmatmul.bf16.gmra.mxu0 %v1086_v12  ;;  %593 = vmatmul.bf16.gmra.mxu1 %v1090_v13 }
  0x3d   : > { %613 = vmatmul.bf16.gmra.mxu2 %v1094_v14  ;;  %633 = vmatmul.bf16.gmra.mxu3 %v1098_v15 }
  0x4c   : > { %578 = vmatmul.bf16.gmra.mxu0 %v1087_v16  ;;  %598 = vmatmul.bf16.gmra.mxu1 %v1091_v17 }
  0x4d   : > { %618 = vmatmul.bf16.gmra.mxu2 %v1095_v18  ;;  %638 = vmatmul.bf16.gmra.mxu3 %v1099_v19 }
  0x5c   : > { %583 = vmatmul.bf16.gmra.mxu0 %v1088_v20  ;;  %603 = vmatmul.bf16.gmra.mxu1 %v1092_v21 }
  0x5d   : > { %623 = vmatmul.bf16.gmra.mxu2 %v1096_v22  ;;  %643 = vmatmul.bf16.gmra.mxu3 %v1100_v23 }
  0xa9   : > { %v569_v26 = vpop.f32.mrf.mxu0  ;;  %v589_v27 = vpop.f32.mrf.mxu1 }
  0xaa   : > { %v752_v28 = vmul.f32 %v1280_v24, %v569_v26  ;;  %v760_v29 = vmul.f32 %v1280_v24, %v589_v27 }
  0xac   : > { %v788_v30 = vadd.f32 %v1286_v25, %v752_v28  ;;  %v796_v31 = vadd.f32 %v1286_v25, %v760_v29 }
  0xae   : > { %820 = vst [vmem:[%s1293_s24] sm:$0xff] %v788_v30 }
  0xaf   : > { %828 = vst [vmem:[%s1293_s24 + $0x40] sm:$0xff] %v796_v31 }
  0xb0   : > { %v609_v32 = vpop.f32.mrf.mxu2  ;;  %v629_v33 = vpop.f32.mrf.mxu3 }
  0xb1   : > { %v768_v34 = vmul.f32 %v1280_v24, %v609_v32  ;;  %v776_v35 = vmul.f32 %v1280_v24, %v629_v33  ;;  %v571_v36 = vpop.f32.mrf.mxu0  ;;  %v591_v37 = vpop.f32.mrf.mxu1 }
  0xb2   : > { %v753_v38 = vmul.f32 %v1280_v24, %v571_v36  ;;  %v761_v39 = vmul.f32 %v1280_v24, %v591_v37 }
  0xb3   : > { %v804_v40 = vadd.f32 %v1286_v25, %v768_v34  ;;  %v812_v41 = vadd.f32 %v1286_v25, %v776_v35 }
  0xb4   : > { %v789_v42 = vadd.f32 %v1286_v25, %v753_v38  ;;  %v797_v43 = vadd.f32 %v1286_v25, %v761_v39 }
  0xb5   : > { %836 = vst [vmem:[%s1293_s24 + $0x80] sm:$0xff] %v804_v40 }
  0xb6   : > { %844 = vst [vmem:[%s1293_s24 + $0xc0] sm:$0xff] %v812_v41 }
  0xb7   : > { %821 = vst [vmem:[%s1293_s24 + $0x8] sm:$0xff] %v789_v42 }
  0xb8   : > { %829 = vst [vmem:[%s1293_s24 + $0x48] sm:$0xff] %v797_v43  ;;  %v611_v44 = vpop.f32.mrf.mxu2  ;;  %v631_v45 = vpop.f32.mrf.mxu3 }
  0xb9   : > { %v769_v46 = vmul.f32 %v1280_v24, %v611_v44  ;;  %v777_v47 = vmul.f32 %v1280_v24, %v631_v45  ;;  %v574_v48 = vpop.f32.mrf.mxu0  ;;  %v594_v49 = vpop.f32.mrf.mxu1 }
  0xba   : > { %v754_v50 = vmul.f32 %v1280_v24, %v574_v48  ;;  %v762_v51 = vmul.f32 %v1280_v24, %v594_v49 }
  0xbb   : > { %v805_v52 = vadd.f32 %v1286_v25, %v769_v46  ;;  %v813_v53 = vadd.f32 %v1286_v25, %v777_v47 }
  0xbc   : > { %v790_v54 = vadd.f32 %v1286_v25, %v754_v50  ;;  %v798_v55 = vadd.f32 %v1286_v25, %v762_v51 }
  0xbd   : > { %837 = vst [vmem:[%s1293_s24 + $0x88] sm:$0xff] %v805_v52 }
  0xbe   : > { %845 = vst [vmem:[%s1293_s24 + $0xc8] sm:$0xff] %v813_v53 }
  0xbf   : > { %822 = vst [vmem:[%s1293_s24 + $0x10] sm:$0xff] %v790_v54 }
  0xc0   : > { %830 = vst [vmem:[%s1293_s24 + $0x50] sm:$0xff] %v798_v55  ;;  %v614_v56 = vpop.f32.mrf.mxu2  ;;  %v634_v57 = vpop.f32.mrf.mxu3 }
  0xc1   : > { %v770_v58 = vmul.f32 %v1280_v24, %v614_v56  ;;  %v778_v59 = vmul.f32 %v1280_v24, %v634_v57  ;;  %v576_v60 = vpop.f32.mrf.mxu0  ;;  %v596_v61 = vpop.f32.mrf.mxu1 }
  0xc2   : > { %v755_v62 = vmul.f32 %v1280_v24, %v576_v60  ;;  %v763_v63 = vmul.f32 %v1280_v24, %v596_v61 }
  0xc3   : > { %v806_v0 = vadd.f32 %v1286_v25, %v770_v58  ;;  %v814_v1 = vadd.f32 %v1286_v25, %v778_v59 }
  0xc4   : > { %v791_v2 = vadd.f32 %v1286_v25, %v755_v62  ;;  %v799_v3 = vadd.f32 %v1286_v25, %v763_v63 }
  0xc5   : > { %838 = vst [vmem:[%s1293_s24 + $0x90] sm:$0xff] %v806_v0 }
  0xc6   : > { %846 = vst [vmem:[%s1293_s24 + $0xd0] sm:$0xff] %v814_v1 }
  0xc7   : > { %823 = vst [vmem:[%s1293_s24 + $0x18] sm:$0xff] %v791_v2 }
  0xc8   : > { %831 = vst [vmem:[%s1293_s24 + $0x58] sm:$0xff] %v799_v3  ;;  %v616_v4 = vpop.f32.mrf.mxu2  ;;  %v636_v5 = vpop.f32.mrf.mxu3 }
  0xc9   : > { %v771_v6 = vmul.f32 %v1280_v24, %v616_v4  ;;  %v779_v7 = vmul.f32 %v1280_v24, %v636_v5  ;;  %v579_v8 = vpop.f32.mrf.mxu0  ;;  %v599_v9 = vpop.f32.mrf.mxu1 }
  0xca   : > { %v756_v10 = vmul.f32 %v1280_v24, %v579_v8  ;;  %v764_v11 = vmul.f32 %v1280_v24, %v599_v9 }
  0xcb   : > { %v807_v12 = vadd.f32 %v1286_v25, %v771_v6  ;;  %v815_v13 = vadd.f32 %v1286_v25, %v779_v7 }
  0xcc   : > { %v792_v14 = vadd.f32 %v1286_v25, %v756_v10  ;;  %v800_v15 = vadd.f32 %v1286_v25, %v764_v11 }
  0xcd   : > { %839 = vst [vmem:[%s1293_s24 + $0x98] sm:$0xff] %v807_v12 }
  0xce   : > { %847 = vst [vmem:[%s1293_s24 + $0xd8] sm:$0xff] %v815_v13 }
  0xcf   : > { %824 = vst [vmem:[%s1293_s24 + $0x20] sm:$0xff] %v792_v14 }
  0xd0   : > { %832 = vst [vmem:[%s1293_s24 + $0x60] sm:$0xff] %v800_v15  ;;  %v619_v16 = vpop.f32.mrf.mxu2  ;;  %v639_v17 = vpop.f32.mrf.mxu3 }
  0xd1   : > { %v772_v18 = vmul.f32 %v1280_v24, %v619_v16  ;;  %v780_v19 = vmul.f32 %v1280_v24, %v639_v17  ;;  %v581_v20 = vpop.f32.mrf.mxu0  ;;  %v601_v21 = vpop.f32.mrf.mxu1 }
  0xd2   : > { %v757_v22 = vmul.f32 %v1280_v24, %v581_v20  ;;  %v765_v23 = vmul.f32 %v1280_v24, %v601_v21 }
  0xd3   : > { %v808_v26 = vadd.f32 %v1286_v25, %v772_v18  ;;  %v816_v27 = vadd.f32 %v1286_v25, %v780_v19 }
  0xd4   : > { %v793_v28 = vadd.f32 %v1286_v25, %v757_v22  ;;  %v801_v29 = vadd.f32 %v1286_v25, %v765_v23 }
  0xd5   : > { %840 = vst [vmem:[%s1293_s24 + $0xa0] sm:$0xff] %v808_v26 }
  0xd6   : > { %848 = vst [vmem:[%s1293_s24 + $0xe0] sm:$0xff] %v816_v27 }
  0xd7   : > { %825 = vst [vmem:[%s1293_s24 + $0x28] sm:$0xff] %v793_v28 }
  0xd8   : > { %833 = vst [vmem:[%s1293_s24 + $0x68] sm:$0xff] %v801_v29  ;;  %v621_v30 = vpop.f32.mrf.mxu2  ;;  %v641_v31 = vpop.f32.mrf.mxu3 }
  0xd9   : > { %v773_v32 = vmul.f32 %v1280_v24, %v621_v30  ;;  %v781_v33 = vmul.f32 %v1280_v24, %v641_v31  ;;  %v584_v34 = vpop.f32.mrf.mxu0  ;;  %v604_v35 = vpop.f32.mrf.mxu1 }
  0xda   : > { %v758_v36 = vmul.f32 %v1280_v24, %v584_v34  ;;  %v766_v37 = vmul.f32 %v1280_v24, %v604_v35 }
  0xdb   : > { %v809_v38 = vadd.f32 %v1286_v25, %v773_v32  ;;  %v817_v39 = vadd.f32 %v1286_v25, %v781_v33 }
  0xdc   : > { %v794_v40 = vadd.f32 %v1286_v25, %v758_v36  ;;  %v802_v41 = vadd.f32 %v1286_v25, %v766_v37 }
  0xdd   : > { %841 = vst [vmem:[%s1293_s24 + $0xa8] sm:$0xff] %v809_v38 }
  0xde   : > { %849 = vst [vmem:[%s1293_s24 + $0xe8] sm:$0xff] %v817_v39 }
  0xdf   : > { %826 = vst [vmem:[%s1293_s24 + $0x30] sm:$0xff] %v794_v40 }
  0xe0   : > { %834 = vst [vmem:[%s1293_s24 + $0x70] sm:$0xff] %v802_v41  ;;  %v624_v42 = vpop.f32.mrf.mxu2  ;;  %v644_v43 = vpop.f32.mrf.mxu3 }
  0xe1   : > { %v774_v44 = vmul.f32 %v1280_v24, %v624_v42  ;;  %v782_v45 = vmul.f32 %v1280_v24, %v644_v43  ;;  %v586_v46 = vpop.f32.mrf.mxu0  ;;  %v606_v47 = vpop.f32.mrf.mxu1 }
  0xe2   : > { %v759_v48 = vmul.f32 %v1280_v24, %v586_v46  ;;  %v767_v49 = vmul.f32 %v1280_v24, %v606_v47 }
  0xe3   : > { %v810_v50 = vadd.f32 %v1286_v25, %v774_v44  ;;  %v818_v51 = vadd.f32 %v1286_v25, %v782_v45 }
  0xe4   : > { %v795_v52 = vadd.f32 %v1286_v25, %v759_v48  ;;  %v803_v53 = vadd.f32 %v1286_v25, %v767_v49 }
  0xe5   : > { %842 = vst [vmem:[%s1293_s24 + $0xb0] sm:$0xff] %v810_v50 }
  0xe6   : > { %850 = vst [vmem:[%s1293_s24 + $0xf0] sm:$0xff] %v818_v51 }
  0xe7   : > { %827 = vst [vmem:[%s1293_s24 + $0x38] sm:$0xff] %v795_v52 }
  0xe8   : > { %835 = vst [vmem:[%s1293_s24 + $0x78] sm:$0xff] %v803_v53  ;;  %v626_v54 = vpop.f32.mrf.mxu2  ;;  %v646_v55 = vpop.f32.mrf.mxu3 }
  0xe9   : > { %v775_v56 = vmul.f32 %v1280_v24, %v626_v54  ;;  %v783_v57 = vmul.f32 %v1280_v24, %v646_v55 }
  0xeb   : > { %v811_v58 = vadd.f32 %v1286_v25, %v775_v56  ;;  %v819_v59 = vadd.f32 %v1286_v25, %v783_v57 }
  0xed   : > { %843 = vst [vmem:[%s1293_s24 + $0xb8] sm:$0xff] %v811_v58 }
  0xee   : > { %851 = vst [vmem:[%s1293_s24 + $0xf8] sm:$0xff] %v819_v59 }
  0xef PF: > { %s14_s17 = sadd.s32 1, %s1181_s17   ;;  %s1403_s15 = smov %s1177_s16 }
  0xf0   : > { %p11_p5 = scmp.ge.s32.totalorder %s14_s17, 4   ;;  %s1404_s16 = smov %s1406_s18 }
  0xf2   :  { %13 = sbr.rel (!%p11_p5) target bundleno = 2 (0x2), region = 83 }

// kernel: unet_256_forward.45
= control target key start
LH: loop header
LB: loop body
LE: loop exit
PB: predicated region body
PF: predicated region fallthrough
CT: control target
= control target key end

     0   :  { %s1023_s1 = inlined_call_operand.vmem [shape: bf16[128,128], index: 1, kind: input, shape index: {}]   ;;  %s1024_s0 = inlined_call_operand.vmem [shape: bf16[128,128], index: 0, kind: input, shape index: {}]   ;;  %s1025_s2 = inlined_call_operand.vmem [shape: f32[1,128], index: 2, kind: input, shape index: {}]   ;;  %s1026_s3 = inlined_call_operand.vmem [shape: f32[1,128], index: 3, kind: input, shape index: {}]   ;;  %s1027_s4 = inlined_call_operand.vmem [shape: f32[128,128], index: 4, kind: output, shape index: {0}]   ;;  %s1028_s5 = inlined_call_operand.vmem [shape: f32[8,128], index: 5, kind: output, shape index: {1}]  }
   0x1   :  { %v547_v0 = vld [vmem:[%s1023_s1 + $0x38] sm:$0xff]  ;;  %v546_v1 = vld [vmem:[%s1023_s1 + $0x30] sm:$0xff]  ;;  %v613_v2 = vld [vmem:[%s1024_s0] sm:$0xf] }
   0x2   :  { %279 = vmatpush.bf16.msra.mxu0 %v547_v0  ;;  %548 = vmatpush.bf16.msra.mxu1 %v547_v0  ;;  %v545_v3 = vld [vmem:[%s1023_s1 + $0x28] sm:$0xff]  ;;  %v621_v4 = vld [vmem:[%s1024_s0 + $0x4] sm:$0xf]  ;;  %v626_v5 = vld [vmem:[%s1024_s0 + $0x10] sm:$0xf]  ;;  %v55_v9 = vunpack.c.l.bf16 %v613_v2 }
   0x3   :  { %549 = vmatpush.bf16.msra.mxu2 %v547_v0  ;;  %550 = vmatpush.bf16.msra.mxu3 %v547_v0  ;;  %v631_v6 = vld [vmem:[%s1024_s0 + $0x14] sm:$0xf]  ;;  %v636_v7 = vld [vmem:[%s1024_s0 + $0x20] sm:$0xf]  ;;  %v641_v8 = vld [vmem:[%s1024_s0 + $0x24] sm:$0xf]  ;;  %v56_v10 = vunpack.c.l.bf16 %v621_v4  ;;  %v59_v11 = vunpack.c.l.bf16 %v626_v5 }
   0x4   :  { %v649_v12 = vld [vmem:[%s1024_s0 + $0x30] sm:$0xf]  ;;  %v654_v13 = vld [vmem:[%s1024_s0 + $0x34] sm:$0xf]  ;;  %v60_v14 = vunpack.c.l.bf16 %v631_v6  ;;  %v63_v15 = vunpack.c.l.bf16 %v636_v7  ;;  %v64_v16 = vunpack.c.l.bf16 %v641_v8  ;;  %v544_v17 = vld [vmem:[%s1023_s1 + $0x20] sm:$0xff]  ;;  %vm662_vm0 = vcmp.gt.f32.partialorder %v55_v9, 0.0 }
   0x5   :  { %vm666_vm1 = vcmp.gt.f32.partialorder %v56_v10, 0.0  ;;  %v87_v20 = vmul.f32 0.20019531, %v55_v9  ;;  %v67_v21 = vunpack.c.l.bf16 %v649_v12  ;;  %v68_v22 = vunpack.c.l.bf16 %v654_v13  ;;  %vm119_vm3 = vmpackc.low %vm662_vm0, %vm662_vm0  ;;  %v543_v30 = vld [vmem:[%s1023_s1 + $0x18] sm:$0xff]  ;;  %v542_v43 = vld [vmem:[%s1023_s1 + $0x10] sm:$0xff] }
   0x6   :  { %280 = vmatpush.bf16.msra.mxu0 %v546_v1  ;;  %551 = vmatpush.bf16.msra.mxu1 %v546_v1  ;;  %v88_v23 = vmul.f32 0.20019531, %v56_v10  ;;  %vm672_vm2 = vcmp.gt.f32.partialorder %v59_v11, 0.0  ;;  %v91_v25 = vmul.f32 0.20019531, %v59_v11  ;;  %vm679_vm4 = vcmp.gt.f32.partialorder %v60_v14, 0.0  ;;  %vm120_vm5 = vmpackc.low %vm666_vm1, %vm666_vm1  ;;  %v541_v49 = vld [vmem:[%s1023_s1 + $0x8] sm:$0xff]  ;;  %v540_v9 = vld [vmem:[%s1023_s1] sm:$0xff] }
   0x7   :  { %552 = vmatpush.bf16.msra.mxu2 %v546_v1  ;;  %553 = vmatpush.bf16.msra.mxu3 %v546_v1  ;;  %v92_v27 = vmul.f32 0.20019531, %v60_v14  ;;  %v95_v28 = vmul.f32 0.20019531, %v63_v15  ;;  %v96_v29 = vmul.f32 0.20019531, %v64_v16  ;;  %vm689_vm6 = vcmp.gt.f32.partialorder %v63_v15, 0.0  ;;  %vm123_vm7 = vmpackc.low %vm672_vm2, %vm672_vm2  ;;  %v763_v53 = vld [vmem:[%s1024_s0 + $0x8] sm:$0xf] }
   0x8   :  { %v103_v32 = vpack.c.bf16 %v87_v20, %v87_v20  ;;  %vm696_vm8 = vcmp.gt.f32.partialorder %v64_v16, 0.0  ;;  %v99_v34 = vmul.f32 0.20019531, %v67_v21  ;;  %v100_v35 = vmul.f32 0.20019531, %v68_v22  ;;  %vm124_vm9 = vmpackc.low %vm679_vm4, %vm679_vm4  ;;  %v768_v55 = vld [vmem:[%s1024_s0 + $0xc] sm:$0xf] }
   0x9   :  { %v104_v36 = vpack.c.bf16 %v88_v23, %v88_v23  ;;  %v107_v37 = vpack.c.bf16 %v91_v25, %v91_v25  ;;  %vm703_vm10 = vcmp.gt.f32.partialorder %v67_v21, 0.0  ;;  %v108_v39 = vpack.c.bf16 %v92_v27, %v92_v27  ;;  %vm127_vm11 = vmpackc.low %vm689_vm6, %vm689_vm6  ;;  %v773_v56 = vld [vmem:[%s1024_s0 + $0x18] sm:$0xf]  ;;  %v778_v57 = vld [vmem:[%s1024_s0 + $0x1c] sm:$0xf] }
   0xa   :  { %281 = vmatpush.bf16.msra.mxu0 %v545_v3  ;;  %554 = vmatpush.bf16.msra.mxu1 %v545_v3  ;;  %v111_v40 = vpack.c.bf16 %v95_v28, %v95_v28  ;;  %v112_v41 = vpack.c.bf16 %v96_v29, %v96_v29  ;;  %vm710_vm12 = vcmp.gt.f32.partialorder %v68_v22, 0.0  ;;  %vm128_vm13 = vmpackc.low %vm696_vm8, %vm696_vm8  ;;  %v135_v44 = vsel %vm119_vm3, %v613_v2, %v103_v32  ;;  %v795_v62 = vld [vmem:[%s1024_s0 + $0x28] sm:$0xf] }
   0xb   :  { %555 = vmatpush.bf16.msra.mxu2 %v545_v3  ;;  %556 = vmatpush.bf16.msra.mxu3 %v545_v3  ;;  %v115_v45 = vpack.c.bf16 %v99_v34, %v99_v34  ;;  %v116_v46 = vpack.c.bf16 %v100_v35, %v100_v35  ;;  %vm131_vm14 = vmpackc.low %vm703_vm10, %vm703_vm10  ;;  %v136_v47 = vsel %vm120_vm5, %v621_v4, %v104_v36  ;;  %v199_v54 = vunpack.c.l.b16 %v135_v44  ;;  %v801_v3 = vld [vmem:[%s1024_s0 + $0x2c] sm:$0xf]  ;;  %v806_v4 = vld [vmem:[%s1024_s0 + $0x38] sm:$0xf] }
   0xc   :  { %v139_v48 = vsel %vm123_vm7, %v626_v5, %v107_v37  ;;  %vm132_vm15 = vmpackc.low %vm710_vm12, %vm710_vm12  ;;  %v140_v50 = vsel %vm124_vm9, %v631_v6, %v108_v39  ;;  %v143_v51 = vsel %vm127_vm11, %v636_v7, %v111_v40  ;;  %v144_v52 = vsel %vm128_vm13, %v641_v8, %v112_v41  ;;  %v811_v5 = vld [vmem:[%s1024_s0 + $0x3c] sm:$0xf] }
   0xd   :  { %v200_v58 = vunpack.c.l.b16 %v136_v47  ;;  %v203_v59 = vunpack.c.l.b16 %v139_v48  ;;  %v147_v60 = vsel %vm131_vm14, %v649_v12, %v115_v45  ;;  %v148_v61 = vsel %vm132_vm15, %v654_v13, %v116_v46 }
   0xe   :  { %282 = vmatpush.bf16.msra.mxu0 %v544_v17  ;;  %557 = vmatpush.bf16.msra.mxu1 %v544_v17  ;;  %v204_v63 = vunpack.c.l.b16 %v140_v50  ;;  %v207_v0 = vunpack.c.l.b16 %v143_v51  ;;  %v208_v1 = vunpack.c.l.b16 %v144_v52  ;;  %v57_v2 = vunpack.c.l.bf16 %v763_v53 }
   0xf   :  { %558 = vmatpush.bf16.msra.mxu2 %v544_v17  ;;  %559 = vmatpush.bf16.msra.mxu3 %v544_v17  ;;  %v58_v6 = vunpack.c.l.bf16 %v768_v55  ;;  %v61_v7 = vunpack.c.l.bf16 %v773_v56  ;;  %v62_v8 = vunpack.c.l.bf16 %v778_v57  ;;  %v211_v10 = vunpack.c.l.b16 %v147_v60 }
  0x10   :  { %v212_v11 = vunpack.c.l.b16 %v148_v61  ;;  %vm819_vm0 = vcmp.gt.f32.partialorder %v57_v2, 0.0  ;;  %v65_v13 = vunpack.c.l.bf16 %v795_v62  ;;  %v66_v15 = vunpack.c.l.bf16 %v801_v3 }
  0x11   :  { %vm824_vm1 = vcmp.gt.f32.partialorder %v58_v6, 0.0  ;;  %v69_v16 = vunpack.c.l.bf16 %v806_v4  ;;  %v70_v17 = vunpack.c.l.bf16 %v811_v5  ;;  %v215_v18 = vpack.c.b16 %v200_v58, %v199_v54  ;;  %vm121_vm3 = vmpackc.low %vm819_vm0, %vm819_vm0 }
  0x12   :  { %283 = vmatpush.bf16.msra.mxu0 %v543_v30  ;;  %560 = vmatpush.bf16.msra.mxu1 %v543_v30  ;;  %v217_v19 = vpack.c.b16 %v204_v63, %v203_v59  ;;  %v219_v20 = vpack.c.b16 %v208_v1, %v207_v0  ;;  %vm831_vm2 = vcmp.gt.f32.partialorder %v61_v7, 0.0  ;;  %v89_v22 = vmul.f32 0.20019531, %v57_v2  ;;  %vm122_vm5 = vmpackc.low %vm824_vm1, %vm824_vm1  ;;  %v920_v1 = vld [vmem:[%s1026_s3] ss:$0 sm:$0xff] }
  0x13   :  { %561 = vmatpush.bf16.msra.mxu2 %v543_v30  ;;  %562 = vmatpush.bf16.msra.mxu3 %v543_v30  ;;  %v90_v23 = vmul.f32 0.20019531, %v58_v6  ;;  %vm838_vm4 = vcmp.gt.f32.partialorder %v62_v8, 0.0  ;;  %v93_v25 = vmul.f32 0.20019531, %v61_v7  ;;  %v221_v26 = vpack.c.b16 %v212_v11, %v211_v10  ;;  %vm125_vm7 = vmpackc.low %vm831_vm2, %vm831_vm2 }
  0x14   :  { %v94_v27 = vmul.f32 0.20019531, %v62_v8  ;;  %vm845_vm6 = vcmp.gt.f32.partialorder %v65_v13, 0.0  ;;  %v97_v29 = vmul.f32 0.20019531, %v65_v13  ;;  %vm852_vm8 = vcmp.gt.f32.partialorder %v66_v15, 0.0  ;;  %vm126_vm9 = vmpackc.low %vm838_vm4, %vm838_vm4 }
  0x15   :  { %v98_v31 = vmul.f32 0.20019531, %v66_v15  ;;  %v101_v32 = vmul.f32 0.20019531, %v69_v16  ;;  %v102_v33 = vmul.f32 0.20019531, %v70_v17  ;;  %vm859_vm10 = vcmp.gt.f32.partialorder %v69_v16, 0.0  ;;  %vm129_vm11 = vmpackc.low %vm845_vm6, %vm845_vm6 }
  0x16   :  { %284 = vmatpush.bf16.msra.mxu0 %v542_v43  ;;  %563 = vmatpush.bf16.msra.mxu1 %v542_v43  ;;  %v105_v35 = vpack.c.bf16 %v89_v22, %v89_v22  ;;  %vm866_vm12 = vcmp.gt.f32.partialorder %v70_v17, 0.0  ;;  %v106_v37 = vpack.c.bf16 %v90_v23, %v90_v23  ;;  %v109_v38 = vpack.c.bf16 %v93_v25, %v93_v25  ;;  %vm130_vm13 = vmpackc.low %vm852_vm8, %vm852_vm8 }
  0x17   :  { %564 = vmatpush.bf16.msra.mxu2 %v542_v43  ;;  %565 = vmatpush.bf16.msra.mxu3 %v542_v43  ;;  %v110_v39 = vpack.c.bf16 %v94_v27, %v94_v27  ;;  %v113_v40 = vpack.c.bf16 %v97_v29, %v97_v29  ;;  %v114_v41 = vpack.c.bf16 %v98_v31, %v98_v31  ;;  %vm133_vm14 = vmpackc.low %vm859_vm10, %vm859_vm10 }
  0x18   :  { %v117_v42 = vpack.c.bf16 %v101_v32, %v101_v32  ;;  %v118_v43 = vpack.c.bf16 %v102_v33, %v102_v33  ;;  %vm134_vm15 = vmpackc.low %vm866_vm12, %vm866_vm12  ;;  %v137_v44 = vsel %vm121_vm3, %v763_v53, %v105_v35  ;;  %v138_v45 = vsel %vm122_vm5, %v768_v55, %v106_v37 }
  0x19   :  { %v141_v46 = vsel %vm125_vm7, %v773_v56, %v109_v38  ;;  %v142_v47 = vsel %vm126_vm9, %v778_v57, %v110_v39  ;;  %v145_v48 = vsel %vm129_vm11, %v795_v62, %v113_v40  ;;  %v201_v52 = vunpack.c.l.b16 %v137_v44  ;;  %v915_v62 = vld [vmem:[%s1025_s2] ss:$0 sm:$0xff] }
  0x1a   :  { %285 = vmatpush.bf16.msra.mxu0 %v541_v49  ;;  %566 = vmatpush.bf16.msra.mxu1 %v541_v49  ;;  %v149_v50 = vsel %vm133_vm14, %v806_v4, %v117_v42  ;;  %v150_v51 = vsel %vm134_vm15, %v811_v5, %v118_v43  ;;  %v202_v53 = vunpack.c.l.b16 %v138_v45  ;;  %v205_v54 = vunpack.c.l.b16 %v141_v46 }
  0x1b   :  { %567 = vmatpush.bf16.msra.mxu2 %v541_v49  ;;  %568 = vmatpush.bf16.msra.mxu3 %v541_v49  ;;  %v146_v49 = vsel %vm130_vm13, %v801_v3, %v114_v41  ;;  %v206_v55 = vunpack.c.l.b16 %v142_v47  ;;  %v209_v56 = vunpack.c.l.b16 %v145_v48  ;;  %v213_v57 = vunpack.c.l.b16 %v149_v50 }
  0x1c   :  { %v210_v58 = vunpack.c.l.b16 %v146_v49  ;;  %v214_v59 = vunpack.c.l.b16 %v150_v51  ;;  %v216_v60 = vpack.c.b16 %v202_v53, %v201_v52 }
  0x1d   :  { %v218_v61 = vpack.c.b16 %v206_v55, %v205_v54 }
  0x1e   :  { %286 = vmatpush.bf16.msra.mxu0 %v540_v9  ;;  %569 = vmatpush.bf16.msra.mxu1 %v540_v9  ;;  %v220_v63 = vpack.c.b16 %v210_v58, %v209_v56  ;;  %v222_v0 = vpack.c.b16 %v214_v59, %v213_v57 }
  0x1f   :  { %570 = vmatpush.bf16.msra.mxu2 %v540_v9  ;;  %571 = vmatpush.bf16.msra.mxu3 %v540_v9 }
  0x21   :  { %287 = vmatmul.bf16.vlgmr.msra.gmra.mxu0 %v215_v18  ;;  %297 = vmatmul.bf16.vlgmr.msra.gmra.mxu1 %v217_v19 }
  0x22   :  { %307 = vmatmul.bf16.vlgmr.msra.gmra.mxu2 %v219_v20  ;;  %317 = vmatmul.bf16.vlgmr.msra.gmra.mxu3 %v221_v26 }
  0x31   :  { %292 = vmatmul.bf16.gmra.mxu0 %v216_v60  ;;  %302 = vmatmul.bf16.gmra.mxu1 %v218_v61 }
  0x32   :  { %312 = vmatmul.bf16.gmra.mxu2 %v220_v63  ;;  %322 = vmatmul.bf16.gmra.mxu3 %v222_v0 }
  0x9e   :  { %v288_v2 = vpop.f32.mrf.mxu0  ;;  %v298_v3 = vpop.f32.mrf.mxu1 }
  0x9f   :  { %v383_v4 = vmul.f32 %v915_v62, %v288_v2  ;;  %v387_v5 = vmul.f32 %v915_v62, %v298_v3 }
  0xa1   :  { %v403_v6 = vadd.f32 %v920_v1, %v383_v4  ;;  %v407_v7 = vadd.f32 %v920_v1, %v387_v5 }
  0xa3   :  { %419 = vst [vmem:[%s1027_s4] sm:$0xff] %v403_v6  ;;  %v456_v35 = vmul.f32 %v403_v6, %v403_v6  ;;  %v460_v53 = vmul.f32 %v407_v7, %v407_v7 }
  0xa4   :  { %423 = vst [vmem:[%s1027_s4 + $0x20] sm:$0xff] %v407_v7 }
  0xa5   :  { %v308_v8 = vpop.f32.mrf.mxu2  ;;  %v318_v9 = vpop.f32.mrf.mxu3 }
  0xa6   :  { %v290_v10 = vpop.f32.mrf.mxu0  ;;  %v300_v11 = vpop.f32.mrf.mxu1  ;;  %v391_v12 = vmul.f32 %v915_v62, %v308_v8  ;;  %v395_v13 = vmul.f32 %v915_v62, %v318_v9 }
  0xa7   :  { %v384_v14 = vmul.f32 %v915_v62, %v290_v10  ;;  %v388_v15 = vmul.f32 %v915_v62, %v300_v11 }
  0xa8   :  { %v937_v16 = vadd.f32 %v920_v1, %v391_v12  ;;  %v942_v19 = vadd.f32 %v920_v1, %v395_v13 }
  0xa9   :  { %v404_v17 = vadd.f32 %v920_v1, %v384_v14  ;;  %v408_v18 = vadd.f32 %v920_v1, %v388_v15 }
  0xaa   :  { %427 = vst [vmem:[%s1027_s4 + $0x40] sm:$0xff] %v937_v16 }
  0xab   :  { %420 = vst [vmem:[%s1027_s4 + $0x8] sm:$0xff] %v404_v17  ;;  %v457_v32 = vmul.f32 %v404_v17, %v404_v17  ;;  %v435_v40 = vadd.f32 %v404_v17, %v403_v6  ;;  %v461_v60 = vmul.f32 %v408_v18, %v408_v18 }
  0xac   :  { %424 = vst [vmem:[%s1027_s4 + $0x28] sm:$0xff] %v408_v18 }
  0xad   :  { %v310_v20 = vpop.f32.mrf.mxu2  ;;  %431 = vst [vmem:[%s1027_s4 + $0x60] sm:$0xff] %v942_v19  ;;  %v320_v21 = vpop.f32.mrf.mxu3  ;;  %v472_v44 = vadd.f32 %v457_v32, %v456_v35 }
  0xae   :  { %v293_v22 = vpop.f32.mrf.mxu0  ;;  %v303_v23 = vpop.f32.mrf.mxu1  ;;  %v392_v24 = vmul.f32 %v915_v62, %v310_v20  ;;  %v396_v25 = vmul.f32 %v915_v62, %v320_v21  ;;  %v468_v21 = vmul.f32 %v942_v19, %v942_v19 }
  0xaf   :  { %v385_v26 = vmul.f32 %v915_v62, %v293_v22  ;;  %v389_v27 = vmul.f32 %v915_v62, %v303_v23 }
  0xb0   :  { %v412_v28 = vadd.f32 %v920_v1, %v392_v24  ;;  %v966_v31 = vadd.f32 %v920_v1, %v396_v25 }
  0xb1   :  { %v405_v29 = vadd.f32 %v920_v1, %v385_v26  ;;  %v409_v30 = vadd.f32 %v920_v1, %v389_v27 }
  0xb2   :  { %428 = vst [vmem:[%s1027_s4 + $0x48] sm:$0xff] %v412_v28  ;;  %v465_v10 = vmul.f32 %v412_v28, %v412_v28  ;;  %v469_v24 = vmul.f32 %v966_v31, %v966_v31 }
  0xb3   :  { %421 = vst [vmem:[%s1027_s4 + $0x10] sm:$0xff] %v405_v29  ;;  %v458_v41 = vmul.f32 %v405_v29, %v405_v29  ;;  %v436_v46 = vadd.f32 %v435_v40, %v405_v29  ;;  %v462_v3 = vmul.f32 %v409_v30, %v409_v30 }
  0xb4   :  { %425 = vst [vmem:[%s1027_s4 + $0x30] sm:$0xff] %v409_v30 }
  0xb5   :  { %v313_v33 = vpop.f32.mrf.mxu2  ;;  %432 = vst [vmem:[%s1027_s4 + $0x68] sm:$0xff] %v966_v31  ;;  %v323_v34 = vpop.f32.mrf.mxu3  ;;  %v473_v50 = vadd.f32 %v472_v44, %v458_v41 }
  0xb6   :  { %v295_v36 = vpop.f32.mrf.mxu0  ;;  %v305_v37 = vpop.f32.mrf.mxu1  ;;  %v393_v38 = vmul.f32 %v915_v62, %v313_v33  ;;  %v397_v39 = vmul.f32 %v915_v62, %v323_v34 }
  0xb7   :  { %v386_v42 = vmul.f32 %v915_v62, %v295_v36  ;;  %v390_v43 = vmul.f32 %v915_v62, %v305_v37  ;;  %v493_v37 = vlaneseq }
  0xb8   :  { %v413_v45 = vadd.f32 %v920_v1, %v393_v38  ;;  %v417_v49 = vadd.f32 %v920_v1, %v397_v39 }
  0xb9   :  { %v406_v47 = vadd.f32 %v920_v1, %v386_v42  ;;  %v410_v48 = vadd.f32 %v920_v1, %v390_v43  ;;  %v494_v41 = vshrl.u32 %v493_v37, 7 }
  0xba   :  { %429 = vst [vmem:[%s1027_s4 + $0x50] sm:$0xff] %v413_v45  ;;  %v466_v14 = vmul.f32 %v413_v45, %v413_v45  ;;  %v470_v27 = vmul.f32 %v417_v49, %v417_v49 }
  0xbb   :  { %422 = vst [vmem:[%s1027_s4 + $0x18] sm:$0xff] %v406_v47  ;;  %v437_v51 = vadd.f32 %v436_v46, %v406_v47  ;;  %v459_v52 = vmul.f32 %v406_v47, %v406_v47  ;;  %vm496_vm0 = vcmp.eq.s32.totalorder %v494_v41, 1  ;;  %vm495_vm1 = vcmp.eq.s32.totalorder %v494_v41, 0 }
  0xbc   :  { %426 = vst [vmem:[%s1027_s4 + $0x38] sm:$0xff] %v410_v48 }
  0xbd   :  { %v438_v54 = vadd.f32 %v437_v51, %v407_v7  ;;  %v474_v55 = vadd.f32 %v473_v50, %v459_v52  ;;  %v315_v56 = vpop.f32.mrf.mxu2  ;;  %433 = vst [vmem:[%s1027_s4 + $0x70] sm:$0xff] %v417_v49  ;;  %v325_v58 = vpop.f32.mrf.mxu3  ;;  %v463_v7 = vmul.f32 %v410_v48, %v410_v48 }
  0xbe   :  { %v394_v57 = vmul.f32 %v915_v62, %v315_v56  ;;  %v398_v59 = vmul.f32 %v915_v62, %v325_v58  ;;  %v464_v62 = vmul.f32 %v937_v16, %v937_v16 }
  0xbf   :  { %v475_v61 = vadd.f32 %v474_v55, %v460_v53  ;;  %v439_v63 = vadd.f32 %v438_v54, %v408_v18 }
  0xc0   :  { %v414_v0 = vadd.f32 %v920_v1, %v394_v57  ;;  %v418_v2 = vadd.f32 %v920_v1, %v398_v59 }
  0xc1   :  { %v440_v4 = vadd.f32 %v439_v63, %v409_v30  ;;  %v476_v5 = vadd.f32 %v475_v61, %v461_v60 }
  0xc2   :  { %430 = vst [vmem:[%s1027_s4 + $0x58] sm:$0xff] %v414_v0  ;;  %v467_v20 = vmul.f32 %v414_v0, %v414_v0  ;;  %v471_v32 = vmul.f32 %v418_v2, %v418_v2 }
  0xc3   :  { %v441_v6 = vadd.f32 %v440_v4, %v410_v48  ;;  %v477_v8 = vadd.f32 %v476_v5, %v462_v3  ;;  %434 = vst [vmem:[%s1027_s4 + $0x78] sm:$0xff] %v418_v2 }
  0xc5   :  { %v442_v9 = vadd.f32 %v441_v6, %v937_v16  ;;  %v478_v1 = vadd.f32 %v477_v8, %v463_v7 }
  0xc7   :  { %v479_v11 = vadd.f32 %v478_v1, %v464_v62  ;;  %v443_v12 = vadd.f32 %v442_v9, %v412_v28 }
  0xc9   :  { %v444_v13 = vadd.f32 %v443_v12, %v413_v45  ;;  %v480_v15 = vadd.f32 %v479_v11, %v465_v10 }
  0xcb   :  { %v481_v17 = vadd.f32 %v480_v15, %v466_v14  ;;  %v445_v18 = vadd.f32 %v444_v13, %v414_v0 }
  0xcd   :  { %v446_v22 = vadd.f32 %v445_v18, %v942_v19  ;;  %v482_v23 = vadd.f32 %v481_v17, %v467_v20 }
  0xcf   :  { %v483_v16 = vadd.f32 %v482_v23, %v468_v21  ;;  %v447_v25 = vadd.f32 %v446_v22, %v966_v31 }
  0xd1   :  { %v448_v26 = vadd.f32 %v447_v25, %v417_v49  ;;  %v484_v28 = vadd.f32 %v483_v16, %v469_v24 }
  0xd3   :  { %v485_v29 = vadd.f32 %v484_v28, %v470_v27  ;;  %v449_v30 = vadd.f32 %v448_v26, %v418_v2 }
  0xd5   :  { %v450_v33 = vrot.slane %v449_v30, 4  ;;  %v486_v34 = vadd.f32 %v485_v29, %v471_v32 }
  0xd7   :  { %v451_v35 = vadd.f32 %v450_v33, %v449_v30  ;;  %v487_v36 = vrot.slane %v486_v34, 4 }
  0xd9   :  { %v452_v38 = vrot.slane %v451_v35, 2  ;;  %v488_v19 = vadd.f32 %v487_v36, %v486_v34 }
  0xdb   :  { %v453_v39 = vadd.f32 %v452_v38, %v451_v35  ;;  %v489_v40 = vrot.slane %v488_v19, 2 }
  0xdd   :  { %v490_v42 = vadd.f32 %v489_v40, %v488_v19  ;;  %v454_v43 = vrot.slane %v453_v39, 1 }
  0xdf   :  { %v491_v44 = vrot.slane %v490_v42, 1  ;;  %v455_v45 = vadd.f32 %v454_v43, %v453_v39 }
  0xe1   :  { %v492_v31 = vadd.f32 %v491_v44, %v490_v42 }
  0xe3   :  { %v497_v46 = vsel %vm496_vm0, %v492_v31, 0.0 }
  0xe4   :  { %v498_v47 = vsel %vm495_vm1, %v455_v45, %v497_v46 }
  0xe5   :  { %499 = vst [vmem:[%s1028_s5] sm:$0xff] %v498_v47 }

// kernel: unet_256_forward.46
= control target key start
LH: loop header
LB: loop body
LE: loop exit
PB: predicated region body
PF: predicated region fallthrough
CT: control target
= control target key end

     0   :  { %s214_s0 = inlined_call_operand.vmem [shape: f32[128,128], index: 0, kind: input, shape index: {}]   ;;  %s215_s1 = inlined_call_operand.vmem [shape: f32[1,128], index: 1, kind: input, shape index: {}]   ;;  %s216_s2 = inlined_call_operand.vmem [shape: f32[1,128], index: 2, kind: input, shape index: {}]   ;;  %s217_s3 = inlined_call_operand.vmem [shape: f32[128,128], index: 3, kind: output, shape index: {}]  }
   0x1   :  { %v14_v0 = vld [vmem:[%s214_s0] sm:$0xff]  ;;  %v15_v3 = vld [vmem:[%s214_s0 + $0x8] sm:$0xff]  ;;  %v16_v6 = vld [vmem:[%s214_s0 + $0x10] sm:$0xff] }
   0x2   :  { %v90_v1 = vld [vmem:[%s215_s1] ss:$0 sm:$0xff]  ;;  %v17_v7 = vld [vmem:[%s214_s0 + $0x18] sm:$0xff]  ;;  %v19_v12 = vld [vmem:[%s214_s0 + $0x28] sm:$0xff] }
   0x3   :  { %v91_v2 = vld [vmem:[%s216_s2] ss:$0 sm:$0xff]  ;;  %v34_v4 = vmul.f32 %v90_v1, %v14_v0  ;;  %v35_v5 = vmul.f32 %v90_v1, %v15_v3  ;;  %v36_v9 = vmul.f32 %v90_v1, %v16_v6  ;;  %v37_v10 = vmul.f32 %v90_v1, %v17_v7  ;;  %v20_v13 = vld [vmem:[%s214_s0 + $0x30] sm:$0xff]  ;;  %v21_v14 = vld [vmem:[%s214_s0 + $0x38] sm:$0xff] }
   0x4   :  { %v18_v8 = vld [vmem:[%s214_s0 + $0x20] sm:$0xff]  ;;  %v39_v17 = vmul.f32 %v90_v1, %v19_v12  ;;  %v40_v18 = vmul.f32 %v90_v1, %v20_v13  ;;  %v23_v20 = vld [vmem:[%s214_s0 + $0x48] sm:$0xff]  ;;  %v41_v23 = vmul.f32 %v90_v1, %v21_v14  ;;  %v24_v24 = vld [vmem:[%s214_s0 + $0x50] sm:$0xff] }
   0x5   :  { %v38_v11 = vmul.f32 %v90_v1, %v18_v8  ;;  %v54_v15 = vadd.f32 %v91_v2, %v34_v4  ;;  %v55_v16 = vadd.f32 %v91_v2, %v35_v5  ;;  %v22_v19 = vld [vmem:[%s214_s0 + $0x40] sm:$0xff]  ;;  %v56_v21 = vadd.f32 %v91_v2, %v36_v9  ;;  %v25_v27 = vld [vmem:[%s214_s0 + $0x58] sm:$0xff]  ;;  %v27_v33 = vld [vmem:[%s214_s0 + $0x68] sm:$0xff] }
   0x6   :  { %v57_v22 = vadd.f32 %v91_v2, %v37_v10  ;;  %v42_v26 = vmul.f32 %v90_v1, %v22_v19  ;;  %v59_v28 = vadd.f32 %v91_v2, %v39_v17  ;;  %v43_v29 = vmul.f32 %v90_v1, %v23_v20  ;;  %v26_v30 = vld [vmem:[%s214_s0 + $0x60] sm:$0xff]  ;;  %v28_v36 = vld [vmem:[%s214_s0 + $0x70] sm:$0xff]  ;;  %v29_v39 = vld [vmem:[%s214_s0 + $0x78] sm:$0xff] }
   0x7   :  { %70 = vst [vmem:[%s217_s3] sm:$0xff] %v54_v15  ;;  %v58_v25 = vadd.f32 %v91_v2, %v38_v11  ;;  %v60_v31 = vadd.f32 %v91_v2, %v40_v18  ;;  %v44_v32 = vmul.f32 %v90_v1, %v24_v24  ;;  %v61_v34 = vadd.f32 %v91_v2, %v41_v23 }
   0x8   :  { %71 = vst [vmem:[%s217_s3 + $0x8] sm:$0xff] %v55_v16  ;;  %v45_v35 = vmul.f32 %v90_v1, %v25_v27  ;;  %v62_v37 = vadd.f32 %v91_v2, %v42_v26  ;;  %v46_v38 = vmul.f32 %v90_v1, %v26_v30  ;;  %v63_v40 = vadd.f32 %v91_v2, %v43_v29 }
   0x9   :  { %72 = vst [vmem:[%s217_s3 + $0x10] sm:$0xff] %v56_v21  ;;  %v47_v41 = vmul.f32 %v90_v1, %v27_v33  ;;  %v64_v42 = vadd.f32 %v91_v2, %v44_v32  ;;  %v48_v43 = vmul.f32 %v90_v1, %v28_v36  ;;  %v49_v45 = vmul.f32 %v90_v1, %v29_v39 }
   0xa   :  { %73 = vst [vmem:[%s217_s3 + $0x18] sm:$0xff] %v57_v22  ;;  %v65_v44 = vadd.f32 %v91_v2, %v45_v35  ;;  %v66_v46 = vadd.f32 %v91_v2, %v46_v38 }
   0xb   :  { %74 = vst [vmem:[%s217_s3 + $0x20] sm:$0xff] %v58_v25  ;;  %v67_v47 = vadd.f32 %v91_v2, %v47_v41  ;;  %v68_v48 = vadd.f32 %v91_v2, %v48_v43  ;;  %v69_v49 = vadd.f32 %v91_v2, %v49_v45 }
   0xc   :  { %75 = vst [vmem:[%s217_s3 + $0x28] sm:$0xff] %v59_v28 }
   0xd   :  { %76 = vst [vmem:[%s217_s3 + $0x30] sm:$0xff] %v60_v31 }
   0xe   :  { %77 = vst [vmem:[%s217_s3 + $0x38] sm:$0xff] %v61_v34 }
   0xf   :  { %78 = vst [vmem:[%s217_s3 + $0x40] sm:$0xff] %v62_v37 }
  0x10   :  { %79 = vst [vmem:[%s217_s3 + $0x48] sm:$0xff] %v63_v40 }
  0x11   :  { %80 = vst [vmem:[%s217_s3 + $0x50] sm:$0xff] %v64_v42 }
  0x12   :  { %81 = vst [vmem:[%s217_s3 + $0x58] sm:$0xff] %v65_v44 }
  0x13   :  { %82 = vst [vmem:[%s217_s3 + $0x60] sm:$0xff] %v66_v46 }
  0x14   :  { %83 = vst [vmem:[%s217_s3 + $0x68] sm:$0xff] %v67_v47 }
  0x15   :  { %84 = vst [vmem:[%s217_s3 + $0x70] sm:$0xff] %v68_v48 }
  0x16   :  { %85 = vst [vmem:[%s217_s3 + $0x78] sm:$0xff] %v69_v49 }

// kernel: unet_256_forward.48
= control target key start
LH: loop header
LB: loop body
LE: loop exit
PB: predicated region body
PF: predicated region fallthrough
CT: control target
= control target key end

     0   :  { %s94_s0 = inlined_call_operand.vmem [shape: f32[32,128], index: 0, kind: input, shape index: {}]   ;;  %s95_s1 = inlined_call_operand.vmem [shape: f32[1,128], index: 1, kind: input, shape index: {}]   ;;  %s96_s2 = inlined_call_operand.vmem [shape: f32[1,128], index: 2, kind: input, shape index: {}]   ;;  %s97_s3 = inlined_call_operand.vmem [shape: f32[32,128], index: 3, kind: output, shape index: {}]  }
   0x1   :  { %v14_v0 = vld [vmem:[%s94_s0] sm:$0xff]  ;;  %v15_v3 = vld [vmem:[%s94_s0 + $0x8] sm:$0xff]  ;;  %v16_v6 = vld [vmem:[%s94_s0 + $0x10] sm:$0xff] }
   0x2   :  { %v42_v1 = vld [vmem:[%s95_s1] ss:$0 sm:$0xff]  ;;  %v17_v7 = vld [vmem:[%s94_s0 + $0x18] sm:$0xff] }
   0x3   :  { %v43_v2 = vld [vmem:[%s96_s2] ss:$0 sm:$0xff]  ;;  %v22_v4 = vmul.f32 %v42_v1, %v14_v0  ;;  %v23_v5 = vmul.f32 %v42_v1, %v15_v3  ;;  %v24_v8 = vmul.f32 %v42_v1, %v16_v6  ;;  %v25_v9 = vmul.f32 %v42_v1, %v17_v7 }
   0x5   :  { %v30_v10 = vadd.f32 %v43_v2, %v22_v4  ;;  %v31_v11 = vadd.f32 %v43_v2, %v23_v5  ;;  %v32_v12 = vadd.f32 %v43_v2, %v24_v8  ;;  %v33_v13 = vadd.f32 %v43_v2, %v25_v9 }
   0x7   :  { %34 = vst [vmem:[%s97_s3] sm:$0xff] %v30_v10 }
   0x8   :  { %35 = vst [vmem:[%s97_s3 + $0x8] sm:$0xff] %v31_v11 }
   0x9   :  { %36 = vst [vmem:[%s97_s3 + $0x10] sm:$0xff] %v32_v12 }
   0xa   :  { %37 = vst [vmem:[%s97_s3 + $0x18] sm:$0xff] %v33_v13 }

// kernel: unet_256_forward.47
= control target key start
LH: loop header
LB: loop body
LE: loop exit
PB: predicated region body
PF: predicated region fallthrough
CT: control target
= control target key end

     0   :  { %v314_v35 = vlaneseq  ;;  %s596_s1 = inlined_call_operand.vmem [shape: bf16[256,128], index: 1, kind: input, shape index: {}]   ;;  %s597_s0 = inlined_call_operand.vmem [shape: bf16[32,256], index: 0, kind: input, shape index: {}]   ;;  %s598_s2 = inlined_call_operand.vmem [shape: f32[1,128], index: 2, kind: input, shape index: {}]   ;;  %s599_s3 = inlined_call_operand.vmem [shape: f32[1,128], index: 3, kind: input, shape index: {}]   ;;  %s600_s4 = inlined_call_operand.vmem [shape: f32[32,128], index: 4, kind: output, shape index: {0}]   ;;  %s601_s5 = inlined_call_operand.vmem [shape: f32[8,128], index: 5, kind: output, shape index: {1}]  }
   0x1   :  { %v400_v0 = vld [vmem:[%s596_s1 + $0x38] sm:$0xff]  ;;  %v399_v2 = vld [vmem:[%s596_s1 + $0x30] sm:$0xff]  ;;  %v398_v4 = vld [vmem:[%s596_s1 + $0x28] sm:$0xff] }
   0x2   :  { %v408_v1 = vld [vmem:[%s596_s1 + $0x78] sm:$0xff]  ;;  %219 = vmatpush.bf16.msra.mxu0 %v400_v0  ;;  %409 = vmatpush.bf16.msra.mxu2 %v400_v0  ;;  %v407_v3 = vld [vmem:[%s596_s1 + $0x70] sm:$0xff]  ;;  %v27_v5 = vld [vmem:[%s597_s0] sm:$0xff] }
   0x3   :  { %238 = vmatpush.bf16.msra.mxu1 %v408_v1  ;;  %417 = vmatpush.bf16.msra.mxu3 %v408_v1  ;;  %v28_v6 = vld [vmem:[%s597_s0 + $0x8] sm:$0xff]  ;;  %v29_v8 = vld [vmem:[%s597_s0 + $0x10] sm:$0xff]  ;;  %v30_v9 = vld [vmem:[%s597_s0 + $0x18] sm:$0xff]  ;;  %v31_v10 = vunpack.c.l.bf16 %v27_v5  ;;  %v32_v11 = vunpack.c.h.bf16 %v27_v5 }
   0x4   :  { %v406_v7 = vld [vmem:[%s596_s1 + $0x68] sm:$0xff]  ;;  %v33_v12 = vunpack.c.l.bf16 %v28_v6  ;;  %v34_v13 = vunpack.c.h.bf16 %v28_v6  ;;  %v397_v14 = vld [vmem:[%s596_s1 + $0x20] sm:$0xff]  ;;  %v35_v15 = vunpack.c.l.bf16 %v29_v8  ;;  %v36_v16 = vunpack.c.h.bf16 %v29_v8  ;;  %v396_v28 = vld [vmem:[%s596_s1 + $0x18] sm:$0xff] }
   0x5   :  { %v37_v17 = vunpack.c.l.bf16 %v30_v9  ;;  %v38_v18 = vunpack.c.h.bf16 %v30_v9  ;;  %v405_v19 = vld [vmem:[%s596_s1 + $0x60] sm:$0xff]  ;;  %vm493_vm0 = vcmp.gt.f32.partialorder %v31_v10, 0.0  ;;  %vm497_vm1 = vcmp.gt.f32.partialorder %v32_v11, 0.0  ;;  %v404_v33 = vld [vmem:[%s596_s1 + $0x58] sm:$0xff]  ;;  %v395_v39 = vld [vmem:[%s596_s1 + $0x10] sm:$0xff] }
   0x6   :  { %220 = vmatpush.bf16.msra.mxu0 %v399_v2  ;;  %410 = vmatpush.bf16.msra.mxu2 %v399_v2  ;;  %vm501_vm2 = vcmp.gt.f32.partialorder %v33_v12, 0.0  ;;  %vm505_vm3 = vcmp.gt.f32.partialorder %v34_v13, 0.0  ;;  %v47_v24 = vmul.f32 0.20019531, %v31_v10  ;;  %v48_v25 = vmul.f32 0.20019531, %v32_v11  ;;  %vm59_vm6 = vmpackc.low %vm497_vm1, %vm493_vm0  ;;  %v403_v43 = vld [vmem:[%s596_s1 + $0x50] sm:$0xff]  ;;  %v394_v45 = vld [vmem:[%s596_s1 + $0x8] sm:$0xff] }
   0x7   :  { %239 = vmatpush.bf16.msra.mxu1 %v407_v3  ;;  %418 = vmatpush.bf16.msra.mxu3 %v407_v3  ;;  %v49_v26 = vmul.f32 0.20019531, %v33_v12  ;;  %v50_v27 = vmul.f32 0.20019531, %v34_v13  ;;  %v51_v29 = vmul.f32 0.20019531, %v35_v15  ;;  %v52_v30 = vmul.f32 0.20019531, %v36_v16  ;;  %vm60_vm9 = vmpackc.low %vm505_vm3, %vm501_vm2  ;;  %v402_v49 = vld [vmem:[%s596_s1 + $0x48] sm:$0xff]  ;;  %v393_v54 = vld [vmem:[%s596_s1] sm:$0xff] }
   0x8   :  { %v53_v31 = vmul.f32 0.20019531, %v37_v17  ;;  %v54_v32 = vmul.f32 0.20019531, %v38_v18  ;;  %vm515_vm4 = vcmp.gt.f32.partialorder %v35_v15, 0.0  ;;  %vm519_vm5 = vcmp.gt.f32.partialorder %v36_v16, 0.0  ;;  %v401_v59 = vld [vmem:[%s596_s1 + $0x40] sm:$0xff] }
   0x9   :  { %vm527_vm7 = vcmp.gt.f32.partialorder %v37_v17, 0.0  ;;  %vm531_vm8 = vcmp.gt.f32.partialorder %v38_v18, 0.0  ;;  %v55_v38 = vpack.c.bf16 %v48_v25, %v47_v24  ;;  %v56_v40 = vpack.c.bf16 %v50_v27, %v49_v26  ;;  %vm61_vm10 = vmpackc.low %vm519_vm5, %vm515_vm4  ;;  %v425_v1 = vld [vmem:[%s598_s2] ss:$0 sm:$0xff] }
   0xa   :  { %221 = vmatpush.bf16.msra.mxu0 %v398_v4  ;;  %411 = vmatpush.bf16.msra.mxu2 %v398_v4  ;;  %v57_v41 = vpack.c.bf16 %v52_v30, %v51_v29  ;;  %v58_v42 = vpack.c.bf16 %v54_v32, %v53_v31  ;;  %vm62_vm11 = vmpackc.low %vm531_vm8, %vm527_vm7  ;;  %v426_v4 = vld [vmem:[%s599_s3] ss:$0 sm:$0xff] }
   0xb   :  { %240 = vmatpush.bf16.msra.mxu1 %v406_v7  ;;  %419 = vmatpush.bf16.msra.mxu3 %v406_v7  ;;  %v63_v44 = vsel %vm59_vm6, %v27_v5, %v55_v38  ;;  %v64_v46 = vsel %vm60_vm9, %v28_v6, %v56_v40  ;;  %v315_v40 = vshrl.u32 %v314_v35, 7 }
   0xc   :  { %v65_v47 = vsel %vm61_vm10, %v29_v8, %v57_v41  ;;  %v66_v48 = vsel %vm62_vm11, %v30_v9, %v58_v42  ;;  %v107_v50 = vunpack.c.l.b16 %v63_v44  ;;  %v109_v51 = vunpack.c.l.b16 %v64_v46 }
   0xd   :  { %v111_v52 = vunpack.c.l.b16 %v65_v47  ;;  %v113_v53 = vunpack.c.l.b16 %v66_v48  ;;  %v108_v55 = vunpack.c.h.b16 %v63_v44  ;;  %v110_v56 = vunpack.c.h.b16 %v64_v46 }
   0xe   :  { %222 = vmatpush.bf16.msra.mxu0 %v397_v14  ;;  %412 = vmatpush.bf16.msra.mxu2 %v397_v14  ;;  %v112_v57 = vunpack.c.h.b16 %v65_v47  ;;  %v114_v58 = vunpack.c.h.b16 %v66_v48  ;;  %v115_v60 = vpack.c.b16 %v109_v51, %v107_v50  ;;  %vm317_vm12 = vcmp.eq.s32.totalorder %v315_v40, 1 }
   0xf   :  { %241 = vmatpush.bf16.msra.mxu1 %v405_v19  ;;  %420 = vmatpush.bf16.msra.mxu3 %v405_v19  ;;  %v117_v61 = vpack.c.b16 %v113_v53, %v111_v52  ;;  %v116_v62 = vpack.c.b16 %v110_v56, %v108_v55  ;;  %vm316_vm13 = vcmp.eq.s32.totalorder %v315_v40, 0 }
  0x10   :  { %v118_v63 = vpack.c.b16 %v114_v58, %v112_v57 }
  0x12   :  { %223 = vmatpush.bf16.msra.mxu0 %v396_v28  ;;  %413 = vmatpush.bf16.msra.mxu2 %v396_v28 }
  0x13   :  { %242 = vmatpush.bf16.msra.mxu1 %v404_v33  ;;  %421 = vmatpush.bf16.msra.mxu3 %v404_v33 }
  0x16   :  { %224 = vmatpush.bf16.msra.mxu0 %v395_v39  ;;  %414 = vmatpush.bf16.msra.mxu2 %v395_v39 }
  0x17   :  { %243 = vmatpush.bf16.msra.mxu1 %v403_v43  ;;  %422 = vmatpush.bf16.msra.mxu3 %v403_v43 }
  0x1a   :  { %225 = vmatpush.bf16.msra.mxu0 %v394_v45  ;;  %415 = vmatpush.bf16.msra.mxu2 %v394_v45 }
  0x1b   :  { %244 = vmatpush.bf16.msra.mxu1 %v402_v49  ;;  %423 = vmatpush.bf16.msra.mxu3 %v402_v49 }
  0x1e   :  { %226 = vmatpush.bf16.msra.mxu0 %v393_v54  ;;  %416 = vmatpush.bf16.msra.mxu2 %v393_v54 }
  0x1f   :  { %245 = vmatpush.bf16.msra.mxu1 %v401_v59  ;;  %424 = vmatpush.bf16.msra.mxu3 %v401_v59 }
  0x21   :  { %227 = vmatmul.bf16.vlgmr.msra.gmra.mxu0 %v115_v60  ;;  %232 = vmatmul.bf16.vlgmr.msra.gmra.mxu2 %v117_v61 }
  0x22   :  { %246 = vmatmul.bf16.vlgmr.msra.gmra.mxu1 %v116_v62  ;;  %251 = vmatmul.bf16.vlgmr.msra.gmra.mxu3 %v118_v63 }
  0x9e   :  { %v228_v0 = vpop.f32.mrf.mxu0 }
  0x9f   :  { %v247_v2 = vpop.f32.mrf.mxu1 }
  0xa0   :  { %v248_v3 = vadd.f32 %v247_v2, %v228_v0 }
  0xa2   :  { %v276_v5 = vmul.f32 %v425_v1, %v248_v3 }
  0xa4   :  { %v284_v6 = vadd.f32 %v426_v4, %v276_v5  ;;  %v233_v7 = vpop.f32.mrf.mxu2 }
  0xa5   :  { %v252_v8 = vpop.f32.mrf.mxu3 }
  0xa6   :  { %288 = vst [vmem:[%s600_s4] sm:$0xff] %v284_v6  ;;  %v253_v9 = vadd.f32 %v252_v8, %v233_v7  ;;  %v230_v10 = vpop.f32.mrf.mxu0  ;;  %v301_v19 = vmul.f32 %v284_v6, %v284_v6 }
  0xa7   :  { %v249_v11 = vpop.f32.mrf.mxu1 }
  0xa8   :  { %v278_v12 = vmul.f32 %v425_v1, %v253_v9  ;;  %v250_v13 = vadd.f32 %v249_v11, %v230_v10 }
  0xaa   :  { %v286_v14 = vadd.f32 %v426_v4, %v278_v12  ;;  %v277_v15 = vmul.f32 %v425_v1, %v250_v13 }
  0xac   :  { %290 = vst [vmem:[%s600_s4 + $0x10] sm:$0xff] %v286_v14  ;;  %v285_v16 = vadd.f32 %v426_v4, %v277_v15  ;;  %v235_v17 = vpop.f32.mrf.mxu2  ;;  %v303_v25 = vmul.f32 %v286_v14, %v286_v14 }
  0xad   :  { %v254_v18 = vpop.f32.mrf.mxu3 }
  0xae   :  { %289 = vst [vmem:[%s600_s4 + $0x8] sm:$0xff] %v285_v16  ;;  %v292_v20 = vadd.f32 %v285_v16, %v284_v6  ;;  %v302_v21 = vmul.f32 %v285_v16, %v285_v16  ;;  %v255_v22 = vadd.f32 %v254_v18, %v235_v17 }
  0xb0   :  { %v305_v23 = vadd.f32 %v302_v21, %v301_v19  ;;  %v279_v24 = vmul.f32 %v425_v1, %v255_v22  ;;  %v293_v27 = vadd.f32 %v292_v20, %v286_v14 }
  0xb2   :  { %v287_v26 = vadd.f32 %v426_v4, %v279_v24  ;;  %v306_v30 = vadd.f32 %v305_v23, %v303_v25 }
  0xb4   :  { %291 = vst [vmem:[%s600_s4 + $0x18] sm:$0xff] %v287_v26  ;;  %v294_v28 = vadd.f32 %v293_v27, %v287_v26  ;;  %v304_v29 = vmul.f32 %v287_v26, %v287_v26 }
  0xb6   :  { %v295_v31 = vrot.slane %v294_v28, 4  ;;  %v307_v32 = vadd.f32 %v306_v30, %v304_v29 }
  0xb8   :  { %v296_v33 = vadd.f32 %v295_v31, %v294_v28  ;;  %v308_v34 = vrot.slane %v307_v32, 4 }
  0xba   :  { %v297_v36 = vrot.slane %v296_v33, 2  ;;  %v309_v37 = vadd.f32 %v308_v34, %v307_v32 }
  0xbc   :  { %v298_v38 = vadd.f32 %v297_v36, %v296_v33  ;;  %v310_v39 = vrot.slane %v309_v37, 2 }
  0xbe   :  { %v311_v41 = vadd.f32 %v310_v39, %v309_v37  ;;  %v299_v42 = vrot.slane %v298_v38, 1 }
  0xc0   :  { %v312_v43 = vrot.slane %v311_v41, 1  ;;  %v300_v45 = vadd.f32 %v299_v42, %v298_v38 }
  0xc2   :  { %v313_v44 = vadd.f32 %v312_v43, %v311_v41 }
  0xc4   :  { %v318_v46 = vsel %vm317_vm12, %v313_v44, 0.0 }
  0xc5   :  { %v319_v47 = vsel %vm316_vm13, %v300_v45, %v318_v46 }
  0xc6   :  { %320 = vst [vmem:[%s601_s5] sm:$0xff] %v319_v47 }

// kernel: unet_256_forward.50
= control target key start
LH: loop header
LB: loop body
LE: loop exit
PB: predicated region body
PF: predicated region fallthrough
CT: control target
= control target key end

     0   :  { %s74_s0 = inlined_call_operand.vmem [shape: f32[16,128], index: 0, kind: input, shape index: {}]   ;;  %s75_s1 = inlined_call_operand.vmem [shape: f32[1,128], index: 1, kind: input, shape index: {}]   ;;  %s76_s2 = inlined_call_operand.vmem [shape: f32[1,128], index: 2, kind: input, shape index: {}]   ;;  %s77_s3 = inlined_call_operand.vmem [shape: f32[16,128], index: 3, kind: output, shape index: {}]  }
   0x1   :  { %v14_v0 = vld [vmem:[%s74_s0] sm:$0xff]  ;;  %v15_v3 = vld [vmem:[%s74_s0 + $0x8] sm:$0xff] }
   0x2   :  { %v34_v1 = vld [vmem:[%s75_s1] ss:$0 sm:$0xff] }
   0x3   :  { %v35_v2 = vld [vmem:[%s76_s2] ss:$0 sm:$0xff]  ;;  %v20_v4 = vmul.f32 %v34_v1, %v14_v0  ;;  %v21_v5 = vmul.f32 %v34_v1, %v15_v3 }
   0x5   :  { %v26_v6 = vadd.f32 %v35_v2, %v20_v4  ;;  %v27_v7 = vadd.f32 %v35_v2, %v21_v5 }
   0x7   :  { %28 = vst [vmem:[%s77_s3] sm:$0xff] %v26_v6 }
   0x8   :  { %29 = vst [vmem:[%s77_s3 + $0x8] sm:$0xff] %v27_v7 }

// kernel: unet_256_forward.49
= control target key start
LH: loop header
LB: loop body
LE: loop exit
PB: predicated region body
PF: predicated region fallthrough
CT: control target
= control target key end

     0   :  { %s821_s1 = inlined_call_operand.vmem [shape: bf16[512,128], index: 1, kind: input, shape index: {}]   ;;  %s822_s0 = inlined_call_operand.vmem [shape: bf16[16,512], index: 0, kind: input, shape index: {}]   ;;  %s823_s2 = inlined_call_operand.vmem [shape: f32[1,128], index: 2, kind: input, shape index: {}]   ;;  %s824_s3 = inlined_call_operand.vmem [shape: f32[1,128], index: 3, kind: input, shape index: {}]   ;;  %s825_s4 = inlined_call_operand.vmem [shape: f32[16,128], index: 4, kind: output, shape index: {0}]   ;;  %s826_s5 = inlined_call_operand.vmem [shape: f32[8,128], index: 5, kind: output, shape index: {1}]  }
   0x1   :  { %v588_v0 = vld [vmem:[%s821_s1 + $0x38] sm:$0xff]  ;;  %v587_v4 = vld [vmem:[%s821_s1 + $0x30] sm:$0xff]  ;;  %v586_v8 = vld [vmem:[%s821_s1 + $0x28] sm:$0xff] }
   0x2   :  { %v596_v1 = vld [vmem:[%s821_s1 + $0x78] sm:$0xff]  ;;  %343 = vmatpush.bf16.msra.mxu0 %v588_v0  ;;  %v595_v5 = vld [vmem:[%s821_s1 + $0x70] sm:$0xff]  ;;  %v594_v9 = vld [vmem:[%s821_s1 + $0x68] sm:$0xff] }
   0x3   :  { %v604_v2 = vld [vmem:[%s821_s1 + $0xb8] sm:$0xff]  ;;  %357 = vmatpush.bf16.msra.mxu1 %v596_v1  ;;  %v603_v6 = vld [vmem:[%s821_s1 + $0xb0] sm:$0xff]  ;;  %v602_v10 = vld [vmem:[%s821_s1 + $0xa8] sm:$0xff] }
   0x4   :  { %v612_v3 = vld [vmem:[%s821_s1 + $0xf8] sm:$0xff]  ;;  %371 = vmatpush.bf16.msra.mxu2 %v604_v2  ;;  %v611_v7 = vld [vmem:[%s821_s1 + $0xf0] sm:$0xff]  ;;  %v610_v11 = vld [vmem:[%s821_s1 + $0xe8] sm:$0xff] }
   0x5   :  { %385 = vmatpush.bf16.msra.mxu3 %v612_v3  ;;  %v585_v12 = vld [vmem:[%s821_s1 + $0x20] sm:$0xff]  ;;  %v27_v17 = vld [vmem:[%s822_s0 + $0x10] sm:$0xff]  ;;  %v26_v20 = vld [vmem:[%s822_s0 + $0x8] sm:$0xff] }
   0x6   :  { %344 = vmatpush.bf16.msra.mxu0 %v587_v4  ;;  %v593_v13 = vld [vmem:[%s821_s1 + $0x60] sm:$0xff]  ;;  %v33_v21 = vunpack.c.l.bf16 %v27_v17  ;;  %v34_v22 = vunpack.c.h.bf16 %v27_v17  ;;  %v28_v23 = vld [vmem:[%s822_s0 + $0x18] sm:$0xff]  ;;  %v31_v24 = vunpack.c.l.bf16 %v26_v20  ;;  %v32_v25 = vunpack.c.h.bf16 %v26_v20  ;;  %v583_v47 = vld [vmem:[%s821_s1 + $0x10] sm:$0xff] }
   0x7   :  { %358 = vmatpush.bf16.msra.mxu1 %v595_v5  ;;  %v601_v14 = vld [vmem:[%s821_s1 + $0xa0] sm:$0xff]  ;;  %v584_v28 = vld [vmem:[%s821_s1 + $0x18] sm:$0xff]  ;;  %v35_v38 = vunpack.c.l.bf16 %v28_v23  ;;  %v36_v39 = vunpack.c.h.bf16 %v28_v23  ;;  %v591_v48 = vld [vmem:[%s821_s1 + $0x50] sm:$0xff] }
   0x8   :  { %372 = vmatpush.bf16.msra.mxu2 %v603_v6  ;;  %v25_v15 = vld [vmem:[%s822_s0] sm:$0xff]  ;;  %v592_v29 = vld [vmem:[%s821_s1 + $0x58] sm:$0xff]  ;;  %v49_v32 = vmul.f32 0.20019531, %v33_v21  ;;  %v50_v33 = vmul.f32 0.20019531, %v34_v22  ;;  %vm725_vm2 = vcmp.gt.f32.partialorder %v33_v21, 0.0  ;;  %vm729_vm3 = vcmp.gt.f32.partialorder %v34_v22, 0.0 }
   0x9   :  { %386 = vmatpush.bf16.msra.mxu3 %v611_v7  ;;  %v609_v16 = vld [vmem:[%s821_s1 + $0xe0] sm:$0xff]  ;;  %v29_v18 = vunpack.c.l.bf16 %v25_v15  ;;  %v30_v19 = vunpack.c.h.bf16 %v25_v15  ;;  %v600_v34 = vld [vmem:[%s821_s1 + $0x98] sm:$0xff]  ;;  %vm733_vm4 = vcmp.gt.f32.partialorder %v31_v24, 0.0  ;;  %vm737_vm5 = vcmp.gt.f32.partialorder %v32_v25, 0.0  ;;  %vm59_vm9 = vmpackc.low %vm729_vm3, %vm725_vm2 }
   0xa   :  { %345 = vmatpush.bf16.msra.mxu0 %v586_v8  ;;  %v608_v35 = vld [vmem:[%s821_s1 + $0xd8] sm:$0xff]  ;;  %v47_v42 = vmul.f32 0.20019531, %v31_v24  ;;  %v48_v43 = vmul.f32 0.20019531, %v32_v25  ;;  %vm745_vm7 = vcmp.gt.f32.partialorder %v35_v38, 0.0  ;;  %vm749_vm8 = vcmp.gt.f32.partialorder %v36_v39, 0.0  ;;  %v599_v52 = vld [vmem:[%s821_s1 + $0x90] sm:$0xff]  ;;  %vm58_vm10 = vmpackc.low %vm737_vm5, %vm733_vm4 }
   0xb   :  { %359 = vmatpush.bf16.msra.mxu1 %v594_v9  ;;  %vm705_vm0 = vcmp.gt.f32.partialorder %v29_v18, 0.0  ;;  %vm709_vm1 = vcmp.gt.f32.partialorder %v30_v19, 0.0  ;;  %v45_v30 = vmul.f32 0.20019531, %v29_v18  ;;  %v46_v31 = vmul.f32 0.20019531, %v30_v19  ;;  %v607_v53 = vld [vmem:[%s821_s1 + $0xd0] sm:$0xff]  ;;  %vm60_vm11 = vmpackc.low %vm749_vm8, %vm745_vm7  ;;  %v582_v56 = vld [vmem:[%s821_s1 + $0x8] sm:$0xff] }
   0xc   :  { %373 = vmatpush.bf16.msra.mxu2 %v602_v10  ;;  %vm57_vm6 = vmpackc.low %vm709_vm1, %vm705_vm0  ;;  %v51_v46 = vmul.f32 0.20019531, %v35_v38  ;;  %v55_v50 = vpack.c.bf16 %v50_v33, %v49_v32  ;;  %v52_v51 = vmul.f32 0.20019531, %v36_v39  ;;  %v54_v54 = vpack.c.bf16 %v48_v43, %v47_v42  ;;  %v590_v57 = vld [vmem:[%s821_s1 + $0x48] sm:$0xff]  ;;  %v581_v4 = vld [vmem:[%s821_s1] sm:$0xff] }
   0xd   :  { %387 = vmatpush.bf16.msra.mxu3 %v610_v11  ;;  %v53_v49 = vpack.c.bf16 %v46_v31, %v45_v30  ;;  %v598_v60 = vld [vmem:[%s821_s1 + $0x88] sm:$0xff]  ;;  %v589_v5 = vld [vmem:[%s821_s1 + $0x40] sm:$0xff]  ;;  %v438_v43 = vlaneseq }
   0xe   :  { %346 = vmatpush.bf16.msra.mxu0 %v585_v12  ;;  %v56_v55 = vpack.c.bf16 %v52_v51, %v51_v46  ;;  %v63_v59 = vsel %vm59_vm9, %v27_v17, %v55_v50  ;;  %v606_v61 = vld [vmem:[%s821_s1 + $0xc8] sm:$0xff]  ;;  %v62_v62 = vsel %vm58_vm10, %v26_v20, %v54_v54  ;;  %v597_v10 = vld [vmem:[%s821_s1 + $0x80] sm:$0xff] }
   0xf   :  { %360 = vmatpush.bf16.msra.mxu1 %v593_v13  ;;  %v61_v58 = vsel %vm57_vm6, %v25_v15, %v53_v49  ;;  %v139_v1 = vunpack.c.l.b16 %v63_v59  ;;  %v140_v3 = vunpack.c.h.b16 %v63_v59  ;;  %v137_v6 = vunpack.c.l.b16 %v62_v62  ;;  %v605_v11 = vld [vmem:[%s821_s1 + $0xc0] sm:$0xff] }
  0x10   :  { %374 = vmatpush.bf16.msra.mxu2 %v601_v14  ;;  %v64_v63 = vsel %vm60_vm11, %v28_v23, %v56_v55  ;;  %v135_v0 = vunpack.c.l.b16 %v61_v58  ;;  %v136_v2 = vunpack.c.h.b16 %v61_v58  ;;  %v138_v8 = vunpack.c.h.b16 %v62_v62  ;;  %v613_v22 = vld [vmem:[%s823_s2] ss:$0 sm:$0xff] }
  0x11   :  { %388 = vmatpush.bf16.msra.mxu3 %v609_v16  ;;  %v141_v7 = vunpack.c.l.b16 %v64_v63  ;;  %v142_v9 = vunpack.c.h.b16 %v64_v63  ;;  %v614_v24 = vld [vmem:[%s824_s3] ss:$0 sm:$0xff] }
  0x12   :  { %347 = vmatpush.bf16.msra.mxu0 %v584_v28  ;;  %v143_v12 = vpack.c.b16 %v139_v1, %v135_v0  ;;  %v144_v13 = vpack.c.b16 %v140_v3, %v136_v2 }
  0x13   :  { %361 = vmatpush.bf16.msra.mxu1 %v592_v29  ;;  %v145_v14 = vpack.c.b16 %v141_v7, %v137_v6  ;;  %v146_v15 = vpack.c.b16 %v142_v9, %v138_v8 }
  0x14   :  { %375 = vmatpush.bf16.msra.mxu2 %v600_v34 }
  0x15   :  { %389 = vmatpush.bf16.msra.mxu3 %v608_v35 }
  0x16   :  { %348 = vmatpush.bf16.msra.mxu0 %v583_v47 }
  0x17   :  { %362 = vmatpush.bf16.msra.mxu1 %v591_v48  ;;  %v439_v48 = vshrl.u32 %v438_v43, 7 }
  0x18   :  { %376 = vmatpush.bf16.msra.mxu2 %v599_v52 }
  0x19   :  { %390 = vmatpush.bf16.msra.mxu3 %v607_v53  ;;  %vm441_vm12 = vcmp.eq.s32.totalorder %v439_v48, 1  ;;  %vm440_vm13 = vcmp.eq.s32.totalorder %v439_v48, 0 }
  0x1a   :  { %349 = vmatpush.bf16.msra.mxu0 %v582_v56 }
  0x1b   :  { %363 = vmatpush.bf16.msra.mxu1 %v590_v57 }
  0x1c   :  { %377 = vmatpush.bf16.msra.mxu2 %v598_v60 }
  0x1d   :  { %391 = vmatpush.bf16.msra.mxu3 %v606_v61 }
  0x1e   :  { %350 = vmatpush.bf16.msra.mxu0 %v581_v4 }
  0x1f   :  { %364 = vmatpush.bf16.msra.mxu1 %v589_v5 }
  0x20   :  { %378 = vmatpush.bf16.msra.mxu2 %v597_v10 }
  0x21   :  { %392 = vmatpush.bf16.msra.mxu3 %v605_v11  ;;  %351 = vmatmul.bf16.vlgmr.msra.gmra.mxu0 %v143_v12 }
  0x22   :  { %365 = vmatmul.bf16.vlgmr.msra.gmra.mxu1 %v144_v13 }
  0x23   :  { %379 = vmatmul.bf16.vlgmr.msra.gmra.mxu2 %v145_v14 }
  0x24   :  { %393 = vmatmul.bf16.vlgmr.msra.gmra.mxu3 %v146_v15 }
  0x9e   :  { %v352_v16 = vpop.f32.mrf.mxu0 }
  0x9f   :  { %v366_v17 = vpop.f32.mrf.mxu1 }
  0xa0   :  { %v367_v18 = vadd.f32 %v366_v17, %v352_v16 }
  0xa6   :  { %v380_v19 = vpop.f32.mrf.mxu2  ;;  %v354_v25 = vpop.f32.mrf.mxu0 }
  0xa7   :  { %v394_v20 = vpop.f32.mrf.mxu3  ;;  %v381_v21 = vadd.f32 %v380_v19, %v367_v18  ;;  %v368_v26 = vpop.f32.mrf.mxu1 }
  0xa8   :  { %v369_v29 = vadd.f32 %v368_v26, %v354_v25 }
  0xa9   :  { %v395_v23 = vadd.f32 %v394_v20, %v381_v21 }
  0xab   :  { %v412_v27 = vmul.f32 %v613_v22, %v395_v23 }
  0xad   :  { %v418_v28 = vadd.f32 %v614_v24, %v412_v27 }
  0xae   :  { %v382_v30 = vpop.f32.mrf.mxu2 }
  0xaf   :  { %420 = vst [vmem:[%s825_s4] sm:$0xff] %v418_v28  ;;  %v383_v31 = vadd.f32 %v382_v30, %v369_v29  ;;  %v396_v32 = vpop.f32.mrf.mxu3  ;;  %v429_v36 = vmul.f32 %v418_v28, %v418_v28 }
  0xb1   :  { %v397_v33 = vadd.f32 %v396_v32, %v383_v31 }
  0xb3   :  { %v413_v34 = vmul.f32 %v613_v22, %v397_v33 }
  0xb5   :  { %v419_v35 = vadd.f32 %v614_v24, %v413_v34 }
  0xb7   :  { %421 = vst [vmem:[%s825_s4 + $0x8] sm:$0xff] %v419_v35  ;;  %v422_v37 = vadd.f32 %v419_v35, %v418_v28  ;;  %v430_v38 = vmul.f32 %v419_v35, %v419_v35 }
  0xb9   :  { %v423_v39 = vrot.slane %v422_v37, 4  ;;  %v431_v40 = vadd.f32 %v430_v38, %v429_v36 }
  0xbb   :  { %v424_v41 = vadd.f32 %v423_v39, %v422_v37  ;;  %v432_v42 = vrot.slane %v431_v40, 4 }
  0xbd   :  { %v425_v44 = vrot.slane %v424_v41, 2  ;;  %v433_v45 = vadd.f32 %v432_v42, %v431_v40 }
  0xbf   :  { %v426_v46 = vadd.f32 %v425_v44, %v424_v41  ;;  %v434_v47 = vrot.slane %v433_v45, 2 }
  0xc1   :  { %v435_v49 = vadd.f32 %v434_v47, %v433_v45  ;;  %v427_v50 = vrot.slane %v426_v46, 1 }
  0xc3   :  { %v436_v51 = vrot.slane %v435_v49, 1  ;;  %v428_v53 = vadd.f32 %v427_v50, %v426_v46 }
  0xc5   :  { %v437_v52 = vadd.f32 %v436_v51, %v435_v49 }
  0xc7   :  { %v442_v54 = vsel %vm441_vm12, %v437_v52, 0.0 }
  0xc8   :  { %v443_v55 = vsel %vm440_vm13, %v428_v53, %v442_v54 }
  0xc9   :  { %444 = vst [vmem:[%s826_s5] sm:$0xff] %v443_v55 }

// kernel: unet_256_forward.53
= control target key start
LH: loop header
LB: loop body
LE: loop exit
PB: predicated region body
PF: predicated region fallthrough
CT: control target
= control target key end

     0   :  { %v234_v47 = vlaneseq  ;;  %s430_s1 = inlined_call_operand.vmem [shape: bf16[256,128], index: 1, kind: input, shape index: {}]   ;;  %s431_s0 = inlined_call_operand.vmem [shape: bf16[16,256], index: 0, kind: input, shape index: {}]   ;;  %s432_s2 = inlined_call_operand.vmem [shape: f32[1,128], index: 2, kind: input, shape index: {}]   ;;  %s433_s3 = inlined_call_operand.vmem [shape: f32[1,128], index: 3, kind: input, shape index: {}]   ;;  %s434_s4 = inlined_call_operand.vmem [shape: f32[16,128], index: 4, kind: output, shape index: {0}]   ;;  %s435_s5 = inlined_call_operand.vmem [shape: f32[8,128], index: 5, kind: output, shape index: {1}]  }
   0x1   :  { %v320_v0 = vld [vmem:[%s430_s1 + $0x38] sm:$0xff]  ;;  %v319_v2 = vld [vmem:[%s430_s1 + $0x30] sm:$0xff]  ;;  %v318_v4 = vld [vmem:[%s430_s1 + $0x28] sm:$0xff] }
   0x2   :  { %v328_v1 = vld [vmem:[%s430_s1 + $0x78] sm:$0xff]  ;;  %167 = vmatpush.bf16.msra.mxu0 %v320_v0  ;;  %v327_v3 = vld [vmem:[%s430_s1 + $0x70] sm:$0xff]  ;;  %v326_v5 = vld [vmem:[%s430_s1 + $0x68] sm:$0xff]  ;;  %v235_v52 = vshrl.u32 %v234_v47, 7 }
   0x3   :  { %181 = vmatpush.bf16.msra.mxu1 %v328_v1  ;;  %v317_v6 = vld [vmem:[%s430_s1 + $0x20] sm:$0xff]  ;;  %v316_v8 = vld [vmem:[%s430_s1 + $0x18] sm:$0xff]  ;;  %v315_v10 = vld [vmem:[%s430_s1 + $0x10] sm:$0xff] }
   0x4   :  { %v325_v7 = vld [vmem:[%s430_s1 + $0x60] sm:$0xff]  ;;  %v324_v9 = vld [vmem:[%s430_s1 + $0x58] sm:$0xff]  ;;  %v323_v11 = vld [vmem:[%s430_s1 + $0x50] sm:$0xff]  ;;  %vm237_vm0 = vcmp.eq.s32.totalorder %v235_v52, 1  ;;  %vm236_vm1 = vcmp.eq.s32.totalorder %v235_v52, 0 }
   0x5   :  { %v25_v12 = vld [vmem:[%s431_s0] sm:$0xff]  ;;  %v26_v13 = vld [vmem:[%s431_s0 + $0x8] sm:$0xff] }
   0x6   :  { %168 = vmatpush.bf16.msra.mxu0 %v319_v2  ;;  %v27_v14 = vunpack.c.l.bf16 %v25_v12  ;;  %v29_v15 = vunpack.c.l.bf16 %v26_v13  ;;  %v28_v16 = vunpack.c.h.bf16 %v25_v12  ;;  %v30_v17 = vunpack.c.h.bf16 %v26_v13  ;;  %v314_v18 = vld [vmem:[%s430_s1 + $0x8] sm:$0xff]  ;;  %v313_v24 = vld [vmem:[%s430_s1] sm:$0xff] }
   0x7   :  { %182 = vmatpush.bf16.msra.mxu1 %v327_v3  ;;  %v322_v19 = vld [vmem:[%s430_s1 + $0x48] sm:$0xff]  ;;  %v321_v25 = vld [vmem:[%s430_s1 + $0x40] sm:$0xff] }
   0x8   :  { %v31_v20 = vmax.f32 %v27_v14, 0.0  ;;  %v33_v21 = vmax.f32 %v29_v15, 0.0  ;;  %v32_v22 = vmax.f32 %v28_v16, 0.0  ;;  %v34_v23 = vmax.f32 %v30_v17, 0.0  ;;  %v329_v28 = vld [vmem:[%s432_s2] ss:$0 sm:$0xff] }
   0x9   :  { %v330_v32 = vld [vmem:[%s433_s3] ss:$0 sm:$0xff] }
   0xa   :  { %169 = vmatpush.bf16.msra.mxu0 %v318_v4  ;;  %v35_v26 = vpack.c.bf16 %v33_v21, %v31_v20  ;;  %v36_v27 = vpack.c.bf16 %v34_v23, %v32_v22 }
   0xb   :  { %183 = vmatpush.bf16.msra.mxu1 %v326_v5 }
   0xe   :  { %170 = vmatpush.bf16.msra.mxu0 %v317_v6 }
   0xf   :  { %184 = vmatpush.bf16.msra.mxu1 %v325_v7 }
  0x12   :  { %171 = vmatpush.bf16.msra.mxu0 %v316_v8 }
  0x13   :  { %185 = vmatpush.bf16.msra.mxu1 %v324_v9 }
  0x16   :  { %172 = vmatpush.bf16.msra.mxu0 %v315_v10 }
  0x17   :  { %186 = vmatpush.bf16.msra.mxu1 %v323_v11 }
  0x1a   :  { %173 = vmatpush.bf16.msra.mxu0 %v314_v18 }
  0x1b   :  { %187 = vmatpush.bf16.msra.mxu1 %v322_v19 }
  0x1e   :  { %174 = vmatpush.bf16.msra.mxu0 %v313_v24 }
  0x1f   :  { %188 = vmatpush.bf16.msra.mxu1 %v321_v25 }
  0x21   :  { %175 = vmatmul.bf16.vlgmr.msra.gmra.mxu0 %v35_v26 }
  0x22   :  { %189 = vmatmul.bf16.vlgmr.msra.gmra.mxu1 %v36_v27 }
  0x9e   :  { %v176_v29 = vpop.f32.mrf.mxu0 }
  0x9f   :  { %v190_v30 = vpop.f32.mrf.mxu1 }
  0xa0   :  { %v191_v31 = vadd.f32 %v190_v30, %v176_v29 }
  0xa2   :  { %v208_v33 = vmul.f32 %v329_v28, %v191_v31 }
  0xa4   :  { %v214_v34 = vadd.f32 %v330_v32, %v208_v33 }
  0xa6   :  { %216 = vst [vmem:[%s434_s4] sm:$0xff] %v214_v34  ;;  %v178_v35 = vpop.f32.mrf.mxu0  ;;  %v225_v40 = vmul.f32 %v214_v34, %v214_v34 }
  0xa7   :  { %v192_v36 = vpop.f32.mrf.mxu1 }
  0xa8   :  { %v193_v37 = vadd.f32 %v192_v36, %v178_v35 }
  0xaa   :  { %v209_v38 = vmul.f32 %v329_v28, %v193_v37 }
  0xac   :  { %v215_v39 = vadd.f32 %v330_v32, %v209_v38 }
  0xae   :  { %217 = vst [vmem:[%s434_s4 + $0x8] sm:$0xff] %v215_v39  ;;  %v218_v41 = vadd.f32 %v215_v39, %v214_v34  ;;  %v226_v42 = vmul.f32 %v215_v39, %v215_v39 }
  0xb0   :  { %v219_v43 = vrot.slane %v218_v41, 4  ;;  %v227_v44 = vadd.f32 %v226_v42, %v225_v40 }
  0xb2   :  { %v220_v45 = vadd.f32 %v219_v43, %v218_v41  ;;  %v228_v46 = vrot.slane %v227_v44, 4 }
  0xb4   :  { %v221_v48 = vrot.slane %v220_v45, 2  ;;  %v229_v49 = vadd.f32 %v228_v46, %v227_v44 }
  0xb6   :  { %v222_v50 = vadd.f32 %v221_v48, %v220_v45  ;;  %v230_v51 = vrot.slane %v229_v49, 2 }
  0xb8   :  { %v231_v53 = vadd.f32 %v230_v51, %v229_v49  ;;  %v223_v54 = vrot.slane %v222_v50, 1 }
  0xba   :  { %v232_v55 = vrot.slane %v231_v53, 1  ;;  %v224_v57 = vadd.f32 %v223_v54, %v222_v50 }
  0xbc   :  { %v233_v56 = vadd.f32 %v232_v55, %v231_v53 }
  0xbe   :  { %v238_v58 = vsel %vm237_vm0, %v233_v56, 0.0 }
  0xbf   :  { %v239_v59 = vsel %vm236_vm1, %v224_v57, %v238_v58 }
  0xc0   :  { %240 = vst [vmem:[%s435_s5] sm:$0xff] %v239_v59 }

// kernel: unet_256_forward.51
= control target key start
LH: loop header
LB: loop body
LE: loop exit
PB: predicated region body
PF: predicated region fallthrough
CT: control target
= control target key end

     0   :  { %s1497_s1 = inlined_call_operand.vmem [shape: bf16[1024,128], index: 1, kind: input, shape index: {}]   ;;  %s1498_s0 = inlined_call_operand.vmem [shape: bf16[16,1024], index: 0, kind: input, shape index: {}]   ;;  %s1499_s2 = inlined_call_operand.vmem [shape: f32[1,128], index: 2, kind: input, shape index: {}]   ;;  %s1500_s3 = inlined_call_operand.vmem [shape: f32[1,128], index: 3, kind: input, shape index: {}]   ;;  %s1501_s4 = inlined_call_operand.vmem [shape: f32[16,128], index: 4, kind: output, shape index: {}]  }
   0x1   :  { %v1059_v0 = vld [vmem:[%s1497_s1 + $0x38] sm:$0xff]  ;;  %v1058_v4 = vld [vmem:[%s1497_s1 + $0x30] sm:$0xff]  ;;  %v1057_v8 = vld [vmem:[%s1497_s1 + $0x28] sm:$0xff] }
   0x2   :  { %v1067_v1 = vld [vmem:[%s1497_s1 + $0x78] sm:$0xff]  ;;  %657 = vmatpush.bf16.msra.mxu0 %v1059_v0  ;;  %v1066_v5 = vld [vmem:[%s1497_s1 + $0x70] sm:$0xff]  ;;  %v1065_v9 = vld [vmem:[%s1497_s1 + $0x68] sm:$0xff] }
   0x3   :  { %v1075_v2 = vld [vmem:[%s1497_s1 + $0xb8] sm:$0xff]  ;;  %671 = vmatpush.bf16.msra.mxu1 %v1067_v1  ;;  %v1074_v6 = vld [vmem:[%s1497_s1 + $0xb0] sm:$0xff]  ;;  %v1073_v10 = vld [vmem:[%s1497_s1 + $0xa8] sm:$0xff] }
   0x4   :  { %v1083_v3 = vld [vmem:[%s1497_s1 + $0xf8] sm:$0xff]  ;;  %685 = vmatpush.bf16.msra.mxu2 %v1075_v2  ;;  %v1082_v7 = vld [vmem:[%s1497_s1 + $0xf0] sm:$0xff]  ;;  %v1081_v11 = vld [vmem:[%s1497_s1 + $0xe8] sm:$0xff] }
   0x5   :  { %699 = vmatpush.bf16.msra.mxu3 %v1083_v3  ;;  %v1056_v12 = vld [vmem:[%s1497_s1 + $0x20] sm:$0xff]  ;;  %v24_v16 = vld [vmem:[%s1498_s0 + $0x8] sm:$0xff]  ;;  %v1055_v18 = vld [vmem:[%s1497_s1 + $0x18] sm:$0xff] }
   0x6   :  { %658 = vmatpush.bf16.msra.mxu0 %v1058_v4  ;;  %v1064_v13 = vld [vmem:[%s1497_s1 + $0x60] sm:$0xff]  ;;  %v28_v17 = vld [vmem:[%s1498_s0 + $0x28] sm:$0xff]  ;;  %v1063_v19 = vld [vmem:[%s1497_s1 + $0x58] sm:$0xff]  ;;  %v33_v20 = vunpack.c.l.bf16 %v24_v16  ;;  %v34_v21 = vunpack.c.h.bf16 %v24_v16 }
   0x7   :  { %672 = vmatpush.bf16.msra.mxu1 %v1066_v5  ;;  %v1072_v14 = vld [vmem:[%s1497_s1 + $0xa0] sm:$0xff]  ;;  %v41_v22 = vunpack.c.l.bf16 %v28_v17  ;;  %v42_v23 = vunpack.c.h.bf16 %v28_v17  ;;  %v1071_v24 = vld [vmem:[%s1497_s1 + $0x98] sm:$0xff]  ;;  %v1054_v36 = vld [vmem:[%s1497_s1 + $0x10] sm:$0xff] }
   0x8   :  { %686 = vmatpush.bf16.msra.mxu2 %v1074_v6  ;;  %v1080_v15 = vld [vmem:[%s1497_s1 + $0xe0] sm:$0xff]  ;;  %v1079_v25 = vld [vmem:[%s1497_s1 + $0xd8] sm:$0xff]  ;;  %vm1212_vm0 = vcmp.gt.f32.partialorder %v33_v20, 0.0  ;;  %vm1216_vm1 = vcmp.gt.f32.partialorder %v34_v21, 0.0  ;;  %v65_v32 = vmul.f32 0.20019531, %v33_v20  ;;  %v66_v33 = vmul.f32 0.20019531, %v34_v21 }
   0x9   :  { %700 = vmatpush.bf16.msra.mxu3 %v1082_v7  ;;  %v23_v26 = vld [vmem:[%s1498_s0] sm:$0xff]  ;;  %vm1220_vm2 = vcmp.gt.f32.partialorder %v41_v22, 0.0  ;;  %vm1224_vm3 = vcmp.gt.f32.partialorder %v42_v23, 0.0  ;;  %v73_v34 = vmul.f32 0.20019531, %v41_v22  ;;  %v74_v35 = vmul.f32 0.20019531, %v42_v23  ;;  %v1062_v37 = vld [vmem:[%s1497_s1 + $0x50] sm:$0xff]  ;;  %vm88_vm4 = vmpackc.low %vm1216_vm1, %vm1212_vm0 }
   0xa   :  { %659 = vmatpush.bf16.msra.mxu0 %v1057_v8  ;;  %v27_v31 = vld [vmem:[%s1498_s0 + $0x20] sm:$0xff]  ;;  %v31_v38 = vunpack.c.l.bf16 %v23_v26  ;;  %v32_v39 = vunpack.c.h.bf16 %v23_v26  ;;  %v1070_v40 = vld [vmem:[%s1497_s1 + $0x90] sm:$0xff]  ;;  %v80_v42 = vpack.c.bf16 %v66_v33, %v65_v32  ;;  %vm92_vm5 = vmpackc.low %vm1224_vm3, %vm1220_vm2 }
   0xb   :  { %673 = vmatpush.bf16.msra.mxu1 %v1065_v9  ;;  %v1078_v41 = vld [vmem:[%s1497_s1 + $0xd0] sm:$0xff]  ;;  %v84_v43 = vpack.c.bf16 %v74_v35, %v73_v34  ;;  %v39_v44 = vunpack.c.l.bf16 %v27_v31  ;;  %v40_v45 = vunpack.c.h.bf16 %v27_v31  ;;  %v1053_v52 = vld [vmem:[%s1497_s1 + $0x8] sm:$0xff]  ;;  %v1052_v63 = vld [vmem:[%s1497_s1] sm:$0xff] }
   0xc   :  { %687 = vmatpush.bf16.msra.mxu2 %v1073_v10  ;;  %vm1251_vm6 = vcmp.gt.f32.partialorder %v31_v38, 0.0  ;;  %vm1255_vm7 = vcmp.gt.f32.partialorder %v32_v39, 0.0  ;;  %v63_v50 = vmul.f32 0.20019531, %v31_v38  ;;  %v64_v51 = vmul.f32 0.20019531, %v32_v39  ;;  %v1061_v53 = vld [vmem:[%s1497_s1 + $0x48] sm:$0xff]  ;;  %v1060_v0 = vld [vmem:[%s1497_s1 + $0x40] sm:$0xff] }
   0xd   :  { %701 = vmatpush.bf16.msra.mxu3 %v1081_v11  ;;  %vm1259_vm8 = vcmp.gt.f32.partialorder %v39_v44, 0.0  ;;  %vm1263_vm9 = vcmp.gt.f32.partialorder %v40_v45, 0.0  ;;  %v96_v54 = vsel %vm88_vm4, %v24_v16, %v80_v42  ;;  %vm87_vm10 = vmpackc.low %vm1255_vm7, %vm1251_vm6  ;;  %v1069_v55 = vld [vmem:[%s1497_s1 + $0x88] sm:$0xff]  ;;  %v100_v57 = vsel %vm92_vm5, %v28_v17, %v84_v43  ;;  %v1068_v5 = vld [vmem:[%s1497_s1 + $0x80] sm:$0xff] }
   0xe   :  { %660 = vmatpush.bf16.msra.mxu0 %v1056_v12  ;;  %v1077_v56 = vld [vmem:[%s1497_s1 + $0xc8] sm:$0xff]  ;;  %v71_v58 = vmul.f32 0.20019531, %v39_v44  ;;  %v72_v59 = vmul.f32 0.20019531, %v40_v45  ;;  %v79_v60 = vpack.c.bf16 %v64_v51, %v63_v50  ;;  %vm91_vm11 = vmpackc.low %vm1263_vm9, %vm1259_vm8  ;;  %v243_v1 = vunpack.c.l.b16 %v96_v54  ;;  %v1076_v6 = vld [vmem:[%s1497_s1 + $0xc0] sm:$0xff] }
   0xf   :  { %674 = vmatpush.bf16.msra.mxu1 %v1064_v13  ;;  %v251_v2 = vunpack.c.l.b16 %v100_v57  ;;  %v244_v3 = vunpack.c.h.b16 %v96_v54  ;;  %v252_v4 = vunpack.c.h.b16 %v100_v57  ;;  %v1091_v10 = vld [vmem:[%s1497_s1 + $0x138] sm:$0xff]  ;;  %v1090_v20 = vld [vmem:[%s1497_s1 + $0x130] sm:$0xff]  ;;  %v1113_v27 = vld [vmem:[%s1497_s1 + $0x1e8] sm:$0xff] }
  0x10   :  { %688 = vmatpush.bf16.msra.mxu2 %v1072_v14  ;;  %v83_v61 = vpack.c.bf16 %v72_v59, %v71_v58  ;;  %v95_v62 = vsel %vm87_vm10, %v23_v26, %v79_v60  ;;  %v1099_v11 = vld [vmem:[%s1497_s1 + $0x178] sm:$0xff]  ;;  %v1098_v21 = vld [vmem:[%s1497_s1 + $0x170] sm:$0xff]  ;;  %v1105_v26 = vld [vmem:[%s1497_s1 + $0x1a8] sm:$0xff] }
  0x11   :  { %702 = vmatpush.bf16.msra.mxu3 %v1080_v15  ;;  %v241_v8 = vunpack.c.l.b16 %v95_v62  ;;  %v242_v9 = vunpack.c.h.b16 %v95_v62  ;;  %v1107_v14 = vld [vmem:[%s1497_s1 + $0x1b8] sm:$0xff]  ;;  %v259_v16 = vpack.c.b16 %v251_v2, %v243_v1  ;;  %v260_v17 = vpack.c.b16 %v252_v4, %v244_v3  ;;  %v1106_v22 = vld [vmem:[%s1497_s1 + $0x1b0] sm:$0xff]  ;;  %v1088_v32 = vld [vmem:[%s1497_s1 + $0x120] sm:$0xff] }
  0x12   :  { %661 = vmatpush.bf16.msra.mxu0 %v1055_v18  ;;  %v99_v7 = vsel %vm91_vm11, %v27_v31, %v83_v61  ;;  %v1115_v15 = vld [vmem:[%s1497_s1 + $0x1f8] sm:$0xff]  ;;  %v1114_v23 = vld [vmem:[%s1497_s1 + $0x1f0] sm:$0xff]  ;;  %v1096_v33 = vld [vmem:[%s1497_s1 + $0x160] sm:$0xff] }
  0x13   :  { %675 = vmatpush.bf16.msra.mxu1 %v1063_v19  ;;  %v249_v12 = vunpack.c.l.b16 %v99_v7  ;;  %v250_v13 = vunpack.c.h.b16 %v99_v7  ;;  %v1343_v28 = vld [vmem:[%s1498_s0 + $0x10] sm:$0xff]  ;;  %v1353_v30 = vld [vmem:[%s1498_s0 + $0x18] sm:$0xff]  ;;  %v1104_v38 = vld [vmem:[%s1497_s1 + $0x1a0] sm:$0xff] }
  0x14   :  { %689 = vmatpush.bf16.msra.mxu2 %v1071_v24  ;;  %v1089_v24 = vld [vmem:[%s1497_s1 + $0x128] sm:$0xff]  ;;  %v1348_v29 = vld [vmem:[%s1498_s0 + $0x30] sm:$0xff]  ;;  %v1358_v31 = vld [vmem:[%s1498_s0 + $0x38] sm:$0xff]  ;;  %v35_v34 = vunpack.c.l.bf16 %v1343_v28  ;;  %v36_v35 = vunpack.c.h.bf16 %v1343_v28 }
  0x15   :  { %703 = vmatpush.bf16.msra.mxu3 %v1079_v25  ;;  %v257_v18 = vpack.c.b16 %v249_v12, %v241_v8  ;;  %v258_v19 = vpack.c.b16 %v250_v13, %v242_v9  ;;  %v1097_v25 = vld [vmem:[%s1497_s1 + $0x168] sm:$0xff]  ;;  %v1112_v39 = vld [vmem:[%s1497_s1 + $0x1e0] sm:$0xff]  ;;  %v45_v42 = vunpack.c.l.bf16 %v1358_v31  ;;  %v46_v43 = vunpack.c.h.bf16 %v1358_v31  ;;  %v1087_v48 = vld [vmem:[%s1497_s1 + $0x118] sm:$0xff] }
  0x16   :  { %662 = vmatpush.bf16.msra.mxu0 %v1054_v36  ;;  %v43_v36 = vunpack.c.l.bf16 %v1348_v29  ;;  %vm1380_vm12 = vcmp.gt.f32.partialorder %v35_v34, 0.0  ;;  %vm1384_vm13 = vcmp.gt.f32.partialorder %v36_v35, 0.0  ;;  %v1095_v49 = vld [vmem:[%s1497_s1 + $0x158] sm:$0xff]  ;;  %v67_v50 = vmul.f32 0.20019531, %v35_v34  ;;  %v1094_v1 = vld [vmem:[%s1497_s1 + $0x150] sm:$0xff]  ;;  %v1085_v8 = vld [vmem:[%s1497_s1 + $0x108] sm:$0xff] }
  0x17   :  { %676 = vmatpush.bf16.msra.mxu1 %v1062_v37  ;;  %v44_v37 = vunpack.c.h.bf16 %v1348_v29  ;;  %v68_v51 = vmul.f32 0.20019531, %v36_v35  ;;  %v1103_v54 = vld [vmem:[%s1497_s1 + $0x198] sm:$0xff]  ;;  %v77_v58 = vmul.f32 0.20019531, %v45_v42  ;;  %v78_v59 = vmul.f32 0.20019531, %v46_v43  ;;  %vm89_vm2 = vmpackc.low %vm1384_vm13, %vm1380_vm12  ;;  %v1102_v4 = vld [vmem:[%s1497_s1 + $0x190] sm:$0xff] }
  0x18   :  { %690 = vmatpush.bf16.msra.mxu2 %v1070_v40  ;;  %v37_v40 = vunpack.c.l.bf16 %v1353_v30  ;;  %vm1388_vm14 = vcmp.gt.f32.partialorder %v43_v36, 0.0  ;;  %vm1420_vm3 = vcmp.gt.f32.partialorder %v45_v42, 0.0  ;;  %vm1424_vm4 = vcmp.gt.f32.partialorder %v46_v43, 0.0  ;;  %v1093_v9 = vld [vmem:[%s1497_s1 + $0x148] sm:$0xff] }
  0x19   :  { %704 = vmatpush.bf16.msra.mxu3 %v1078_v41  ;;  %v38_v41 = vunpack.c.h.bf16 %v1353_v30  ;;  %vm1392_vm15 = vcmp.gt.f32.partialorder %v44_v37, 0.0  ;;  %v81_v2 = vpack.c.bf16 %v68_v51, %v67_v50  ;;  %v86_v7 = vpack.c.bf16 %v78_v59, %v77_v58  ;;  %vm94_vm7 = vmpackc.low %vm1424_vm4, %vm1420_vm3  ;;  %v1101_v12 = vld [vmem:[%s1497_s1 + $0x188] sm:$0xff] }
  0x1a   :  { %663 = vmatpush.bf16.msra.mxu0 %v1053_v52  ;;  %v75_v52 = vmul.f32 0.20019531, %v43_v36  ;;  %vm1408_vm0 = vcmp.gt.f32.partialorder %v37_v40, 0.0  ;;  %vm93_vm5 = vmpackc.low %vm1392_vm15, %vm1388_vm14  ;;  %v1109_v13 = vld [vmem:[%s1497_s1 + $0x1c8] sm:$0xff] }
  0x1b   :  { %677 = vmatpush.bf16.msra.mxu1 %v1061_v53  ;;  %v76_v53 = vmul.f32 0.20019531, %v44_v37  ;;  %v70_v57 = vmul.f32 0.20019531, %v38_v41  ;;  %vm1412_vm1 = vcmp.gt.f32.partialorder %v38_v41, 0.0 }
  0x1c   :  { %691 = vmatpush.bf16.msra.mxu2 %v1069_v55  ;;  %v1111_v55 = vld [vmem:[%s1497_s1 + $0x1d8] sm:$0xff]  ;;  %vm90_vm6 = vmpackc.low %vm1412_vm1, %vm1408_vm0 }
  0x1d   :  { %705 = vmatpush.bf16.msra.mxu3 %v1077_v56  ;;  %v69_v56 = vmul.f32 0.20019531, %v37_v40  ;;  %v85_v3 = vpack.c.bf16 %v76_v53, %v75_v52  ;;  %v1116_v53 = vld [vmem:[%s1499_s2] ss:$0 sm:$0xff] }
  0x1e   :  { %664 = vmatpush.bf16.msra.mxu0 %v1052_v63 }
  0x1f   :  { %678 = vmatpush.bf16.msra.mxu1 %v1060_v0  ;;  %v1086_v0 = vld [vmem:[%s1497_s1 + $0x110] sm:$0xff] }
  0x20   :  { %692 = vmatpush.bf16.msra.mxu2 %v1068_v5  ;;  %v1110_v5 = vld [vmem:[%s1497_s1 + $0x1d0] sm:$0xff] }
  0x21   :  { %706 = vmatpush.bf16.msra.mxu3 %v1076_v6  ;;  %665 = vmatmul.bf16.vlgmr.msra.gmra.mxu0 %v257_v18  ;;  %v82_v6 = vpack.c.bf16 %v70_v57, %v69_v56  ;;  %v1117_v56 = vld [vmem:[%s1500_s3] ss:$0 sm:$0xff] }
  0x22   :  { %713 = vmatpush.bf16.msrb.mxu0 %v1091_v10  ;;  %679 = vmatmul.bf16.vlgmr.msra.gmra.mxu1 %v258_v19  ;;  %v97_v10 = vsel %vm89_vm2, %v1343_v28, %v81_v2 }
  0x23   :  { %727 = vmatpush.bf16.msrb.mxu1 %v1099_v11  ;;  %693 = vmatmul.bf16.vlgmr.msra.gmra.mxu2 %v259_v16  ;;  %v101_v11 = vsel %vm93_vm5, %v1348_v29, %v85_v3  ;;  %v245_v16 = vunpack.c.l.b16 %v97_v10  ;;  %v246_v18 = vunpack.c.h.b16 %v97_v10 }
  0x24   :  { %741 = vmatpush.bf16.msrb.mxu2 %v1107_v14  ;;  %707 = vmatmul.bf16.vlgmr.msra.gmra.mxu3 %v260_v17  ;;  %v98_v14 = vsel %vm90_vm6, %v1353_v30, %v82_v6  ;;  %v253_v17 = vunpack.c.l.b16 %v101_v11  ;;  %v254_v19 = vunpack.c.h.b16 %v101_v11 }
  0x25   :  { %755 = vmatpush.bf16.msrb.mxu3 %v1115_v15  ;;  %v102_v15 = vsel %vm94_vm7, %v1358_v31, %v86_v7 }
  0x26   :  { %714 = vmatpush.bf16.msrb.mxu0 %v1090_v20  ;;  %v1084_v20 = vld [vmem:[%s1497_s1 + $0x100] sm:$0xff]  ;;  %v261_v28 = vpack.c.b16 %v253_v17, %v245_v16  ;;  %v262_v29 = vpack.c.b16 %v254_v19, %v246_v18 }
  0x27   :  { %728 = vmatpush.bf16.msrb.mxu1 %v1098_v21  ;;  %v1092_v21 = vld [vmem:[%s1497_s1 + $0x140] sm:$0xff] }
  0x28   :  { %742 = vmatpush.bf16.msrb.mxu2 %v1106_v22  ;;  %v247_v22 = vunpack.c.l.b16 %v98_v14 }
  0x29   :  { %756 = vmatpush.bf16.msrb.mxu3 %v1114_v23  ;;  %v255_v23 = vunpack.c.l.b16 %v102_v15 }
  0x2a   :  { %715 = vmatpush.bf16.msrb.mxu0 %v1089_v24  ;;  %v248_v24 = vunpack.c.h.b16 %v98_v14 }
  0x2b   :  { %729 = vmatpush.bf16.msrb.mxu1 %v1097_v25  ;;  %v256_v25 = vunpack.c.h.b16 %v102_v15  ;;  %v263_v30 = vpack.c.b16 %v255_v23, %v247_v22 }
  0x2c   :  { %743 = vmatpush.bf16.msrb.mxu2 %v1105_v26  ;;  %v1100_v26 = vld [vmem:[%s1497_s1 + $0x180] sm:$0xff] }
  0x2d   :  { %757 = vmatpush.bf16.msrb.mxu3 %v1113_v27  ;;  %v1108_v27 = vld [vmem:[%s1497_s1 + $0x1c0] sm:$0xff]  ;;  %v264_v31 = vpack.c.b16 %v256_v25, %v248_v24 }
  0x2e   :  { %716 = vmatpush.bf16.msrb.mxu0 %v1088_v32 }
  0x2f   :  { %730 = vmatpush.bf16.msrb.mxu1 %v1096_v33 }
  0x30   :  { %744 = vmatpush.bf16.msrb.mxu2 %v1104_v38 }
  0x31   :  { %758 = vmatpush.bf16.msrb.mxu3 %v1112_v39 }
  0x32   :  { %717 = vmatpush.bf16.msrb.mxu0 %v1087_v48 }
  0x33   :  { %731 = vmatpush.bf16.msrb.mxu1 %v1095_v49 }
  0x34   :  { %745 = vmatpush.bf16.msrb.mxu2 %v1103_v54 }
  0x35   :  { %759 = vmatpush.bf16.msrb.mxu3 %v1111_v55 }
  0x36   :  { %718 = vmatpush.bf16.msrb.mxu0 %v1086_v0 }
  0x37   :  { %732 = vmatpush.bf16.msrb.mxu1 %v1094_v1 }
  0x38   :  { %746 = vmatpush.bf16.msrb.mxu2 %v1102_v4 }
  0x39   :  { %760 = vmatpush.bf16.msrb.mxu3 %v1110_v5 }
  0x3a   :  { %719 = vmatpush.bf16.msrb.mxu0 %v1085_v8 }
  0x3b   :  { %733 = vmatpush.bf16.msrb.mxu1 %v1093_v9 }
  0x3c   :  { %747 = vmatpush.bf16.msrb.mxu2 %v1101_v12 }
  0x3d   :  { %761 = vmatpush.bf16.msrb.mxu3 %v1109_v13 }
  0x3e   :  { %720 = vmatpush.bf16.msrb.mxu0 %v1084_v20 }
  0x3f   :  { %734 = vmatpush.bf16.msrb.mxu1 %v1092_v21 }
  0x40   :  { %748 = vmatpush.bf16.msrb.mxu2 %v1100_v26 }
  0x41   :  { %762 = vmatpush.bf16.msrb.mxu3 %v1108_v27  ;;  %721 = vmatmul.bf16.vlgmr.msrb.gmra.mxu0 %v261_v28 }
  0x42   :  { %735 = vmatmul.bf16.vlgmr.msrb.gmra.mxu1 %v262_v29 }
  0x43   :  { %749 = vmatmul.bf16.vlgmr.msrb.gmra.mxu2 %v263_v30 }
  0x44   :  { %763 = vmatmul.bf16.vlgmr.msrb.gmra.mxu3 %v264_v31 }
  0x9e   :  { %v666_v32 = vpop.f32.mrf.mxu0 }
  0x9f   :  { %v680_v33 = vpop.f32.mrf.mxu1 }
  0xa0   :  { %v681_v36 = vadd.f32 %v680_v33, %v666_v32 }
  0xa6   :  { %v694_v34 = vpop.f32.mrf.mxu2  ;;  %v668_v37 = vpop.f32.mrf.mxu0 }
  0xa7   :  { %v708_v35 = vpop.f32.mrf.mxu3  ;;  %v682_v38 = vpop.f32.mrf.mxu1  ;;  %v695_v39 = vadd.f32 %v694_v34, %v681_v36 }
  0xa8   :  { %v683_v43 = vadd.f32 %v682_v38, %v668_v37 }
  0xa9   :  { %v709_v42 = vadd.f32 %v708_v35, %v695_v39 }
  0xae   :  { %v696_v40 = vpop.f32.mrf.mxu2 }
  0xaf   :  { %v710_v41 = vpop.f32.mrf.mxu3  ;;  %v697_v47 = vadd.f32 %v696_v40, %v683_v43 }
  0xb1   :  { %v711_v51 = vadd.f32 %v710_v41, %v697_v47 }
  0xbe   :  { %v722_v44 = vpop.f32.mrf.mxu0 }
  0xbf   :  { %v723_v45 = vadd.f32 %v722_v44, %v709_v42  ;;  %v736_v46 = vpop.f32.mrf.mxu1 }
  0xc1   :  { %v737_v48 = vadd.f32 %v736_v46, %v723_v45 }
  0xc6   :  { %v750_v49 = vpop.f32.mrf.mxu2  ;;  %v724_v54 = vpop.f32.mrf.mxu0 }
  0xc7   :  { %v764_v50 = vpop.f32.mrf.mxu3  ;;  %v751_v52 = vadd.f32 %v750_v49, %v737_v48  ;;  %v725_v57 = vadd.f32 %v724_v54, %v711_v51  ;;  %v738_v59 = vpop.f32.mrf.mxu1 }
  0xc9   :  { %v765_v55 = vadd.f32 %v764_v50, %v751_v52  ;;  %v739_v61 = vadd.f32 %v738_v59, %v725_v57 }
  0xcb   :  { %v782_v58 = vmul.f32 %v1116_v53, %v765_v55 }
  0xcd   :  { %v788_v60 = vadd.f32 %v1117_v56, %v782_v58 }
  0xce   :  { %v752_v62 = vpop.f32.mrf.mxu2 }
  0xcf   :  { %790 = vst [vmem:[%s1501_s4] sm:$0xff] %v788_v60  ;;  %v753_v63 = vadd.f32 %v752_v62, %v739_v61  ;;  %v766_v0 = vpop.f32.mrf.mxu3 }
  0xd1   :  { %v767_v1 = vadd.f32 %v766_v0, %v753_v63 }
  0xd3   :  { %v783_v2 = vmul.f32 %v1116_v53, %v767_v1 }
  0xd5   :  { %v789_v3 = vadd.f32 %v1117_v56, %v783_v2 }
  0xd7   :  { %791 = vst [vmem:[%s1501_s4 + $0x8] sm:$0xff] %v789_v3 }

// kernel: unet_256_forward.60
= control target key start
LH: loop header
LB: loop body
LE: loop exit
PB: predicated region body
PF: predicated region fallthrough
CT: control target
= control target key end

     0   :  { %s732_s1 = inlined_call_operand.vmem [shape: bf16[512,128], index: 1, kind: input, shape index: {}]   ;;  %s733_s0 = inlined_call_operand.vmem [shape: bf16[16,512], index: 0, kind: input, shape index: {}]   ;;  %s734_s2 = inlined_call_operand.vmem [shape: f32[1,128], index: 2, kind: input, shape index: {}]   ;;  %s735_s3 = inlined_call_operand.vmem [shape: f32[1,128], index: 3, kind: input, shape index: {}]   ;;  %s736_s4 = inlined_call_operand.vmem [shape: f32[16,128], index: 4, kind: output, shape index: {0}]   ;;  %s737_s5 = inlined_call_operand.vmem [shape: f32[8,128], index: 5, kind: output, shape index: {1}]  }
   0x1   :  { %v552_v0 = vld [vmem:[%s732_s1 + $0x38] sm:$0xff]  ;;  %v551_v4 = vld [vmem:[%s732_s1 + $0x30] sm:$0xff]  ;;  %v550_v8 = vld [vmem:[%s732_s1 + $0x28] sm:$0xff] }
   0x2   :  { %v560_v1 = vld [vmem:[%s732_s1 + $0x78] sm:$0xff]  ;;  %307 = vmatpush.bf16.msra.mxu0 %v552_v0  ;;  %v559_v5 = vld [vmem:[%s732_s1 + $0x70] sm:$0xff]  ;;  %v558_v9 = vld [vmem:[%s732_s1 + $0x68] sm:$0xff] }
   0x3   :  { %v568_v2 = vld [vmem:[%s732_s1 + $0xb8] sm:$0xff]  ;;  %321 = vmatpush.bf16.msra.mxu1 %v560_v1  ;;  %v567_v6 = vld [vmem:[%s732_s1 + $0xb0] sm:$0xff]  ;;  %v566_v10 = vld [vmem:[%s732_s1 + $0xa8] sm:$0xff] }
   0x4   :  { %v576_v3 = vld [vmem:[%s732_s1 + $0xf8] sm:$0xff]  ;;  %335 = vmatpush.bf16.msra.mxu2 %v568_v2  ;;  %v575_v7 = vld [vmem:[%s732_s1 + $0xf0] sm:$0xff]  ;;  %v574_v11 = vld [vmem:[%s732_s1 + $0xe8] sm:$0xff] }
   0x5   :  { %349 = vmatpush.bf16.msra.mxu3 %v576_v3  ;;  %v549_v12 = vld [vmem:[%s732_s1 + $0x20] sm:$0xff]  ;;  %v548_v16 = vld [vmem:[%s732_s1 + $0x18] sm:$0xff]  ;;  %v547_v20 = vld [vmem:[%s732_s1 + $0x10] sm:$0xff] }
   0x6   :  { %308 = vmatpush.bf16.msra.mxu0 %v551_v4  ;;  %v557_v13 = vld [vmem:[%s732_s1 + $0x60] sm:$0xff]  ;;  %v556_v17 = vld [vmem:[%s732_s1 + $0x58] sm:$0xff]  ;;  %v555_v21 = vld [vmem:[%s732_s1 + $0x50] sm:$0xff] }
   0x7   :  { %322 = vmatpush.bf16.msra.mxu1 %v559_v5  ;;  %v565_v14 = vld [vmem:[%s732_s1 + $0xa0] sm:$0xff]  ;;  %v564_v18 = vld [vmem:[%s732_s1 + $0x98] sm:$0xff]  ;;  %v563_v22 = vld [vmem:[%s732_s1 + $0x90] sm:$0xff] }
   0x8   :  { %336 = vmatpush.bf16.msra.mxu2 %v567_v6  ;;  %v573_v15 = vld [vmem:[%s732_s1 + $0xe0] sm:$0xff]  ;;  %v572_v19 = vld [vmem:[%s732_s1 + $0xd8] sm:$0xff]  ;;  %v27_v24 = vld [vmem:[%s733_s0 + $0x10] sm:$0xff] }
   0x9   :  { %350 = vmatpush.bf16.msra.mxu3 %v575_v7  ;;  %v25_v23 = vld [vmem:[%s733_s0] sm:$0xff]  ;;  %v571_v25 = vld [vmem:[%s732_s1 + $0xd0] sm:$0xff]  ;;  %v26_v26 = vld [vmem:[%s733_s0 + $0x8] sm:$0xff]  ;;  %v33_v29 = vunpack.c.l.bf16 %v27_v24  ;;  %v34_v31 = vunpack.c.h.bf16 %v27_v24 }
   0xa   :  { %309 = vmatpush.bf16.msra.mxu0 %v550_v8  ;;  %v28_v27 = vld [vmem:[%s733_s0 + $0x18] sm:$0xff]  ;;  %v29_v28 = vunpack.c.l.bf16 %v25_v23  ;;  %v30_v30 = vunpack.c.h.bf16 %v25_v23  ;;  %v546_v32 = vld [vmem:[%s732_s1 + $0x8] sm:$0xff]  ;;  %v31_v34 = vunpack.c.l.bf16 %v26_v26  ;;  %v32_v36 = vunpack.c.h.bf16 %v26_v26  ;;  %v545_v44 = vld [vmem:[%s732_s1] sm:$0xff] }
   0xb   :  { %323 = vmatpush.bf16.msra.mxu1 %v558_v9  ;;  %v554_v33 = vld [vmem:[%s732_s1 + $0x48] sm:$0xff]  ;;  %v35_v35 = vunpack.c.l.bf16 %v28_v27  ;;  %v36_v37 = vunpack.c.h.bf16 %v28_v27  ;;  %v41_v41 = vmax.f32 %v33_v29, 0.0  ;;  %v42_v43 = vmax.f32 %v34_v31, 0.0  ;;  %v553_v45 = vld [vmem:[%s732_s1 + $0x40] sm:$0xff] }
   0xc   :  { %337 = vmatpush.bf16.msra.mxu2 %v566_v10  ;;  %v562_v38 = vld [vmem:[%s732_s1 + $0x88] sm:$0xff]  ;;  %v37_v40 = vmax.f32 %v29_v28, 0.0  ;;  %v38_v42 = vmax.f32 %v30_v30, 0.0  ;;  %v39_v46 = vmax.f32 %v31_v34, 0.0  ;;  %v40_v48 = vmax.f32 %v32_v36, 0.0  ;;  %v561_v50 = vld [vmem:[%s732_s1 + $0x80] sm:$0xff] }
   0xd   :  { %351 = vmatpush.bf16.msra.mxu3 %v574_v11  ;;  %v570_v39 = vld [vmem:[%s732_s1 + $0xc8] sm:$0xff]  ;;  %v43_v47 = vmax.f32 %v35_v35, 0.0  ;;  %v44_v49 = vmax.f32 %v36_v37, 0.0  ;;  %v569_v51 = vld [vmem:[%s732_s1 + $0xc0] sm:$0xff] }
   0xe   :  { %310 = vmatpush.bf16.msra.mxu0 %v549_v12  ;;  %v45_v52 = vpack.c.bf16 %v41_v41, %v37_v40  ;;  %v46_v53 = vpack.c.bf16 %v42_v43, %v38_v42  ;;  %v577_v62 = vld [vmem:[%s734_s2] ss:$0 sm:$0xff] }
   0xf   :  { %324 = vmatpush.bf16.msra.mxu1 %v557_v13  ;;  %v47_v54 = vpack.c.bf16 %v43_v47, %v39_v46  ;;  %v48_v55 = vpack.c.bf16 %v44_v49, %v40_v48  ;;  %v578_v0 = vld [vmem:[%s735_s3] ss:$0 sm:$0xff] }
  0x10   :  { %338 = vmatpush.bf16.msra.mxu2 %v565_v14 }
  0x11   :  { %352 = vmatpush.bf16.msra.mxu3 %v573_v15 }
  0x12   :  { %311 = vmatpush.bf16.msra.mxu0 %v548_v16 }
  0x13   :  { %325 = vmatpush.bf16.msra.mxu1 %v556_v17 }
  0x14   :  { %339 = vmatpush.bf16.msra.mxu2 %v564_v18 }
  0x15   :  { %353 = vmatpush.bf16.msra.mxu3 %v572_v19  ;;  %v402_v19 = vlaneseq }
  0x16   :  { %312 = vmatpush.bf16.msra.mxu0 %v547_v20 }
  0x17   :  { %326 = vmatpush.bf16.msra.mxu1 %v555_v21  ;;  %v403_v24 = vshrl.u32 %v402_v19, 7 }
  0x18   :  { %340 = vmatpush.bf16.msra.mxu2 %v563_v22 }
  0x19   :  { %354 = vmatpush.bf16.msra.mxu3 %v571_v25  ;;  %vm405_vm0 = vcmp.eq.s32.totalorder %v403_v24, 1  ;;  %vm404_vm1 = vcmp.eq.s32.totalorder %v403_v24, 0 }
  0x1a   :  { %313 = vmatpush.bf16.msra.mxu0 %v546_v32 }
  0x1b   :  { %327 = vmatpush.bf16.msra.mxu1 %v554_v33 }
  0x1c   :  { %341 = vmatpush.bf16.msra.mxu2 %v562_v38 }
  0x1d   :  { %355 = vmatpush.bf16.msra.mxu3 %v570_v39 }
  0x1e   :  { %314 = vmatpush.bf16.msra.mxu0 %v545_v44 }
  0x1f   :  { %328 = vmatpush.bf16.msra.mxu1 %v553_v45 }
  0x20   :  { %342 = vmatpush.bf16.msra.mxu2 %v561_v50 }
  0x21   :  { %356 = vmatpush.bf16.msra.mxu3 %v569_v51  ;;  %315 = vmatmul.bf16.vlgmr.msra.gmra.mxu0 %v45_v52 }
  0x22   :  { %329 = vmatmul.bf16.vlgmr.msra.gmra.mxu1 %v46_v53 }
  0x23   :  { %343 = vmatmul.bf16.vlgmr.msra.gmra.mxu2 %v47_v54 }
  0x24   :  { %357 = vmatmul.bf16.vlgmr.msra.gmra.mxu3 %v48_v55 }
  0x9e   :  { %v316_v56 = vpop.f32.mrf.mxu0 }
  0x9f   :  { %v330_v57 = vpop.f32.mrf.mxu1 }
  0xa0   :  { %v331_v58 = vadd.f32 %v330_v57, %v316_v56 }
  0xa6   :  { %v344_v59 = vpop.f32.mrf.mxu2  ;;  %v318_v1 = vpop.f32.mrf.mxu0 }
  0xa7   :  { %v358_v60 = vpop.f32.mrf.mxu3  ;;  %v345_v61 = vadd.f32 %v344_v59, %v331_v58  ;;  %v332_v2 = vpop.f32.mrf.mxu1 }
  0xa8   :  { %v333_v5 = vadd.f32 %v332_v2, %v318_v1 }
  0xa9   :  { %v359_v63 = vadd.f32 %v358_v60, %v345_v61 }
  0xab   :  { %v376_v3 = vmul.f32 %v577_v62, %v359_v63 }
  0xad   :  { %v382_v4 = vadd.f32 %v578_v0, %v376_v3 }
  0xae   :  { %v346_v6 = vpop.f32.mrf.mxu2 }
  0xaf   :  { %384 = vst [vmem:[%s736_s4] sm:$0xff] %v382_v4  ;;  %v347_v7 = vadd.f32 %v346_v6, %v333_v5  ;;  %v360_v8 = vpop.f32.mrf.mxu3  ;;  %v393_v12 = vmul.f32 %v382_v4, %v382_v4 }
  0xb1   :  { %v361_v9 = vadd.f32 %v360_v8, %v347_v7 }
  0xb3   :  { %v377_v10 = vmul.f32 %v577_v62, %v361_v9 }
  0xb5   :  { %v383_v11 = vadd.f32 %v578_v0, %v377_v10 }
  0xb7   :  { %385 = vst [vmem:[%s736_s4 + $0x8] sm:$0xff] %v383_v11  ;;  %v386_v13 = vadd.f32 %v383_v11, %v382_v4  ;;  %v394_v14 = vmul.f32 %v383_v11, %v383_v11 }
  0xb9   :  { %v387_v15 = vrot.slane %v386_v13, 4  ;;  %v395_v16 = vadd.f32 %v394_v14, %v393_v12 }
  0xbb   :  { %v388_v17 = vadd.f32 %v387_v15, %v386_v13  ;;  %v396_v18 = vrot.slane %v395_v16, 4 }
  0xbd   :  { %v389_v20 = vrot.slane %v388_v17, 2  ;;  %v397_v21 = vadd.f32 %v396_v18, %v395_v16 }
  0xbf   :  { %v390_v22 = vadd.f32 %v389_v20, %v388_v17  ;;  %v398_v23 = vrot.slane %v397_v21, 2 }
  0xc1   :  { %v399_v25 = vadd.f32 %v398_v23, %v397_v21  ;;  %v391_v26 = vrot.slane %v390_v22, 1 }
  0xc3   :  { %v400_v27 = vrot.slane %v399_v25, 1  ;;  %v392_v29 = vadd.f32 %v391_v26, %v390_v22 }
  0xc5   :  { %v401_v28 = vadd.f32 %v400_v27, %v399_v25 }
  0xc7   :  { %v406_v30 = vsel %vm405_vm0, %v401_v28, 0.0 }
  0xc8   :  { %v407_v31 = vsel %vm404_vm1, %v392_v29, %v406_v30 }
  0xc9   :  { %408 = vst [vmem:[%s737_s5] sm:$0xff] %v407_v31 }

// kernel: unet_256_forward.68
= control target key start
LH: loop header
LB: loop body
LE: loop exit
PB: predicated region body
PF: predicated region fallthrough
CT: control target
= control target key end

     0   :  { %s502_s1 = inlined_call_operand.vmem [shape: bf16[256,128], index: 1, kind: input, shape index: {}]   ;;  %s503_s0 = inlined_call_operand.vmem [shape: bf16[32,256], index: 0, kind: input, shape index: {}]   ;;  %s504_s2 = inlined_call_operand.vmem [shape: f32[1,128], index: 2, kind: input, shape index: {}]   ;;  %s505_s3 = inlined_call_operand.vmem [shape: f32[1,128], index: 3, kind: input, shape index: {}]   ;;  %s506_s4 = inlined_call_operand.vmem [shape: f32[32,128], index: 4, kind: output, shape index: {0}]   ;;  %s507_s5 = inlined_call_operand.vmem [shape: f32[8,128], index: 5, kind: output, shape index: {1}]  }
   0x1   :  { %v364_v0 = vld [vmem:[%s502_s1 + $0x38] sm:$0xff]  ;;  %v363_v2 = vld [vmem:[%s502_s1 + $0x30] sm:$0xff]  ;;  %v362_v4 = vld [vmem:[%s502_s1 + $0x28] sm:$0xff] }
   0x2   :  { %v372_v1 = vld [vmem:[%s502_s1 + $0x78] sm:$0xff]  ;;  %183 = vmatpush.bf16.msra.mxu0 %v364_v0  ;;  %373 = vmatpush.bf16.msra.mxu2 %v364_v0  ;;  %v371_v3 = vld [vmem:[%s502_s1 + $0x70] sm:$0xff]  ;;  %v370_v5 = vld [vmem:[%s502_s1 + $0x68] sm:$0xff] }
   0x3   :  { %202 = vmatpush.bf16.msra.mxu1 %v372_v1  ;;  %381 = vmatpush.bf16.msra.mxu3 %v372_v1  ;;  %v361_v6 = vld [vmem:[%s502_s1 + $0x20] sm:$0xff]  ;;  %v360_v8 = vld [vmem:[%s502_s1 + $0x18] sm:$0xff]  ;;  %v359_v10 = vld [vmem:[%s502_s1 + $0x10] sm:$0xff] }
   0x4   :  { %v369_v7 = vld [vmem:[%s502_s1 + $0x60] sm:$0xff]  ;;  %v368_v9 = vld [vmem:[%s502_s1 + $0x58] sm:$0xff]  ;;  %v28_v12 = vld [vmem:[%s503_s0 + $0x8] sm:$0xff] }
   0x5   :  { %v27_v11 = vld [vmem:[%s503_s0] sm:$0xff]  ;;  %v29_v13 = vld [vmem:[%s503_s0 + $0x10] sm:$0xff]  ;;  %v30_v14 = vld [vmem:[%s503_s0 + $0x18] sm:$0xff]  ;;  %v33_v17 = vunpack.c.l.bf16 %v28_v12  ;;  %v34_v22 = vunpack.c.h.bf16 %v28_v12 }
   0x6   :  { %184 = vmatpush.bf16.msra.mxu0 %v363_v2  ;;  %374 = vmatpush.bf16.msra.mxu2 %v363_v2  ;;  %v367_v15 = vld [vmem:[%s502_s1 + $0x50] sm:$0xff]  ;;  %v31_v16 = vunpack.c.l.bf16 %v27_v11  ;;  %v35_v18 = vunpack.c.l.bf16 %v29_v13  ;;  %v37_v19 = vunpack.c.l.bf16 %v30_v14  ;;  %v358_v20 = vld [vmem:[%s502_s1 + $0x8] sm:$0xff]  ;;  %v32_v21 = vunpack.c.h.bf16 %v27_v11  ;;  %v357_v30 = vld [vmem:[%s502_s1] sm:$0xff] }
   0x7   :  { %203 = vmatpush.bf16.msra.mxu1 %v371_v3  ;;  %382 = vmatpush.bf16.msra.mxu3 %v371_v3  ;;  %v36_v23 = vunpack.c.h.bf16 %v29_v13  ;;  %v38_v24 = vunpack.c.h.bf16 %v30_v14  ;;  %v366_v25 = vld [vmem:[%s502_s1 + $0x48] sm:$0xff]  ;;  %v41_v27 = vmax.f32 %v33_v17, 0.0  ;;  %v42_v32 = vmax.f32 %v34_v22, 0.0  ;;  %v365_v35 = vld [vmem:[%s502_s1 + $0x40] sm:$0xff] }
   0x8   :  { %v39_v26 = vmax.f32 %v31_v16, 0.0  ;;  %v43_v28 = vmax.f32 %v35_v18, 0.0  ;;  %v45_v29 = vmax.f32 %v37_v19, 0.0  ;;  %v40_v31 = vmax.f32 %v32_v21, 0.0  ;;  %v389_v41 = vld [vmem:[%s504_s2] ss:$0 sm:$0xff] }
   0x9   :  { %v44_v33 = vmax.f32 %v36_v23, 0.0  ;;  %v46_v34 = vmax.f32 %v38_v24, 0.0  ;;  %v390_v44 = vld [vmem:[%s505_s3] ss:$0 sm:$0xff]  ;;  %v278_v11 = vlaneseq }
   0xa   :  { %185 = vmatpush.bf16.msra.mxu0 %v362_v4  ;;  %375 = vmatpush.bf16.msra.mxu2 %v362_v4  ;;  %v47_v36 = vpack.c.bf16 %v41_v27, %v39_v26  ;;  %v49_v37 = vpack.c.bf16 %v45_v29, %v43_v28  ;;  %v48_v38 = vpack.c.bf16 %v42_v32, %v40_v31 }
   0xb   :  { %204 = vmatpush.bf16.msra.mxu1 %v370_v5  ;;  %383 = vmatpush.bf16.msra.mxu3 %v370_v5  ;;  %v50_v39 = vpack.c.bf16 %v46_v34, %v44_v33  ;;  %v279_v16 = vshrl.u32 %v278_v11, 7 }
   0xd   :  { %vm281_vm0 = vcmp.eq.s32.totalorder %v279_v16, 1  ;;  %vm280_vm1 = vcmp.eq.s32.totalorder %v279_v16, 0 }
   0xe   :  { %186 = vmatpush.bf16.msra.mxu0 %v361_v6  ;;  %376 = vmatpush.bf16.msra.mxu2 %v361_v6 }
   0xf   :  { %205 = vmatpush.bf16.msra.mxu1 %v369_v7  ;;  %384 = vmatpush.bf16.msra.mxu3 %v369_v7 }
  0x12   :  { %187 = vmatpush.bf16.msra.mxu0 %v360_v8  ;;  %377 = vmatpush.bf16.msra.mxu2 %v360_v8 }
  0x13   :  { %206 = vmatpush.bf16.msra.mxu1 %v368_v9  ;;  %385 = vmatpush.bf16.msra.mxu3 %v368_v9 }
  0x16   :  { %188 = vmatpush.bf16.msra.mxu0 %v359_v10  ;;  %378 = vmatpush.bf16.msra.mxu2 %v359_v10 }
  0x17   :  { %207 = vmatpush.bf16.msra.mxu1 %v367_v15  ;;  %386 = vmatpush.bf16.msra.mxu3 %v367_v15 }
  0x1a   :  { %189 = vmatpush.bf16.msra.mxu0 %v358_v20  ;;  %379 = vmatpush.bf16.msra.mxu2 %v358_v20 }
  0x1b   :  { %208 = vmatpush.bf16.msra.mxu1 %v366_v25  ;;  %387 = vmatpush.bf16.msra.mxu3 %v366_v25 }
  0x1e   :  { %190 = vmatpush.bf16.msra.mxu0 %v357_v30  ;;  %380 = vmatpush.bf16.msra.mxu2 %v357_v30 }
  0x1f   :  { %209 = vmatpush.bf16.msra.mxu1 %v365_v35  ;;  %388 = vmatpush.bf16.msra.mxu3 %v365_v35 }
  0x21   :  { %191 = vmatmul.bf16.vlgmr.msra.gmra.mxu0 %v47_v36  ;;  %196 = vmatmul.bf16.vlgmr.msra.gmra.mxu2 %v49_v37 }
  0x22   :  { %210 = vmatmul.bf16.vlgmr.msra.gmra.mxu1 %v48_v38  ;;  %215 = vmatmul.bf16.vlgmr.msra.gmra.mxu3 %v50_v39 }
  0x9e   :  { %v192_v40 = vpop.f32.mrf.mxu0 }
  0x9f   :  { %v211_v42 = vpop.f32.mrf.mxu1 }
  0xa0   :  { %v212_v43 = vadd.f32 %v211_v42, %v192_v40 }
  0xa2   :  { %v240_v45 = vmul.f32 %v389_v41, %v212_v43 }
  0xa4   :  { %v248_v46 = vadd.f32 %v390_v44, %v240_v45  ;;  %v197_v47 = vpop.f32.mrf.mxu2 }
  0xa5   :  { %v216_v48 = vpop.f32.mrf.mxu3 }
  0xa6   :  { %252 = vst [vmem:[%s506_s4] sm:$0xff] %v248_v46  ;;  %v217_v49 = vadd.f32 %v216_v48, %v197_v47  ;;  %v194_v50 = vpop.f32.mrf.mxu0  ;;  %v265_v59 = vmul.f32 %v248_v46, %v248_v46 }
  0xa7   :  { %v213_v51 = vpop.f32.mrf.mxu1 }
  0xa8   :  { %v242_v52 = vmul.f32 %v389_v41, %v217_v49  ;;  %v214_v53 = vadd.f32 %v213_v51, %v194_v50 }
  0xaa   :  { %v250_v54 = vadd.f32 %v390_v44, %v242_v52  ;;  %v241_v55 = vmul.f32 %v389_v41, %v214_v53 }
  0xac   :  { %254 = vst [vmem:[%s506_s4 + $0x10] sm:$0xff] %v250_v54  ;;  %v249_v56 = vadd.f32 %v390_v44, %v241_v55  ;;  %v199_v57 = vpop.f32.mrf.mxu2  ;;  %v267_v1 = vmul.f32 %v250_v54, %v250_v54 }
  0xad   :  { %v218_v58 = vpop.f32.mrf.mxu3 }
  0xae   :  { %253 = vst [vmem:[%s506_s4 + $0x8] sm:$0xff] %v249_v56  ;;  %v256_v60 = vadd.f32 %v249_v56, %v248_v46  ;;  %v266_v61 = vmul.f32 %v249_v56, %v249_v56  ;;  %v219_v62 = vadd.f32 %v218_v58, %v199_v57 }
  0xb0   :  { %v269_v63 = vadd.f32 %v266_v61, %v265_v59  ;;  %v243_v0 = vmul.f32 %v389_v41, %v219_v62  ;;  %v257_v3 = vadd.f32 %v256_v60, %v250_v54 }
  0xb2   :  { %v251_v2 = vadd.f32 %v390_v44, %v243_v0  ;;  %v270_v6 = vadd.f32 %v269_v63, %v267_v1 }
  0xb4   :  { %255 = vst [vmem:[%s506_s4 + $0x18] sm:$0xff] %v251_v2  ;;  %v258_v4 = vadd.f32 %v257_v3, %v251_v2  ;;  %v268_v5 = vmul.f32 %v251_v2, %v251_v2 }
  0xb6   :  { %v259_v7 = vrot.slane %v258_v4, 4  ;;  %v271_v8 = vadd.f32 %v270_v6, %v268_v5 }
  0xb8   :  { %v260_v9 = vadd.f32 %v259_v7, %v258_v4  ;;  %v272_v10 = vrot.slane %v271_v8, 4 }
  0xba   :  { %v261_v12 = vrot.slane %v260_v9, 2  ;;  %v273_v13 = vadd.f32 %v272_v10, %v271_v8 }
  0xbc   :  { %v262_v14 = vadd.f32 %v261_v12, %v260_v9  ;;  %v274_v15 = vrot.slane %v273_v13, 2 }
  0xbe   :  { %v275_v17 = vadd.f32 %v274_v15, %v273_v13  ;;  %v263_v18 = vrot.slane %v262_v14, 1 }
  0xc0   :  { %v276_v19 = vrot.slane %v275_v17, 1  ;;  %v264_v21 = vadd.f32 %v263_v18, %v262_v14 }
  0xc2   :  { %v277_v20 = vadd.f32 %v276_v19, %v275_v17 }
  0xc4   :  { %v282_v22 = vsel %vm281_vm0, %v277_v20, 0.0 }
  0xc5   :  { %v283_v23 = vsel %vm280_vm1, %v264_v21, %v282_v22 }
  0xc6   :  { %284 = vst [vmem:[%s507_s5] sm:$0xff] %v283_v23 }

// kernel: unet_256_forward.76
= control target key start
LH: loop header
LB: loop body
LE: loop exit
PB: predicated region body
PF: predicated region fallthrough
CT: control target
= control target key end

     0   :  { %s698_s1 = inlined_call_operand.vmem [shape: bf16[128,128], index: 1, kind: input, shape index: {}]   ;;  %s699_s2 = inlined_call_operand.vmem [shape: f32[1,128], index: 2, kind: input, shape index: {}]   ;;  %s700_s3 = inlined_call_operand.vmem [shape: f32[1,128], index: 3, kind: input, shape index: {}]   ;;  %s701_s0 = inlined_call_operand.vmem [shape: bf16[128,128], index: 0, kind: input, shape index: {}]   ;;  %s702_s4 = inlined_call_operand.vmem [shape: f32[128,128], index: 4, kind: output, shape index: {0}]   ;;  %s703_s5 = inlined_call_operand.vmem [shape: f32[8,128], index: 5, kind: output, shape index: {1}]  }
   0x1   :  { %v443_v0 = vld [vmem:[%s698_s1 + $0x38] sm:$0xff]  ;;  %v442_v1 = vld [vmem:[%s698_s1 + $0x30] sm:$0xff]  ;;  %v441_v2 = vld [vmem:[%s698_s1 + $0x28] sm:$0xff] }
   0x2   :  { %175 = vmatpush.bf16.msra.mxu0 %v443_v0  ;;  %483 = vmatpush.bf16.msra.mxu1 %v443_v0  ;;  %v440_v3 = vld [vmem:[%s698_s1 + $0x20] sm:$0xff]  ;;  %v439_v4 = vld [vmem:[%s698_s1 + $0x18] sm:$0xff]  ;;  %v438_v5 = vld [vmem:[%s698_s1 + $0x10] sm:$0xff] }
   0x3   :  { %484 = vmatpush.bf16.msra.mxu2 %v443_v0  ;;  %485 = vmatpush.bf16.msra.mxu3 %v443_v0  ;;  %v445_v6 = vld [vmem:[%s701_s0] sm:$0xff]   ;;  %v477_v7 = vld [vmem:[%s701_s0 + $0x10] sm:$0xff]   ;;  %v437_v14 = vld [vmem:[%s698_s1 + $0x8] sm:$0xff] }
   0x4   :  { %v479_v8 = vld [vmem:[%s701_s0 + $0x20] sm:$0xff]   ;;  %v481_v9 = vld [vmem:[%s701_s0 + $0x30] sm:$0xff]   ;;  %v446_v10 = vunpack.c.l.bf16 %v445_v6  ;;  %v447_v11 = vunpack.c.h.bf16 %v445_v6  ;;  %v454_v12 = vunpack.c.l.bf16 %v477_v7  ;;  %v455_v13 = vunpack.c.h.bf16 %v477_v7  ;;  %v476_v32 = vld [vmem:[%s701_s0 + $0x8] sm:$0xff]  }
   0x5   :  { %v462_v15 = vunpack.c.l.bf16 %v479_v8  ;;  %v463_v16 = vunpack.c.h.bf16 %v479_v8  ;;  %v470_v17 = vunpack.c.l.bf16 %v481_v9  ;;  %v471_v18 = vunpack.c.h.bf16 %v481_v9  ;;  %v436_v23 = vld [vmem:[%s698_s1] sm:$0xff]  ;;  %v478_v33 = vld [vmem:[%s701_s0 + $0x18] sm:$0xff]   ;;  %v480_v34 = vld [vmem:[%s701_s0 + $0x28] sm:$0xff]  }
   0x6   :  { %176 = vmatpush.bf16.msra.mxu0 %v442_v1  ;;  %486 = vmatpush.bf16.msra.mxu1 %v442_v1  ;;  %v71_v19 = vmax.f32 %v446_v10, 0.0  ;;  %v72_v20 = vmax.f32 %v447_v11, 0.0  ;;  %v75_v21 = vmax.f32 %v454_v12, 0.0  ;;  %v76_v22 = vmax.f32 %v455_v13, 0.0  ;;  %v482_v35 = vld [vmem:[%s701_s0 + $0x38] sm:$0xff]  }
   0x7   :  { %487 = vmatpush.bf16.msra.mxu2 %v442_v1  ;;  %488 = vmatpush.bf16.msra.mxu3 %v442_v1  ;;  %v79_v24 = vmax.f32 %v462_v15, 0.0  ;;  %v80_v25 = vmax.f32 %v463_v16, 0.0  ;;  %v83_v26 = vmax.f32 %v470_v17, 0.0  ;;  %v84_v27 = vmax.f32 %v471_v18, 0.0  ;;  %v590_v56 = vld [vmem:[%s699_s2] ss:$0 sm:$0xff] }
   0x8   :  { %v87_v28 = vpack.c.bf16 %v72_v20, %v71_v19  ;;  %v89_v29 = vpack.c.bf16 %v76_v22, %v75_v21  ;;  %v450_v36 = vunpack.c.l.bf16 %v476_v32  ;;  %v451_v37 = vunpack.c.h.bf16 %v476_v32  ;;  %v595_v57 = vld [vmem:[%s700_s3] ss:$0 sm:$0xff] }
   0x9   :  { %v91_v30 = vpack.c.bf16 %v80_v25, %v79_v24  ;;  %v93_v31 = vpack.c.bf16 %v84_v27, %v83_v26  ;;  %v458_v38 = vunpack.c.l.bf16 %v478_v33  ;;  %v459_v39 = vunpack.c.h.bf16 %v478_v33 }
   0xa   :  { %177 = vmatpush.bf16.msra.mxu0 %v441_v2  ;;  %489 = vmatpush.bf16.msra.mxu1 %v441_v2  ;;  %v466_v40 = vunpack.c.l.bf16 %v480_v34  ;;  %v467_v41 = vunpack.c.h.bf16 %v480_v34  ;;  %v474_v42 = vunpack.c.l.bf16 %v482_v35  ;;  %v475_v43 = vunpack.c.h.bf16 %v482_v35 }
   0xb   :  { %490 = vmatpush.bf16.msra.mxu2 %v441_v2  ;;  %491 = vmatpush.bf16.msra.mxu3 %v441_v2  ;;  %v73_v44 = vmax.f32 %v450_v36, 0.0  ;;  %v74_v45 = vmax.f32 %v451_v37, 0.0  ;;  %v77_v46 = vmax.f32 %v458_v38, 0.0  ;;  %v78_v47 = vmax.f32 %v459_v39, 0.0 }
   0xc   :  { %v81_v48 = vmax.f32 %v466_v40, 0.0  ;;  %v82_v49 = vmax.f32 %v467_v41, 0.0  ;;  %v85_v50 = vmax.f32 %v474_v42, 0.0  ;;  %v86_v51 = vmax.f32 %v475_v43, 0.0 }
   0xd   :  { %v88_v52 = vpack.c.bf16 %v74_v45, %v73_v44  ;;  %v90_v53 = vpack.c.bf16 %v78_v47, %v77_v46 }
   0xe   :  { %178 = vmatpush.bf16.msra.mxu0 %v440_v3  ;;  %492 = vmatpush.bf16.msra.mxu1 %v440_v3  ;;  %v92_v54 = vpack.c.bf16 %v82_v49, %v81_v48  ;;  %v94_v55 = vpack.c.bf16 %v86_v51, %v85_v50 }
   0xf   :  { %493 = vmatpush.bf16.msra.mxu2 %v440_v3  ;;  %494 = vmatpush.bf16.msra.mxu3 %v440_v3 }
  0x12   :  { %179 = vmatpush.bf16.msra.mxu0 %v439_v4  ;;  %495 = vmatpush.bf16.msra.mxu1 %v439_v4 }
  0x13   :  { %496 = vmatpush.bf16.msra.mxu2 %v439_v4  ;;  %497 = vmatpush.bf16.msra.mxu3 %v439_v4 }
  0x16   :  { %180 = vmatpush.bf16.msra.mxu0 %v438_v5  ;;  %498 = vmatpush.bf16.msra.mxu1 %v438_v5 }
  0x17   :  { %499 = vmatpush.bf16.msra.mxu2 %v438_v5  ;;  %500 = vmatpush.bf16.msra.mxu3 %v438_v5 }
  0x1a   :  { %181 = vmatpush.bf16.msra.mxu0 %v437_v14  ;;  %501 = vmatpush.bf16.msra.mxu1 %v437_v14 }
  0x1b   :  { %502 = vmatpush.bf16.msra.mxu2 %v437_v14  ;;  %503 = vmatpush.bf16.msra.mxu3 %v437_v14 }
  0x1e   :  { %182 = vmatpush.bf16.msra.mxu0 %v436_v23  ;;  %504 = vmatpush.bf16.msra.mxu1 %v436_v23 }
  0x1f   :  { %505 = vmatpush.bf16.msra.mxu2 %v436_v23  ;;  %506 = vmatpush.bf16.msra.mxu3 %v436_v23 }
  0x21   :  { %183 = vmatmul.bf16.vlgmr.msra.gmra.mxu0 %v87_v28  ;;  %193 = vmatmul.bf16.vlgmr.msra.gmra.mxu1 %v89_v29 }
  0x22   :  { %203 = vmatmul.bf16.vlgmr.msra.gmra.mxu2 %v91_v30  ;;  %213 = vmatmul.bf16.vlgmr.msra.gmra.mxu3 %v93_v31 }
  0x31   :  { %188 = vmatmul.bf16.gmra.mxu0 %v88_v52  ;;  %198 = vmatmul.bf16.gmra.mxu1 %v90_v53 }
  0x32   :  { %208 = vmatmul.bf16.gmra.mxu2 %v92_v54  ;;  %218 = vmatmul.bf16.gmra.mxu3 %v94_v55 }
  0x9e   :  { %v184_v58 = vpop.f32.mrf.mxu0  ;;  %v194_v59 = vpop.f32.mrf.mxu1 }
  0x9f   :  { %v279_v60 = vmul.f32 %v590_v56, %v184_v58  ;;  %v283_v61 = vmul.f32 %v590_v56, %v194_v59 }
  0xa1   :  { %v299_v62 = vadd.f32 %v595_v57, %v279_v60  ;;  %v303_v63 = vadd.f32 %v595_v57, %v283_v61 }
  0xa3   :  { %315 = vst [vmem:[%s702_s4] sm:$0xff] %v299_v62  ;;  %v352_v27 = vmul.f32 %v299_v62, %v299_v62  ;;  %v356_v45 = vmul.f32 %v303_v63, %v303_v63 }
  0xa4   :  { %319 = vst [vmem:[%s702_s4 + $0x20] sm:$0xff] %v303_v63 }
  0xa5   :  { %v204_v0 = vpop.f32.mrf.mxu2  ;;  %v214_v1 = vpop.f32.mrf.mxu3 }
  0xa6   :  { %v186_v2 = vpop.f32.mrf.mxu0  ;;  %v196_v3 = vpop.f32.mrf.mxu1  ;;  %v287_v4 = vmul.f32 %v590_v56, %v204_v0  ;;  %v291_v5 = vmul.f32 %v590_v56, %v214_v1 }
  0xa7   :  { %v280_v6 = vmul.f32 %v590_v56, %v186_v2  ;;  %v284_v7 = vmul.f32 %v590_v56, %v196_v3 }
  0xa8   :  { %v612_v8 = vadd.f32 %v595_v57, %v287_v4  ;;  %v617_v11 = vadd.f32 %v595_v57, %v291_v5 }
  0xa9   :  { %v300_v9 = vadd.f32 %v595_v57, %v280_v6  ;;  %v304_v10 = vadd.f32 %v595_v57, %v284_v7 }
  0xaa   :  { %323 = vst [vmem:[%s702_s4 + $0x40] sm:$0xff] %v612_v8 }
  0xab   :  { %316 = vst [vmem:[%s702_s4 + $0x8] sm:$0xff] %v300_v9  ;;  %v353_v24 = vmul.f32 %v300_v9, %v300_v9  ;;  %v331_v32 = vadd.f32 %v300_v9, %v299_v62  ;;  %v357_v52 = vmul.f32 %v304_v10, %v304_v10 }
  0xac   :  { %320 = vst [vmem:[%s702_s4 + $0x28] sm:$0xff] %v304_v10 }
  0xad   :  { %v206_v12 = vpop.f32.mrf.mxu2  ;;  %327 = vst [vmem:[%s702_s4 + $0x60] sm:$0xff] %v617_v11  ;;  %v216_v13 = vpop.f32.mrf.mxu3  ;;  %v368_v36 = vadd.f32 %v353_v24, %v352_v27 }
  0xae   :  { %v189_v14 = vpop.f32.mrf.mxu0  ;;  %v199_v15 = vpop.f32.mrf.mxu1  ;;  %v288_v16 = vmul.f32 %v590_v56, %v206_v12  ;;  %v292_v17 = vmul.f32 %v590_v56, %v216_v13  ;;  %v364_v13 = vmul.f32 %v617_v11, %v617_v11 }
  0xaf   :  { %v281_v18 = vmul.f32 %v590_v56, %v189_v14  ;;  %v285_v19 = vmul.f32 %v590_v56, %v199_v15 }
  0xb0   :  { %v308_v20 = vadd.f32 %v595_v57, %v288_v16  ;;  %v641_v23 = vadd.f32 %v595_v57, %v292_v17 }
  0xb1   :  { %v301_v21 = vadd.f32 %v595_v57, %v281_v18  ;;  %v305_v22 = vadd.f32 %v595_v57, %v285_v19 }
  0xb2   :  { %324 = vst [vmem:[%s702_s4 + $0x48] sm:$0xff] %v308_v20  ;;  %v361_v2 = vmul.f32 %v308_v20, %v308_v20  ;;  %v365_v16 = vmul.f32 %v641_v23, %v641_v23 }
  0xb3   :  { %317 = vst [vmem:[%s702_s4 + $0x10] sm:$0xff] %v301_v21  ;;  %v354_v33 = vmul.f32 %v301_v21, %v301_v21  ;;  %v332_v38 = vadd.f32 %v331_v32, %v301_v21  ;;  %v358_v59 = vmul.f32 %v305_v22, %v305_v22 }
  0xb4   :  { %321 = vst [vmem:[%s702_s4 + $0x30] sm:$0xff] %v305_v22 }
  0xb5   :  { %v209_v25 = vpop.f32.mrf.mxu2  ;;  %328 = vst [vmem:[%s702_s4 + $0x68] sm:$0xff] %v641_v23  ;;  %v219_v26 = vpop.f32.mrf.mxu3  ;;  %v369_v42 = vadd.f32 %v368_v36, %v354_v33 }
  0xb6   :  { %v191_v28 = vpop.f32.mrf.mxu0  ;;  %v201_v29 = vpop.f32.mrf.mxu1  ;;  %v289_v30 = vmul.f32 %v590_v56, %v209_v25  ;;  %v293_v31 = vmul.f32 %v590_v56, %v219_v26 }
  0xb7   :  { %v282_v34 = vmul.f32 %v590_v56, %v191_v28  ;;  %v286_v35 = vmul.f32 %v590_v56, %v201_v29  ;;  %v389_v29 = vlaneseq }
  0xb8   :  { %v309_v37 = vadd.f32 %v595_v57, %v289_v30  ;;  %v313_v41 = vadd.f32 %v595_v57, %v293_v31 }
  0xb9   :  { %v302_v39 = vadd.f32 %v595_v57, %v282_v34  ;;  %v306_v40 = vadd.f32 %v595_v57, %v286_v35  ;;  %v390_v33 = vshrl.u32 %v389_v29, 7 }
  0xba   :  { %325 = vst [vmem:[%s702_s4 + $0x50] sm:$0xff] %v309_v37  ;;  %v362_v6 = vmul.f32 %v309_v37, %v309_v37  ;;  %v366_v19 = vmul.f32 %v313_v41, %v313_v41 }
  0xbb   :  { %318 = vst [vmem:[%s702_s4 + $0x18] sm:$0xff] %v302_v39  ;;  %v333_v43 = vadd.f32 %v332_v38, %v302_v39  ;;  %v355_v44 = vmul.f32 %v302_v39, %v302_v39  ;;  %vm392_vm0 = vcmp.eq.s32.totalorder %v390_v33, 1  ;;  %vm391_vm1 = vcmp.eq.s32.totalorder %v390_v33, 0 }
  0xbc   :  { %322 = vst [vmem:[%s702_s4 + $0x38] sm:$0xff] %v306_v40 }
  0xbd   :  { %v334_v46 = vadd.f32 %v333_v43, %v303_v63  ;;  %v370_v47 = vadd.f32 %v369_v42, %v355_v44  ;;  %v211_v48 = vpop.f32.mrf.mxu2  ;;  %329 = vst [vmem:[%s702_s4 + $0x70] sm:$0xff] %v313_v41  ;;  %v221_v49 = vpop.f32.mrf.mxu3  ;;  %v359_v63 = vmul.f32 %v306_v40, %v306_v40 }
  0xbe   :  { %v290_v50 = vmul.f32 %v590_v56, %v211_v48  ;;  %v294_v51 = vmul.f32 %v590_v56, %v221_v49  ;;  %v360_v56 = vmul.f32 %v612_v8, %v612_v8 }
  0xbf   :  { %v371_v53 = vadd.f32 %v370_v47, %v356_v45  ;;  %v335_v54 = vadd.f32 %v334_v46, %v304_v10 }
  0xc0   :  { %v310_v55 = vadd.f32 %v595_v57, %v290_v50  ;;  %v314_v58 = vadd.f32 %v595_v57, %v294_v51 }
  0xc1   :  { %v336_v60 = vadd.f32 %v335_v54, %v305_v22  ;;  %v372_v61 = vadd.f32 %v371_v53, %v357_v52 }
  0xc2   :  { %326 = vst [vmem:[%s702_s4 + $0x58] sm:$0xff] %v310_v55  ;;  %v363_v12 = vmul.f32 %v310_v55, %v310_v55  ;;  %v367_v24 = vmul.f32 %v314_v58, %v314_v58 }
  0xc3   :  { %v337_v62 = vadd.f32 %v336_v60, %v306_v40  ;;  %v373_v0 = vadd.f32 %v372_v61, %v358_v59  ;;  %330 = vst [vmem:[%s702_s4 + $0x78] sm:$0xff] %v314_v58 }
  0xc5   :  { %v338_v1 = vadd.f32 %v337_v62, %v612_v8  ;;  %v374_v57 = vadd.f32 %v373_v0, %v359_v63 }
  0xc7   :  { %v375_v3 = vadd.f32 %v374_v57, %v360_v56  ;;  %v339_v4 = vadd.f32 %v338_v1, %v308_v20 }
  0xc9   :  { %v340_v5 = vadd.f32 %v339_v4, %v309_v37  ;;  %v376_v7 = vadd.f32 %v375_v3, %v361_v2 }
  0xcb   :  { %v377_v9 = vadd.f32 %v376_v7, %v362_v6  ;;  %v341_v10 = vadd.f32 %v340_v5, %v310_v55 }
  0xcd   :  { %v342_v14 = vadd.f32 %v341_v10, %v617_v11  ;;  %v378_v15 = vadd.f32 %v377_v9, %v363_v12 }
  0xcf   :  { %v379_v8 = vadd.f32 %v378_v15, %v364_v13  ;;  %v343_v17 = vadd.f32 %v342_v14, %v641_v23 }
  0xd1   :  { %v344_v18 = vadd.f32 %v343_v17, %v313_v41  ;;  %v380_v20 = vadd.f32 %v379_v8, %v365_v16 }
  0xd3   :  { %v381_v21 = vadd.f32 %v380_v20, %v366_v19  ;;  %v345_v22 = vadd.f32 %v344_v18, %v314_v58 }
  0xd5   :  { %v346_v25 = vrot.slane %v345_v22, 4  ;;  %v382_v26 = vadd.f32 %v381_v21, %v367_v24 }
  0xd7   :  { %v347_v27 = vadd.f32 %v346_v25, %v345_v22  ;;  %v383_v28 = vrot.slane %v382_v26, 4 }
  0xd9   :  { %v348_v30 = vrot.slane %v347_v27, 2  ;;  %v384_v11 = vadd.f32 %v383_v28, %v382_v26 }
  0xdb   :  { %v349_v31 = vadd.f32 %v348_v30, %v347_v27  ;;  %v385_v32 = vrot.slane %v384_v11, 2 }
  0xdd   :  { %v386_v34 = vadd.f32 %v385_v32, %v384_v11  ;;  %v350_v35 = vrot.slane %v349_v31, 1 }
  0xdf   :  { %v387_v36 = vrot.slane %v386_v34, 1  ;;  %v351_v37 = vadd.f32 %v350_v35, %v349_v31 }
  0xe1   :  { %v388_v23 = vadd.f32 %v387_v36, %v386_v34 }
  0xe3   :  { %v393_v38 = vsel %vm392_vm0, %v388_v23, 0.0 }
  0xe4   :  { %v394_v39 = vsel %vm391_vm1, %v351_v37, %v393_v38 }
  0xe5   :  { %395 = vst [vmem:[%s703_s5] sm:$0xff] %v394_v39 }

// kernel: unet_256_forward.84
= control target key start
LH: loop header
LB: loop body
LE: loop exit
PB: predicated region body
PF: predicated region fallthrough
CT: control target
= control target key end

     0   :  { %s1287_s15 = smov 0   ;;  %s1289_s16 = smov 0   ;;  %s1474_s0 = inlined_call_operand.vmem [shape: bf16[512,128], index: 0, kind: input, shape index: {}]   ;;  %s1475_s1 = inlined_call_operand.vmem [shape: bf16[128,128], index: 1, kind: input, shape index: {}]   ;;  %s1476_s2 = inlined_call_operand.vmem [shape: f32[1,128], index: 2, kind: input, shape index: {}]   ;;  %s1477_s3 = inlined_call_operand.vmem [shape: f32[1,128], index: 3, kind: input, shape index: {}]   ;;  %s1478_s4 = inlined_call_operand.vmem [shape: f32[512,128], index: 4, kind: output, shape index: {}]  }
   0x1   :  { %s1291_s17 = smov 0  }
   0x2 LB: > { %s33_s18 = sadd.s32 1, %s1256_s16  ;;  %p998_p0 = scmp.ge.s32.totalorder %s1260_s17, 1  ;;  %s1260_s17 = sphi %s1291_s17, %s14_s17   ;;  %s1256_s16 = sphi %s1289_s16, %s1480_s16   ;;  %s1252_s15 = sphi %s1287_s15, %s1479_s15  }
   0x3   : > { %p35_p1 = scmp.ge.s32.totalorder %s33_s18, 2  ;;  %p221_p2 = scmp.lt.s32.totalorder %s1260_s17, 3 }
   0x5   : > { %s1482_s18 = smov (%p35_p1, %s33_s18), 0  ;;  %p222_p3 = pnand %p998_p0, %p221_p2 }
   0x6   : > { %s999_s21 = sshll.u32 (!%p222_p3), %s1252_s15, 5 }
   0x7   : > { %225 = sbr.rel (%p222_p3) target bundleno = 246 (0xf6), region = 36  ;;  %p268_p4 = scmp.lt.s32.totalorder (!%p222_p3), %s999_s21, 63 }
   0xc   : > { %v1044_v0 = vld [vmem:[%s1475_s1 + $0x38] sm:$0xff]  ;;  %v1043_v1 = vld [vmem:[%s1475_s1 + $0x30] sm:$0xff]  ;;  %v1042_v2 = vld [vmem:[%s1475_s1 + $0x28] sm:$0xff]  ;;  %s1484_s21 = smov (!%p268_p4, %s999_s21), 63 }
   0xd   : > { %544 = vmatpush.bf16.msra.mxu0 %v1044_v0  ;;  %1124 = vmatpush.bf16.msra.mxu1 %v1044_v0  ;;  %v1041_v3 = vld [vmem:[%s1475_s1 + $0x20] sm:$0xff]  ;;  %s1000_s28 = sshll.u32 %s1484_s21, 2  ;;  %v1040_v4 = vld [vmem:[%s1475_s1 + $0x18] sm:$0xff]  ;;  %v1039_v5 = vld [vmem:[%s1475_s1 + $0x10] sm:$0xff]  ;;  %s1002_s22 = sshll.u32 %s1484_s21, 3 }
   0xe   : > { %1125 = vmatpush.bf16.msra.mxu2 %v1044_v0  ;;  %1126 = vmatpush.bf16.msra.mxu3 %v1044_v0  ;;  %s1326_s7 = scalar_lea.vmem %s1474_s0, %s1000_s28  ;;  %v1038_v14 = vld [vmem:[%s1475_s1 + $0x8] sm:$0xff]  ;;  %v1037_v23 = vld [vmem:[%s1475_s1] sm:$0xff]  ;;  %s1373_s25 = scalar_lea.vmem %s1478_s4, %s1002_s22 }
   0xf   : > { %v1046_v6 = vld [vmem:[%s1326_s7] sm:$0xff]   ;;  %v1109_v32 = vld [vmem:[%s1326_s7 + $0x8] sm:$0xff]   ;;  %v1110_v56 = vld [vmem:[%s1326_s7 + $0x10] sm:$0xff]  }
  0x10   : > { %v1112_v7 = vld [vmem:[%s1326_s7 + $0x20] sm:$0xff]   ;;  %v1047_v10 = vunpack.c.l.bf16 %v1046_v6  ;;  %v1048_v11 = vunpack.c.h.bf16 %v1046_v6  ;;  %v1113_v33 = vld [vmem:[%s1326_s7 + $0x28] sm:$0xff]   ;;  %v1051_v36 = vunpack.c.l.bf16 %v1109_v32  ;;  %v1052_v37 = vunpack.c.h.bf16 %v1109_v32  ;;  %v1114_v57 = vld [vmem:[%s1326_s7 + $0x30] sm:$0xff]  }
  0x11   : > { %545 = vmatpush.bf16.msra.mxu0 %v1043_v1  ;;  %1127 = vmatpush.bf16.msra.mxu1 %v1043_v1  ;;  %v1116_v8 = vld [vmem:[%s1326_s7 + $0x40] sm:$0xff]   ;;  %v1063_v12 = vunpack.c.l.bf16 %v1112_v7  ;;  %v1064_v13 = vunpack.c.h.bf16 %v1112_v7  ;;  %v1117_v34 = vld [vmem:[%s1326_s7 + $0x48] sm:$0xff]   ;;  %v1067_v38 = vunpack.c.l.bf16 %v1113_v33  ;;  %v1068_v39 = vunpack.c.h.bf16 %v1113_v33  ;;  %v1118_v58 = vld [vmem:[%s1326_s7 + $0x50] sm:$0xff]  }
  0x12   : > { %1128 = vmatpush.bf16.msra.mxu2 %v1043_v1  ;;  %1129 = vmatpush.bf16.msra.mxu3 %v1043_v1  ;;  %v1120_v9 = vld [vmem:[%s1326_s7 + $0x60] sm:$0xff]   ;;  %v1079_v15 = vunpack.c.l.bf16 %v1116_v8  ;;  %v1080_v16 = vunpack.c.h.bf16 %v1116_v8  ;;  %v400_v19 = vmax.f32 %v1047_v10, 0.0  ;;  %v401_v20 = vmax.f32 %v1048_v11, 0.0  ;;  %v1121_v35 = vld [vmem:[%s1326_s7 + $0x68] sm:$0xff]   ;;  %v1122_v59 = vld [vmem:[%s1326_s7 + $0x70] sm:$0xff]  }
  0x13   : > { %v1095_v17 = vunpack.c.l.bf16 %v1120_v9  ;;  %v1096_v18 = vunpack.c.h.bf16 %v1120_v9  ;;  %v408_v21 = vmax.f32 %v1063_v12, 0.0  ;;  %v409_v22 = vmax.f32 %v1064_v13, 0.0 }
  0x14   : > { %v416_v24 = vmax.f32 %v1079_v15, 0.0  ;;  %v417_v25 = vmax.f32 %v1080_v16, 0.0  ;;  %v432_v28 = vpack.c.bf16 %v401_v20, %v400_v19  ;;  %v1083_v40 = vunpack.c.l.bf16 %v1117_v34  ;;  %v1111_v16 = vld [vmem:[%s1326_s7 + $0x18] sm:$0xff]  }
  0x15   : > { %546 = vmatpush.bf16.msra.mxu0 %v1042_v2  ;;  %1130 = vmatpush.bf16.msra.mxu1 %v1042_v2  ;;  %v424_v26 = vmax.f32 %v1095_v17, 0.0  ;;  %v425_v27 = vmax.f32 %v1096_v18, 0.0  ;;  %v436_v29 = vpack.c.bf16 %v409_v22, %v408_v21  ;;  %v1084_v41 = vunpack.c.h.bf16 %v1117_v34  ;;  %v1115_v17 = vld [vmem:[%s1326_s7 + $0x38] sm:$0xff]  }
  0x16   : > { %1131 = vmatpush.bf16.msra.mxu2 %v1042_v2  ;;  %1132 = vmatpush.bf16.msra.mxu3 %v1042_v2  ;;  %v440_v30 = vpack.c.bf16 %v417_v25, %v416_v24  ;;  %v1099_v42 = vunpack.c.l.bf16 %v1121_v35  ;;  %v1100_v43 = vunpack.c.h.bf16 %v1121_v35  ;;  %v402_v44 = vmax.f32 %v1051_v36, 0.0  ;;  %v1119_v18 = vld [vmem:[%s1326_s7 + $0x58] sm:$0xff]  }
  0x17   : > { %v444_v31 = vpack.c.bf16 %v425_v27, %v424_v26  ;;  %v403_v45 = vmax.f32 %v1052_v37, 0.0  ;;  %v410_v46 = vmax.f32 %v1067_v38, 0.0  ;;  %v411_v47 = vmax.f32 %v1068_v39, 0.0  ;;  %v1123_v19 = vld [vmem:[%s1326_s7 + $0x78] sm:$0xff]  }
  0x18   : > { %v418_v48 = vmax.f32 %v1083_v40, 0.0  ;;  %v419_v49 = vmax.f32 %v1084_v41, 0.0  ;;  %v426_v50 = vmax.f32 %v1099_v42, 0.0  ;;  %v427_v51 = vmax.f32 %v1100_v43, 0.0  ;;  %v1356_v40 = vld [vmem:[%s1476_s2] ss:$0 sm:$0xff] }
  0x19   : > { %547 = vmatpush.bf16.msra.mxu0 %v1041_v3  ;;  %1133 = vmatpush.bf16.msra.mxu1 %v1041_v3  ;;  %v433_v52 = vpack.c.bf16 %v403_v45, %v402_v44  ;;  %v437_v53 = vpack.c.bf16 %v411_v47, %v410_v46  ;;  %v1055_v60 = vunpack.c.l.bf16 %v1110_v56  ;;  %v1056_v61 = vunpack.c.h.bf16 %v1110_v56  ;;  %v1361_v41 = vld [vmem:[%s1477_s3] ss:$0 sm:$0xff] }
  0x1a   : > { %1134 = vmatpush.bf16.msra.mxu2 %v1041_v3  ;;  %1135 = vmatpush.bf16.msra.mxu3 %v1041_v3  ;;  %v441_v54 = vpack.c.bf16 %v419_v49, %v418_v48  ;;  %v445_v55 = vpack.c.bf16 %v427_v51, %v426_v50  ;;  %v1071_v62 = vunpack.c.l.bf16 %v1114_v57  ;;  %v1072_v63 = vunpack.c.h.bf16 %v1114_v57 }
  0x1b   : > { %v1087_v0 = vunpack.c.l.bf16 %v1118_v58  ;;  %v1088_v1 = vunpack.c.h.bf16 %v1118_v58  ;;  %v1103_v2 = vunpack.c.l.bf16 %v1122_v59  ;;  %v1104_v3 = vunpack.c.h.bf16 %v1122_v59 }
  0x1c   : > { %v412_v6 = vmax.f32 %v1071_v62, 0.0  ;;  %v413_v7 = vmax.f32 %v1072_v63, 0.0  ;;  %v1059_v20 = vunpack.c.l.bf16 %v1111_v16  ;;  %v1060_v21 = vunpack.c.h.bf16 %v1111_v16 }
  0x1d   : > { %548 = vmatpush.bf16.msra.mxu0 %v1040_v4  ;;  %1136 = vmatpush.bf16.msra.mxu1 %v1040_v4  ;;  %v420_v8 = vmax.f32 %v1087_v0, 0.0  ;;  %v421_v9 = vmax.f32 %v1088_v1, 0.0  ;;  %v428_v10 = vmax.f32 %v1103_v2, 0.0  ;;  %v429_v11 = vmax.f32 %v1104_v3, 0.0 }
  0x1e   : > { %1137 = vmatpush.bf16.msra.mxu2 %v1040_v4  ;;  %1138 = vmatpush.bf16.msra.mxu3 %v1040_v4  ;;  %v404_v4 = vmax.f32 %v1055_v60, 0.0  ;;  %v438_v13 = vpack.c.bf16 %v413_v7, %v412_v6  ;;  %v1075_v22 = vunpack.c.l.bf16 %v1115_v17  ;;  %v1091_v24 = vunpack.c.l.bf16 %v1119_v18 }
  0x1f   : > { %v446_v15 = vpack.c.bf16 %v429_v11, %v428_v10  ;;  %v1092_v25 = vunpack.c.h.bf16 %v1119_v18  ;;  %v1107_v26 = vunpack.c.l.bf16 %v1123_v19  ;;  %v1108_v27 = vunpack.c.h.bf16 %v1123_v19 }
  0x20   : > { %v422_v32 = vmax.f32 %v1091_v24, 0.0 }
  0x21   : > { %549 = vmatpush.bf16.msra.mxu0 %v1039_v5  ;;  %1139 = vmatpush.bf16.msra.mxu1 %v1039_v5  ;;  %v423_v33 = vmax.f32 %v1092_v25, 0.0  ;;  %v430_v34 = vmax.f32 %v1107_v26, 0.0  ;;  %v431_v35 = vmax.f32 %v1108_v27, 0.0 }
  0x22   : > { %1140 = vmatpush.bf16.msra.mxu2 %v1039_v5  ;;  %1141 = vmatpush.bf16.msra.mxu3 %v1039_v5  ;;  %v405_v5 = vmax.f32 %v1056_v61, 0.0 }
  0x23   : > { %v443_v38 = vpack.c.bf16 %v423_v33, %v422_v32  ;;  %v447_v39 = vpack.c.bf16 %v431_v35, %v430_v34 }
  0x24   : > { %v434_v12 = vpack.c.bf16 %v405_v5, %v404_v4 }
  0x25   : > { %550 = vmatpush.bf16.msra.mxu0 %v1038_v14  ;;  %1142 = vmatpush.bf16.msra.mxu1 %v1038_v14 }
  0x26   : > { %1143 = vmatpush.bf16.msra.mxu2 %v1038_v14  ;;  %1144 = vmatpush.bf16.msra.mxu3 %v1038_v14  ;;  %v442_v14 = vpack.c.bf16 %v421_v9, %v420_v8 }
  0x29   : > { %551 = vmatpush.bf16.msra.mxu0 %v1037_v23  ;;  %1145 = vmatpush.bf16.msra.mxu1 %v1037_v23 }
  0x2a   : > { %1146 = vmatpush.bf16.msra.mxu2 %v1037_v23  ;;  %1147 = vmatpush.bf16.msra.mxu3 %v1037_v23  ;;  %v1076_v23 = vunpack.c.h.bf16 %v1115_v17 }
  0x2c   : > { %552 = vmatmul.bf16.vlgmr.msra.gmra.mxu0 %v432_v28  ;;  %572 = vmatmul.bf16.vlgmr.msra.gmra.mxu1 %v436_v29  ;;  %v406_v28 = vmax.f32 %v1059_v20, 0.0  ;;  %v407_v29 = vmax.f32 %v1060_v21, 0.0 }
  0x2d   : > { %592 = vmatmul.bf16.vlgmr.msra.gmra.mxu2 %v440_v30  ;;  %612 = vmatmul.bf16.vlgmr.msra.gmra.mxu3 %v444_v31  ;;  %v414_v30 = vmax.f32 %v1075_v22, 0.0  ;;  %v415_v31 = vmax.f32 %v1076_v23, 0.0 }
  0x2e   : > { %v435_v36 = vpack.c.bf16 %v407_v29, %v406_v28 }
  0x2f   : > { %v439_v37 = vpack.c.bf16 %v415_v31, %v414_v30 }
  0x3c   : > { %557 = vmatmul.bf16.gmra.mxu0 %v433_v52  ;;  %577 = vmatmul.bf16.gmra.mxu1 %v437_v53 }
  0x3d   : > { %597 = vmatmul.bf16.gmra.mxu2 %v441_v54  ;;  %617 = vmatmul.bf16.gmra.mxu3 %v445_v55 }
  0x4c   : > { %562 = vmatmul.bf16.gmra.mxu0 %v434_v12  ;;  %582 = vmatmul.bf16.gmra.mxu1 %v438_v13 }
  0x4d   : > { %602 = vmatmul.bf16.gmra.mxu2 %v442_v14  ;;  %622 = vmatmul.bf16.gmra.mxu3 %v446_v15 }
  0x5c   : > { %567 = vmatmul.bf16.gmra.mxu0 %v435_v36  ;;  %587 = vmatmul.bf16.gmra.mxu1 %v439_v37 }
  0x5d   : > { %607 = vmatmul.bf16.gmra.mxu2 %v443_v38  ;;  %627 = vmatmul.bf16.gmra.mxu3 %v447_v39 }
  0xa9   : > { %v553_v42 = vpop.f32.mrf.mxu0  ;;  %v573_v43 = vpop.f32.mrf.mxu1 }
  0xaa   : > { %v736_v44 = vmul.f32 %v1356_v40, %v553_v42  ;;  %v744_v45 = vmul.f32 %v1356_v40, %v573_v43 }
  0xac   : > { %v772_v46 = vadd.f32 %v1361_v41, %v736_v44  ;;  %v780_v47 = vadd.f32 %v1361_v41, %v744_v45 }
  0xae   : > { %1174 = vtanh.f32 %v772_v46 }
  0xaf   : > { %1176 = vtanh.f32 %v780_v47 }
  0xb0   : > { %v593_v48 = vpop.f32.mrf.mxu2  ;;  %v613_v49 = vpop.f32.mrf.mxu3 }
  0xb1   : > { %v752_v50 = vmul.f32 %v1356_v40, %v593_v48  ;;  %v760_v51 = vmul.f32 %v1356_v40, %v613_v49  ;;  %v555_v52 = vpop.f32.mrf.mxu0  ;;  %v575_v53 = vpop.f32.mrf.mxu1 }
  0xb2   : > { %v737_v54 = vmul.f32 %v1356_v40, %v555_v52  ;;  %v745_v55 = vmul.f32 %v1356_v40, %v575_v53 }
  0xb3   : > { %v788_v56 = vadd.f32 %v1361_v41, %v752_v50  ;;  %v796_v57 = vadd.f32 %v1361_v41, %v760_v51 }
  0xb4   : > { %v1175_v58 = vpop.eup %1174  ;;  %v773_v59 = vadd.f32 %v1361_v41, %v737_v54  ;;  %v781_v60 = vadd.f32 %v1361_v41, %v745_v55 }
  0xb5   : > { %v1177_v61 = vpop.eup %1176  ;;  %836 = vst [vmem:[%s1373_s25] sm:$0xff] %v1175_v58  ;;  %1178 = vtanh.f32 %v788_v56 }
  0xb6   : > { %844 = vst [vmem:[%s1373_s25 + $0x40] sm:$0xff] %v1177_v61  ;;  %1180 = vtanh.f32 %v796_v57 }
  0xb7   : > { %1182 = vtanh.f32 %v773_v59 }
  0xb8   : > { %1184 = vtanh.f32 %v781_v60  ;;  %v595_v62 = vpop.f32.mrf.mxu2  ;;  %v615_v63 = vpop.f32.mrf.mxu3 }
  0xb9   : > { %v753_v0 = vmul.f32 %v1356_v40, %v595_v62  ;;  %v761_v1 = vmul.f32 %v1356_v40, %v615_v63  ;;  %v558_v2 = vpop.f32.mrf.mxu0  ;;  %v578_v3 = vpop.f32.mrf.mxu1 }
  0xba   : > { %v738_v4 = vmul.f32 %v1356_v40, %v558_v2  ;;  %v746_v5 = vmul.f32 %v1356_v40, %v578_v3 }
  0xbb   : > { %v1179_v6 = vpop.eup %1178  ;;  %v789_v7 = vadd.f32 %v1361_v41, %v753_v0  ;;  %v797_v8 = vadd.f32 %v1361_v41, %v761_v1 }
  0xbc   : > { %v1181_v9 = vpop.eup %1180  ;;  %852 = vst [vmem:[%s1373_s25 + $0x80] sm:$0xff] %v1179_v6  ;;  %v774_v10 = vadd.f32 %v1361_v41, %v738_v4  ;;  %v782_v11 = vadd.f32 %v1361_v41, %v746_v5 }
  0xbd   : > { %v1183_v12 = vpop.eup %1182  ;;  %860 = vst [vmem:[%s1373_s25 + $0xc0] sm:$0xff] %v1181_v9  ;;  %1186 = vtanh.f32 %v789_v7 }
  0xbe   : > { %v1185_v13 = vpop.eup %1184  ;;  %837 = vst [vmem:[%s1373_s25 + $0x8] sm:$0xff] %v1183_v12  ;;  %1188 = vtanh.f32 %v797_v8 }
  0xbf   : > { %845 = vst [vmem:[%s1373_s25 + $0x48] sm:$0xff] %v1185_v13  ;;  %1190 = vtanh.f32 %v774_v10 }
  0xc0   : > { %1192 = vtanh.f32 %v782_v11  ;;  %v598_v14 = vpop.f32.mrf.mxu2  ;;  %v618_v15 = vpop.f32.mrf.mxu3 }
  0xc1   : > { %v754_v16 = vmul.f32 %v1356_v40, %v598_v14  ;;  %v762_v17 = vmul.f32 %v1356_v40, %v618_v15  ;;  %v560_v18 = vpop.f32.mrf.mxu0  ;;  %v580_v19 = vpop.f32.mrf.mxu1 }
  0xc2   : > { %v739_v20 = vmul.f32 %v1356_v40, %v560_v18  ;;  %v747_v21 = vmul.f32 %v1356_v40, %v580_v19 }
  0xc3   : > { %v1187_v22 = vpop.eup %1186  ;;  %v790_v23 = vadd.f32 %v1361_v41, %v754_v16  ;;  %v798_v24 = vadd.f32 %v1361_v41, %v762_v17 }
  0xc4   : > { %v1189_v25 = vpop.eup %1188  ;;  %853 = vst [vmem:[%s1373_s25 + $0x88] sm:$0xff] %v1187_v22  ;;  %v775_v26 = vadd.f32 %v1361_v41, %v739_v20  ;;  %v783_v27 = vadd.f32 %v1361_v41, %v747_v21 }
  0xc5   : > { %v1191_v28 = vpop.eup %1190  ;;  %861 = vst [vmem:[%s1373_s25 + $0xc8] sm:$0xff] %v1189_v25  ;;  %1194 = vtanh.f32 %v790_v23 }
  0xc6   : > { %v1193_v29 = vpop.eup %1192  ;;  %838 = vst [vmem:[%s1373_s25 + $0x10] sm:$0xff] %v1191_v28  ;;  %1196 = vtanh.f32 %v798_v24 }
  0xc7   : > { %846 = vst [vmem:[%s1373_s25 + $0x50] sm:$0xff] %v1193_v29  ;;  %1198 = vtanh.f32 %v775_v26 }
  0xc8   : > { %1200 = vtanh.f32 %v783_v27  ;;  %v600_v30 = vpop.f32.mrf.mxu2  ;;  %v620_v31 = vpop.f32.mrf.mxu3 }
  0xc9   : > { %v755_v32 = vmul.f32 %v1356_v40, %v600_v30  ;;  %v763_v33 = vmul.f32 %v1356_v40, %v620_v31  ;;  %v563_v34 = vpop.f32.mrf.mxu0  ;;  %v583_v35 = vpop.f32.mrf.mxu1 }
  0xca   : > { %v740_v36 = vmul.f32 %v1356_v40, %v563_v34  ;;  %v748_v37 = vmul.f32 %v1356_v40, %v583_v35 }
  0xcb   : > { %v1195_v38 = vpop.eup %1194  ;;  %v791_v39 = vadd.f32 %v1361_v41, %v755_v32  ;;  %v799_v42 = vadd.f32 %v1361_v41, %v763_v33 }
  0xcc   : > { %v1197_v43 = vpop.eup %1196  ;;  %854 = vst [vmem:[%s1373_s25 + $0x90] sm:$0xff] %v1195_v38  ;;  %v776_v44 = vadd.f32 %v1361_v41, %v740_v36  ;;  %v784_v45 = vadd.f32 %v1361_v41, %v748_v37 }
  0xcd   : > { %v1199_v46 = vpop.eup %1198  ;;  %862 = vst [vmem:[%s1373_s25 + $0xd0] sm:$0xff] %v1197_v43  ;;  %1202 = vtanh.f32 %v791_v39 }
  0xce   : > { %v1201_v47 = vpop.eup %1200  ;;  %839 = vst [vmem:[%s1373_s25 + $0x18] sm:$0xff] %v1199_v46  ;;  %1204 = vtanh.f32 %v799_v42 }
  0xcf   : > { %847 = vst [vmem:[%s1373_s25 + $0x58] sm:$0xff] %v1201_v47  ;;  %1206 = vtanh.f32 %v776_v44 }
  0xd0   : > { %1208 = vtanh.f32 %v784_v45  ;;  %v603_v48 = vpop.f32.mrf.mxu2  ;;  %v623_v49 = vpop.f32.mrf.mxu3 }
  0xd1   : > { %v756_v50 = vmul.f32 %v1356_v40, %v603_v48  ;;  %v764_v51 = vmul.f32 %v1356_v40, %v623_v49  ;;  %v565_v52 = vpop.f32.mrf.mxu0  ;;  %v585_v53 = vpop.f32.mrf.mxu1 }
  0xd2   : > { %v741_v54 = vmul.f32 %v1356_v40, %v565_v52  ;;  %v749_v55 = vmul.f32 %v1356_v40, %v585_v53 }
  0xd3   : > { %v1203_v56 = vpop.eup %1202  ;;  %v792_v57 = vadd.f32 %v1361_v41, %v756_v50  ;;  %v800_v58 = vadd.f32 %v1361_v41, %v764_v51 }
  0xd4   : > { %v1205_v59 = vpop.eup %1204  ;;  %855 = vst [vmem:[%s1373_s25 + $0x98] sm:$0xff] %v1203_v56  ;;  %v777_v60 = vadd.f32 %v1361_v41, %v741_v54  ;;  %v785_v61 = vadd.f32 %v1361_v41, %v749_v55 }
  0xd5   : > { %v1207_v62 = vpop.eup %1206  ;;  %863 = vst [vmem:[%s1373_s25 + $0xd8] sm:$0xff] %v1205_v59  ;;  %1210 = vtanh.f32 %v792_v57 }
  0xd6   : > { %v1209_v63 = vpop.eup %1208  ;;  %840 = vst [vmem:[%s1373_s25 + $0x20] sm:$0xff] %v1207_v62  ;;  %1212 = vtanh.f32 %v800_v58 }
  0xd7   : > { %848 = vst [vmem:[%s1373_s25 + $0x60] sm:$0xff] %v1209_v63  ;;  %1214 = vtanh.f32 %v777_v60 }
  0xd8   : > { %1216 = vtanh.f32 %v785_v61  ;;  %v605_v0 = vpop.f32.mrf.mxu2  ;;  %v625_v1 = vpop.f32.mrf.mxu3 }
  0xd9   : > { %v757_v2 = vmul.f32 %v1356_v40, %v605_v0  ;;  %v765_v3 = vmul.f32 %v1356_v40, %v625_v1  ;;  %v568_v4 = vpop.f32.mrf.mxu0  ;;  %v588_v5 = vpop.f32.mrf.mxu1 }
  0xda   : > { %v742_v6 = vmul.f32 %v1356_v40, %v568_v4  ;;  %v750_v7 = vmul.f32 %v1356_v40, %v588_v5 }
  0xdb   : > { %v1211_v8 = vpop.eup %1210  ;;  %v793_v9 = vadd.f32 %v1361_v41, %v757_v2  ;;  %v801_v10 = vadd.f32 %v1361_v41, %v765_v3 }
  0xdc   : > { %v1213_v11 = vpop.eup %1212  ;;  %856 = vst [vmem:[%s1373_s25 + $0xa0] sm:$0xff] %v1211_v8  ;;  %v778_v12 = vadd.f32 %v1361_v41, %v742_v6  ;;  %v786_v13 = vadd.f32 %v1361_v41, %v750_v7 }
  0xdd   : > { %v1215_v14 = vpop.eup %1214  ;;  %864 = vst [vmem:[%s1373_s25 + $0xe0] sm:$0xff] %v1213_v11  ;;  %1218 = vtanh.f32 %v793_v9 }
  0xde   : > { %v1217_v15 = vpop.eup %1216  ;;  %841 = vst [vmem:[%s1373_s25 + $0x28] sm:$0xff] %v1215_v14  ;;  %1220 = vtanh.f32 %v801_v10 }
  0xdf   : > { %849 = vst [vmem:[%s1373_s25 + $0x68] sm:$0xff] %v1217_v15  ;;  %1222 = vtanh.f32 %v778_v12 }
  0xe0   : > { %1224 = vtanh.f32 %v786_v13  ;;  %v608_v16 = vpop.f32.mrf.mxu2  ;;  %v628_v17 = vpop.f32.mrf.mxu3 }
  0xe1   : > { %v758_v18 = vmul.f32 %v1356_v40, %v608_v16  ;;  %v766_v19 = vmul.f32 %v1356_v40, %v628_v17  ;;  %v570_v20 = vpop.f32.mrf.mxu0  ;;  %v590_v21 = vpop.f32.mrf.mxu1 }
  0xe2   : > { %v743_v22 = vmul.f32 %v1356_v40, %v570_v20  ;;  %v751_v23 = vmul.f32 %v1356_v40, %v590_v21 }
  0xe3   : > { %v1219_v24 = vpop.eup %1218  ;;  %v794_v25 = vadd.f32 %v1361_v41, %v758_v18  ;;  %v802_v26 = vadd.f32 %v1361_v41, %v766_v19 }
  0xe4   : > { %v1221_v27 = vpop.eup %1220  ;;  %857 = vst [vmem:[%s1373_s25 + $0xa8] sm:$0xff] %v1219_v24  ;;  %v779_v28 = vadd.f32 %v1361_v41, %v743_v22  ;;  %v787_v29 = vadd.f32 %v1361_v41, %v751_v23 }
  0xe5   : > { %v1223_v30 = vpop.eup %1222  ;;  %865 = vst [vmem:[%s1373_s25 + $0xe8] sm:$0xff] %v1221_v27  ;;  %1226 = vtanh.f32 %v794_v25 }
  0xe6   : > { %v1225_v31 = vpop.eup %1224  ;;  %842 = vst [vmem:[%s1373_s25 + $0x30] sm:$0xff] %v1223_v30  ;;  %1228 = vtanh.f32 %v802_v26 }
  0xe7   : > { %850 = vst [vmem:[%s1373_s25 + $0x70] sm:$0xff] %v1225_v31  ;;  %1230 = vtanh.f32 %v779_v28 }
  0xe8   : > { %1232 = vtanh.f32 %v787_v29  ;;  %v610_v32 = vpop.f32.mrf.mxu2  ;;  %v630_v33 = vpop.f32.mrf.mxu3 }
  0xe9   : > { %v759_v34 = vmul.f32 %v1356_v40, %v610_v32  ;;  %v767_v35 = vmul.f32 %v1356_v40, %v630_v33 }
  0xeb   : > { %v1227_v36 = vpop.eup %1226  ;;  %v795_v37 = vadd.f32 %v1361_v41, %v759_v34  ;;  %v803_v38 = vadd.f32 %v1361_v41, %v767_v35 }
  0xec   : > { %v1229_v39 = vpop.eup %1228  ;;  %858 = vst [vmem:[%s1373_s25 + $0xb0] sm:$0xff] %v1227_v36 }
  0xed   : > { %v1231_v42 = vpop.eup %1230  ;;  %866 = vst [vmem:[%s1373_s25 + $0xf0] sm:$0xff] %v1229_v39  ;;  %1234 = vtanh.f32 %v795_v37 }
  0xee   : > { %v1233_v43 = vpop.eup %1232  ;;  %843 = vst [vmem:[%s1373_s25 + $0x38] sm:$0xff] %v1231_v42  ;;  %1236 = vtanh.f32 %v803_v38 }
  0xef   : > { %851 = vst [vmem:[%s1373_s25 + $0x78] sm:$0xff] %v1233_v43 }
  0xf3   : > { %v1235_v44 = vpop.eup %1234 }
  0xf4   : > { %v1237_v45 = vpop.eup %1236  ;;  %859 = vst [vmem:[%s1373_s25 + $0xb8] sm:$0xff] %v1235_v44 }
  0xf5   : > { %867 = vst [vmem:[%s1373_s25 + $0xf8] sm:$0xff] %v1237_v45 }
  0xf6 PF: > { %s14_s17 = sadd.s32 1, %s1260_s17   ;;  %s1479_s15 = smov %s1256_s16 }
  0xf7   : > { %p11_p5 = scmp.ge.s32.totalorder %s14_s17, 4   ;;  %s1480_s16 = smov %s1482_s18 }
  0xf9   :  { %13 = sbr.rel (!%p11_p5) target bundleno = 2 (0x2), region = 83 }

</bundles_post_ra>
